<compile_context>
chip_gen: v6e
topology: v6e:2x2x1
jax: 0.10.0
libtpu: 0.0.40
codegen_flags: <defaults>
</compile_context>

<pallas_src>
import jax
import jax.numpy as jnp
from jax.experimental import pallas as pl
from jax.experimental.pallas import tpu as pltpu

V = 778                                   # MANO vertex count
VPAD = ((V + 127) // 128) * 128           # 896, lane-dense padded vertex count
NJ = 16                                   # MANO skeleton joints
NBETAS = 10
NPOSE = 48                                # 3 global + 45 (use_pca=False, ncomps=45)
NPOSEFEAT = 135                           # 15 joints * 9 (R - I)
NFEAT = 2 + 2 * NBETAS + 2 * NPOSEFEAT    # 292 (both hands block-diagonal)
CENTER_IDX = 0                            # stands in for args().align_idx (mano_mesh_root_align=True)

MANO_PARENTS = [-1, 0, 1, 2, 0, 4, 5, 0, 7, 8, 0, 10, 11, 0, 13, 14]
DEPTH_GROUPS = [[1, 4, 7, 10, 13], [2, 5, 8, 11, 14], [3, 6, 9, 12, 15]]
TIP_IDS = {'r': [745, 317, 444, 556, 673], 'l': [745, 317, 445, 556, 673]}
JOINT_REORDER = [0, 13, 14, 15, 16, 1, 2, 3, 17, 4, 5, 6, 18, 10, 11, 12, 19, 7, 8, 9, 20]


# ----------------------------------------------------------------------------
# The single fused Pallas kernel: blend + LBS for both hands, whole batch
# ----------------------------------------------------------------------------
def mano_fused_kernel(feat_ref, dirs_ref, a_ref, w_ref, out_ref):
    """feat_ref : (3N, NFEAT)    hand-masked [onehot | betas_l | betas_r | pf_l | pf_r], rows repeated 3x
    dirs_ref : (NFEAT, 3*VPAD)   stacked [tmpl_l|tmpl_r|shd_l|shd_r|psd_l|psd_r], coord-major lanes
    a_ref    : (4, 3N, 2*NJ)     hand-masked global transforms, a_ref[c, 3b+r, :] = A[b, :, r, c]
    w_ref    : (2*NJ, VPAD)      stacked skinning weights [W_l ; W_r]
    out_ref  : (3N, VPAD)        posed vertices, row 3b+r = coordinate r of batch element b
    """
    vp = w_ref.shape[-1]
    # shape + pose blend for both hands at once (block-diagonal via hand-masked features)
    vposed = jnp.dot(feat_ref[...], dirs_ref[...], preferred_element_type=jnp.float32)  # (3N, 3*VPAD)
    # skinning-weight blended transform entries T[r,c] per output row
    w = w_ref[...]
    t0 = jnp.dot(a_ref[0], w, preferred_element_type=jnp.float32)   # (3N, VPAD)
    t1 = jnp.dot(a_ref[1], w, preferred_element_type=jnp.float32)
    t2 = jnp.dot(a_ref[2], w, preferred_element_type=jnp.float32)
    t3 = jnp.dot(a_ref[3], w, preferred_element_type=jnp.float32)
    # homogeneous transform apply: out[r] = T[r,0]*x + T[r,1]*y + T[r,2]*z + T[r,3]
    out_ref[...] = (t3
                    + t0 * vposed[:, 0 * vp:1 * vp]
                    + t1 * vposed[:, 1 * vp:2 * vp]
                    + t2 * vposed[:, 2 * vp:3 * vp])


def fused_mano_call(feat_rep, dirs_aug, a_aug, w_stack):
    n3 = feat_rep.shape[0]
    vp = w_stack.shape[-1]
    return pl.pallas_call(
        mano_fused_kernel,
        out_shape=jax.ShapeDtypeStruct((n3, vp), jnp.float32),
        in_specs=[pl.BlockSpec(memory_space=pltpu.MemorySpace.VMEM)] * 4,
        out_specs=pl.BlockSpec(memory_space=pltpu.MemorySpace.VMEM),
    )(feat_rep, dirs_aug, a_aug, w_stack)


# ----------------------------------------------------------------------------
# JAX glue: Rodrigues, depth-grouped forward kinematics, full batched forward
# ----------------------------------------------------------------------------
def rodrigues(rvec):
    """(B, J, 3) axis-angle -> (B, J, 3, 3) rotation matrices."""
    sq = jnp.sum(rvec * rvec, axis=-1, keepdims=True)
    angle = jnp.sqrt(sq + 1e-16)
    axis = rvec / angle
    c = jnp.cos(angle)[..., None]
    s = jnp.sin(angle)[..., None]
    ax, ay, az = axis[..., 0], axis[..., 1], axis[..., 2]
    z = jnp.zeros_like(ax)
    K = jnp.stack([z, -az, ay, az, z, -ax, -ay, ax, z], axis=-1)
    K = K.reshape(rvec.shape[:-1] + (3, 3))
    outer = axis[..., :, None] * axis[..., None, :]
    eye = jnp.eye(3, dtype=rvec.dtype)
    return c * eye + (1.0 - c) * outer + s * K


def forward_kinematics(rot_mats, joints_rest):
    """rot_mats (B,16,3,3), joints_rest (B,16,3) -> posed joints (B,16,3),
    corrected global transforms A (B,16,4,4). Chain grouped by kinematic depth."""
    B = rot_mats.shape[0]
    parent_idx = jnp.array([max(p, 0) for p in MANO_PARENTS])
    rel = joints_rest - joints_rest[:, parent_idx]
    rel = rel.at[:, 0].set(joints_rest[:, 0])
    top = jnp.concatenate([rot_mats, rel[..., None]], axis=-1)                 # (B,16,3,4)
    bottom = jnp.broadcast_to(jnp.array([0.0, 0.0, 0.0, 1.0], jnp.float32), (B, NJ, 1, 4))
    local = jnp.concatenate([top, bottom], axis=-2)                            # (B,16,4,4)

    G = jnp.zeros((B, NJ, 4, 4), jnp.float32)
    G = G.at[:, 0].set(local[:, 0])
    for grp in DEPTH_GROUPS:                       # 3 batched matmuls instead of 15 serial
        gi = jnp.array(grp)
        pi = jnp.array([MANO_PARENTS[j] for j in grp])
        G = G.at[:, gi].set(jnp.matmul(G[:, pi], local[:, gi]))

    posed_joints = G[:, :, :3, 3]
    corr = jnp.einsum('bjrk,bjk->bjr', G[:, :, :3, :3], joints_rest)
    A = G.at[:, :, :3, 3].add(-corr)
    return posed_joints, A


def mano_forward_batched(FP, poses, betas, hand_idx):
    """Both hands in a single batch. hand_idx[b] = 0 (left) / 1 (right)."""
    N = poses.shape[0]
    sel = jax.nn.one_hot(hand_idx, 2, dtype=jnp.float32)              # (N,2) = [left, right]
    hands_mean = FP['hands_mean_lr'][hand_idx]                        # (N,45)
    full_pose = jnp.concatenate([poses[:, :3], poses[:, 3:] + hands_mean], axis=1)
    rot = rodrigues(full_pose.reshape(N, NJ, 3))                      # (N,16,3,3)
    pose_feat = (rot[:, 1:] - jnp.eye(3, dtype=jnp.float32)).reshape(N, NPOSEFEAT)

    # Rest joints via folded-out tiny regressors (no (B,V)@(V,16) matmul anywhere).
    joints_rest = (FP['J_tmpl_lr'][hand_idx]
                   + jnp.einsum('njck,nk->njc', FP['J_beta_lr'][hand_idx], betas))  # (N,16,3)

    posed_joints16, A = forward_kinematics(rot, joints_rest)          # (N,16,3), (N,16,4,4)

    # ---- operands of the single fused Pallas kernel ----
    feat = jnp.concatenate(
        [sel,
         betas * sel[:, 0:1], betas * sel[:, 1:2],
         pose_feat * sel[:, 0:1], pose_feat * sel[:, 1:2]], axis=1)   # (N, NFEAT)
    feat_rep = jnp.repeat(feat, 3, axis=0)                            # (3N, NFEAT)

    # a_aug[c, 3b+r, hand_block + j] = A[b, j, r, c] masked by element b's hand
    a_rc = jnp.transpose(A[:, :, :3, :], (3, 0, 2, 1)).reshape(4, 3 * N, NJ)   # (4,3N,16)
    sel_rep = jnp.repeat(sel, 3, axis=0)                              # (3N,2)
    a_aug = jnp.concatenate([a_rc * sel_rep[None, :, 0:1],
                             a_rc * sel_rep[None, :, 1:2]], axis=-1)  # (4,3N,32)

    verts_rows = fused_mano_call(feat_rep, FP['dirs_aug'], a_aug, FP['weights_stack'])  # (3N,VPAD)

    verts = jnp.transpose(verts_rows.reshape(N, 3, VPAD), (0, 2, 1))[:, :V, :]          # (N,V,3)

    tips_idx = FP['tip_ids_lr'][hand_idx]                             # (N,5)
    tips = jnp.take_along_axis(verts, tips_idx[:, :, None], axis=1)   # (N,5,3)
    joints21 = jnp.concatenate([posed_joints16, tips], axis=1)[:, jnp.array(JOINT_REORDER)]

    if CENTER_IDX is not None:
        center = joints21[:, CENTER_IDX:CENTER_IDX + 1]
        verts = verts - center
        joints21 = joints21 - center
    return verts, joints21


# ----------------------------------------------------------------------------
# Deterministic synthetic MANO parameters (stand-in for the .pkl assets)
# ----------------------------------------------------------------------------
def init_mano_params(key, side):
    k = jax.random.split(key, 6)
    v_template = 0.01 * jax.random.normal(k[0], (V, 3), jnp.float32)
    shapedirs = 0.01 * jax.random.normal(k[1], (V, 3, NBETAS), jnp.float32)
    if side == 'l':
        # mimics: self.mano_layer['l'].th_shapedirs[:, 0, :] *= -1
        shapedirs = shapedirs.at[:, 0, :].multiply(-1.0)
    posedirs = 0.001 * jax.random.normal(k[2], (V, 3, NPOSEFEAT), jnp.float32)
    jreg = jax.random.uniform(k[3], (NJ, V), jnp.float32)
    jreg = jreg / jnp.sum(jreg, axis=1, keepdims=True)
    weights = jax.nn.softmax(jax.random.normal(k[4], (V, NJ), jnp.float32), axis=1)
    hands_mean = 0.1 * jax.random.normal(k[5], (NPOSE - 3,), jnp.float32)
    return {'v_template': v_template, 'shapedirs': shapedirs, 'posedirs': posedirs,
            'jreg': jreg, 'weights': weights, 'hands_mean': hands_mean,
            'tip_ids': jnp.array(TIP_IDS[side], jnp.int32)}


def _flatten_dirs(arr_vck):
    """(V, 3, K) -> (K, 3*VPAD): coordinate-major on the lane axis, zero-padded V -> VPAD."""
    k = arr_vck.shape[-1]
    a = jnp.transpose(arr_vck, (2, 1, 0))                  # (K, 3, V)
    a = jnp.pad(a, ((0, 0), (0, 0), (0, VPAD - V)))
    return a.reshape(k, 3 * VPAD)


def build_fused_params(p_l, p_r):
    dirs_aug = jnp.concatenate([
        _flatten_dirs(p_l['v_template'][:, :, None]),      # (1, 3*VPAD)
        _flatten_dirs(p_r['v_template'][:, :, None]),
        _flatten_dirs(p_l['shapedirs']),                   # (10, 3*VPAD)
        _flatten_dirs(p_r['shapedirs']),
        _flatten_dirs(p_l['posedirs']),                    # (135, 3*VPAD)
        _flatten_dirs(p_r['posedirs']),
    ], axis=0)                                             # (NFEAT, 3*VPAD)

    def w_pad(w):                                          # (V,16) -> (16,VPAD)
        return jnp.pad(jnp.transpose(w, (1, 0)), ((0, 0), (0, VPAD - V)))
    weights_stack = jnp.concatenate([w_pad(p_l['weights']), w_pad(p_r['weights'])], axis=0)  # (32,VPAD)

    def fold_jreg(p):   # fold joint regression into tiny per-hand matrices
        j_tmpl = p['jreg'] @ p['v_template']                            # (16,3)
        j_beta = jnp.einsum('jv,vck->jck', p['jreg'], p['shapedirs'])   # (16,3,10)
        return j_tmpl, j_beta
    jt_l, jb_l = fold_jreg(p_l)
    jt_r, jb_r = fold_jreg(p_r)

    return {
        'dirs_aug': dirs_aug,
        'weights_stack': weights_stack,
        'J_tmpl_lr': jnp.stack([jt_l, jt_r]),
        'J_beta_lr': jnp.stack([jb_l, jb_r]),
        'hands_mean_lr': jnp.stack([p_l['hands_mean'], p_r['hands_mean']]),
        'tip_ids_lr': jnp.stack([p_l['tip_ids'], p_r['tip_ids']]),
    }


class MANOWrapperPallas:
    """JAX/Pallas equivalent of acr.mano_wrapper.MANOWrapper.forward."""

    def __init__(self, key):
        kl, kr = jax.random.split(key)
        p_l = init_mano_params(kl, 'l')
        p_r = init_mano_params(kr, 'r')
        self.fused_params = build_fused_params(p_l, p_r)
        self._forward = jax.jit(mano_forward_batched)

    def __call__(self, outputs, meta_data=None, depth=None, focal_length=None):
        params_dict = outputs['params_dict']
        L, R = outputs['left_hand_num'], outputs['right_hand_num']
        hand_type = jnp.concatenate([jnp.zeros((L,)), jnp.ones((R,))]).astype(jnp.int32)
        outputs['output_hand_type'] = hand_type

        N = L + R
        verts, joints = self._forward(self.fused_params,
                                      params_dict['poses'][:N],
                                      params_dict['betas'][:N],
                                      hand_type)
        outputs['verts'] = verts
        outputs['j3d'] = joints

        # TODO(synk): vertices_kp3d_projection (depth / focal_length camera projection path)
        # is not implemented; the reference forward only enters it when depth & focal_length
        # are provided, which they are not here.
        return outputs


if __name__ == "__main__":
    key = jax.random.PRNGKey(0)
    k1, k2, k3 = jax.random.split(key, 3)

    L, R = 2, 2
    N = L + R
    poses = 0.1 * jax.random.normal(k1, (N, NPOSE), jnp.float32)
    betas = 0.1 * jax.random.normal(k2, (N, NBETAS), jnp.float32)

    wrapper = MANOWrapperPallas(k3)
    outputs = {
        'params_dict': {'poses': poses, 'betas': betas},
        'left_hand_num': L,
        'right_hand_num': R,
    }
    out = wrapper(outputs, meta_data={})

    verts = jax.block_until_ready(out['verts'])
    j3d = jax.block_until_ready(out['j3d'])
    hand_type = jax.block_until_ready(out['output_hand_type'])

    assert verts.shape == (N, V, 3)
    assert j3d.shape == (N, 21, 3)
    assert hand_type.shape == (N,) and hand_type.dtype == jnp.int32
    assert jnp.all(jnp.isfinite(verts)) and jnp.all(jnp.isfinite(j3d))
    print("KERNEL_OK")
</pallas_src>

<mosaic_0001>
module attributes {stable_mosaic.version = 11 : i64} {
  func.func @mano_fused_kernel(%arg0: memref<12x292xf32, #tpu.memory_space<vmem>>, %arg1: memref<292x2688xf32, #tpu.memory_space<vmem>>, %arg2: memref<4x12x32xf32, #tpu.memory_space<vmem>>, %arg3: memref<32x896xf32, #tpu.memory_space<vmem>>, %arg4: memref<12x896xf32, #tpu.memory_space<vmem>>) attributes {dimension_semantics = [], scalar_prefetch = 0 : i64, scratch_operands = 0 : i64, tpu.core_type = #tpu.core_type<tc>} {
    %c0 = arith.constant 0 : index
    %c0_0 = arith.constant 0 : index
    %0 = vector.load %arg0[%c0, %c0_0] : memref<12x292xf32, #tpu.memory_space<vmem>>, vector<12x292xf32>
    %c0_1 = arith.constant 0 : index
    %c0_2 = arith.constant 0 : index
    %1 = vector.load %arg1[%c0_1, %c0_2] : memref<292x2688xf32, #tpu.memory_space<vmem>>, vector<292x2688xf32>
    %cst = arith.constant dense<0.000000e+00> : vector<12x2688xf32>
    %2 = tpu.matmul %0, %1, %cst {dimension_numbers = #tpu.dot_dimension_numbers<[1], [0], [0], [1], [0, 0, 1, 1], [], []>} : vector<12x292xf32>, vector<292x2688xf32>, vector<12x2688xf32> -> vector<12x2688xf32>
    %c0_3 = arith.constant 0 : index
    %c0_4 = arith.constant 0 : index
    %3 = vector.load %arg3[%c0_3, %c0_4] : memref<32x896xf32, #tpu.memory_space<vmem>>, vector<32x896xf32>
    %c0_5 = arith.constant 0 : index
    %c0_6 = arith.constant 0 : index
    %c0_7 = arith.constant 0 : index
    %4 = vector.load %arg2[%c0_5, %c0_6, %c0_7] : memref<4x12x32xf32, #tpu.memory_space<vmem>>, vector<1x12x32xf32>
    %5 = vector.shape_cast %4 : vector<1x12x32xf32> to vector<12x32xf32>
    %cst_8 = arith.constant dense<0.000000e+00> : vector<12x896xf32>
    %6 = tpu.matmul %5, %3, %cst_8 {dimension_numbers = #tpu.dot_dimension_numbers<[1], [0], [0], [1], [0, 0, 1, 1], [], []>} : vector<12x32xf32>, vector<32x896xf32>, vector<12x896xf32> -> vector<12x896xf32>
    %c1 = arith.constant 1 : index
    %c0_9 = arith.constant 0 : index
    %c0_10 = arith.constant 0 : index
    %7 = vector.load %arg2[%c1, %c0_9, %c0_10] : memref<4x12x32xf32, #tpu.memory_space<vmem>>, vector<1x12x32xf32>
    %8 = vector.shape_cast %7 : vector<1x12x32xf32> to vector<12x32xf32>
    %cst_11 = arith.constant dense<0.000000e+00> : vector<12x896xf32>
    %9 = tpu.matmul %8, %3, %cst_11 {dimension_numbers = #tpu.dot_dimension_numbers<[1], [0], [0], [1], [0, 0, 1, 1], [], []>} : vector<12x32xf32>, vector<32x896xf32>, vector<12x896xf32> -> vector<12x896xf32>
    %c2 = arith.constant 2 : index
    %c0_12 = arith.constant 0 : index
    %c0_13 = arith.constant 0 : index
    %10 = vector.load %arg2[%c2, %c0_12, %c0_13] : memref<4x12x32xf32, #tpu.memory_space<vmem>>, vector<1x12x32xf32>
    %11 = vector.shape_cast %10 : vector<1x12x32xf32> to vector<12x32xf32>
    %cst_14 = arith.constant dense<0.000000e+00> : vector<12x896xf32>
    %12 = tpu.matmul %11, %3, %cst_14 {dimension_numbers = #tpu.dot_dimension_numbers<[1], [0], [0], [1], [0, 0, 1, 1], [], []>} : vector<12x32xf32>, vector<32x896xf32>, vector<12x896xf32> -> vector<12x896xf32>
    %c3 = arith.constant 3 : index
    %c0_15 = arith.constant 0 : index
    %c0_16 = arith.constant 0 : index
    %13 = vector.load %arg2[%c3, %c0_15, %c0_16] : memref<4x12x32xf32, #tpu.memory_space<vmem>>, vector<1x12x32xf32>
    %14 = vector.shape_cast %13 : vector<1x12x32xf32> to vector<12x32xf32>
    %cst_17 = arith.constant dense<0.000000e+00> : vector<12x896xf32>
    %15 = tpu.matmul %14, %3, %cst_17 {dimension_numbers = #tpu.dot_dimension_numbers<[1], [0], [0], [1], [0, 0, 1, 1], [], []>} : vector<12x32xf32>, vector<32x896xf32>, vector<12x896xf32> -> vector<12x896xf32>
    %16 = vector.extract_strided_slice %2 {offsets = [0, 0], sizes = [12, 896], strides = [1, 1]} : vector<12x2688xf32> to vector<12x896xf32>
    %17 = arith.mulf %6, %16 : vector<12x896xf32>
    %18 = arith.addf %15, %17 : vector<12x896xf32>
    %19 = vector.extract_strided_slice %2 {offsets = [0, 896], sizes = [12, 896], strides = [1, 1]} : vector<12x2688xf32> to vector<12x896xf32>
    %20 = arith.mulf %9, %19 : vector<12x896xf32>
    %21 = arith.addf %18, %20 : vector<12x896xf32>
    %22 = vector.extract_strided_slice %2 {offsets = [0, 1792], sizes = [12, 896], strides = [1, 1]} : vector<12x2688xf32> to vector<12x896xf32>
    %23 = arith.mulf %12, %22 : vector<12x896xf32>
    %24 = arith.addf %21, %23 : vector<12x896xf32>
    %c0_18 = arith.constant 0 : index
    %c0_19 = arith.constant 0 : index
    %25 = vector.load %arg4[%c0_18, %c0_19] : memref<12x896xf32, #tpu.memory_space<vmem>>, vector<12x896xf32>
    tpu.vector_store %arg4[%c0_18, %c0_19], %24 {strides = array<i32>} : memref<12x896xf32, #tpu.memory_space<vmem>>, vector<12x896xf32>,
    return
  }
}

</mosaic_0001>

<bundles_post_ra>
// kernel: mano_forward_batched.1
= control target key start
LH: loop header
LB: loop body
LE: loop exit
PB: predicated region body
PF: predicated region fallthrough
CT: control target
= control target key end

     0   :  { %vm807_vm0 = vcmask 1043456   ;;  %v4157_v3 = vmov 0.0   ;;  %vm800_vm1 = vcmask 293888   ;;  %vm2591_vm2 = vcmask 261120   ;;  %s7403_s1 = inlined_call_operand.vmem [shape: f32[292,2688], index: 1, kind: input, shape index: {}]   ;;  %s7404_s0 = inlined_call_operand.vmem [shape: f32[12,292], index: 0, kind: input, shape index: {}]   ;;  %s7405_s3 = inlined_call_operand.vmem [shape: f32[32,896], index: 3, kind: input, shape index: {}]   ;;  %s7406_s2 = inlined_call_operand.vmem [shape: f32[4,12,32], index: 2, kind: input, shape index: {}]   ;;  %s7407_s4 = inlined_call_operand.vmem [shape: f32[12,896], index: 4, kind: output, shape index: {}]  }
   0x1   :  { %v339_v0 = vld [vmem:[%s7403_s1 + $0x9e0] sm:$0xff]  ;;  %v780_v1 = vld [vmem:[%s7403_s1 + $0x17a8] sm:$0xf]  ;;  %v338_v2 = vld [vmem:[%s7403_s1 + $0x9d8] sm:$0xff]  ;;  %1012 = vmatprep.mubr.f32.mxu1 %v4157_v3 }
   0x2   :  { %871 = vmatprep.subr.mxu0 %v339_v0  ;;  %3937 = vmatprep.subr.msk.mxu1 %vm807_vm0, %v780_v1  ;;  %v779_v4 = vld [vmem:[%s7403_s1 + $0x17a0] sm:$0xf]  ;;  %v318_v5 = vld [vmem:[%s7403_s1 + $0x938] sm:$0xff]  ;;  %v317_v7 = vld [vmem:[%s7403_s1 + $0x930] sm:$0xff] }
   0x3   :  { %v759_v6 = vld [vmem:[%s7403_s1 + $0x1700] sm:$0xff]  ;;  %872 = vmatpush1.msra.mxu0 %v338_v2  ;;  %3938 = vmatpush1.msk.msra.mxu1 %vm807_vm0, %v779_v4  ;;  %v758_v8 = vld [vmem:[%s7403_s1 + $0x16f8] sm:$0xff]  ;;  %v297_v9 = vld [vmem:[%s7403_s1 + $0x890] sm:$0xff] }
   0x4   :  { %873 = vmatprep.subr.mxu0 %v318_v5  ;;  %972 = vmatprep.subr.mxu1 %v759_v6  ;;  %v738_v10 = vld [vmem:[%s7403_s1 + $0x1658] sm:$0xff]  ;;  %v296_v11 = vld [vmem:[%s7403_s1 + $0x888] sm:$0xff]  ;;  %v737_v12 = vld [vmem:[%s7403_s1 + $0x1650] sm:$0xff] }
   0x5   :  { %874 = vmatpush1.msra.mxu0 %v317_v7  ;;  %973 = vmatpush1.msra.mxu1 %v758_v8  ;;  %v276_v13 = vld [vmem:[%s7403_s1 + $0x7e8] sm:$0xff]  ;;  %v717_v14 = vld [vmem:[%s7403_s1 + $0x15b0] sm:$0xff]  ;;  %v275_v15 = vld [vmem:[%s7403_s1 + $0x7e0] sm:$0xff] }
   0x6   :  { %875 = vmatprep.subr.mxu0 %v297_v9  ;;  %974 = vmatprep.subr.mxu1 %v738_v10  ;;  %v716_v16 = vld [vmem:[%s7403_s1 + $0x15a8] sm:$0xff]  ;;  %v255_v17 = vld [vmem:[%s7403_s1 + $0x740] sm:$0xff]  ;;  %v254_v19 = vld [vmem:[%s7403_s1 + $0x738] sm:$0xff] }
   0x7   :  { %876 = vmatpush1.msra.mxu0 %v296_v11  ;;  %975 = vmatpush1.msra.mxu1 %v737_v12  ;;  %v696_v18 = vld [vmem:[%s7403_s1 + $0x1508] sm:$0xff]  ;;  %v695_v20 = vld [vmem:[%s7403_s1 + $0x1500] sm:$0xff]  ;;  %v234_v21 = vld [vmem:[%s7403_s1 + $0x698] sm:$0xff] }
   0x8   :  { %877 = vmatprep.subr.mxu0 %v276_v13  ;;  %976 = vmatprep.subr.mxu1 %v717_v14  ;;  %v341_v22 = vld [vmem:[%s7403_s1 + $0x9f0] sm:$0xff]  ;;  %v340_v25 = vld [vmem:[%s7403_s1 + $0x9e8] sm:$0xff]  ;;  %v319_v29 = vld [vmem:[%s7403_s1 + $0x940] sm:$0xff] }
   0x9   :  { %878 = vmatpush1.msra.mxu0 %v275_v15  ;;  %977 = vmatpush1.msra.mxu1 %v716_v16  ;;  %v233_v23 = vld [vmem:[%s7403_s1 + $0x690] sm:$0xff]  ;;  %v320_v27 = vld [vmem:[%s7403_s1 + $0x948] sm:$0xff]  ;;  %v299_v31 = vld [vmem:[%s7403_s1 + $0x8a0] sm:$0xff] }
   0xa   :  { %879 = vmatprep.subr.mxu0 %v255_v17  ;;  %978 = vmatprep.subr.mxu1 %v696_v18  ;;  %v4258_v24 = vld [vmem:[%s7404_s0 + $0x10] sm:$0xff]  ;;  %v212_v28 = vld [vmem:[%s7403_s1 + $0x5e8] sm:$0xff]  ;;  %v191_v32 = vld [vmem:[%s7403_s1 + $0x540] sm:$0xff] }
   0xb   :  { %880 = vmatpush1.msra.mxu0 %v254_v19  ;;  %979 = vmatpush1.msra.mxu1 %v695_v20  ;;  %v213_v26 = vld [vmem:[%s7403_s1 + $0x5f0] sm:$0xff]  ;;  %v192_v30 = vld [vmem:[%s7403_s1 + $0x548] sm:$0xff]  ;;  %v298_v33 = vld [vmem:[%s7403_s1 + $0x898] sm:$0xff] }
   0xc   :  { %881 = vmatprep.subr.mxu0 %v234_v21  ;;  %1025 = vmatprep.subr.mxu1 %v341_v22  ;;  %v171_v34 = vld [vmem:[%s7403_s1 + $0x4a0] sm:$0xff]  ;;  %v278_v35 = vld [vmem:[%s7403_s1 + $0x7f8] sm:$0xff]  ;;  %v277_v37 = vld [vmem:[%s7403_s1 + $0x7f0] sm:$0xff] }
   0xd   :  { %882 = vmatpush1.msra.mxu0 %v233_v23  ;;  %3939 = vmatmul.mubr.msk.f32.vlgmr.msra.gmra.mxu1 %vm800_vm1, %v4258_v24  ;;  %v170_v36 = vld [vmem:[%s7403_s1 + $0x498] sm:$0xff]  ;;  %v257_v39 = vld [vmem:[%s7403_s1 + $0x750] sm:$0xff]  ;;  %v256_v41 = vld [vmem:[%s7403_s1 + $0x748] sm:$0xff] }
   0xe   :  { %1026 = vmatpush1.msra.mxu1 %v340_v25  ;;  %883 = vmatprep.subr.mxu0 %v213_v26  ;;  %v150_v38 = vld [vmem:[%s7403_s1 + $0x3f8] sm:$0xff]  ;;  %v149_v40 = vld [vmem:[%s7403_s1 + $0x3f0] sm:$0xff]  ;;  %v236_v43 = vld [vmem:[%s7403_s1 + $0x6a8] sm:$0xff] }
   0xf   :  { %1027 = vmatprep.subr.mxu1 %v320_v27  ;;  %884 = vmatpush1.msra.mxu0 %v212_v28  ;;  %v129_v42 = vld [vmem:[%s7403_s1 + $0x350] sm:$0xff]  ;;  %v128_v44 = vld [vmem:[%s7403_s1 + $0x348] sm:$0xff]  ;;  %v235_v45 = vld [vmem:[%s7403_s1 + $0x6a0] sm:$0xff] }
  0x10   :  { %1028 = vmatpush1.msra.mxu1 %v319_v29  ;;  %885 = vmatprep.subr.mxu0 %v192_v30  ;;  %v108_v46 = vld [vmem:[%s7403_s1 + $0x2a8] sm:$0xff]  ;;  %v215_v47 = vld [vmem:[%s7403_s1 + $0x600] sm:$0xff]  ;;  %v214_v49 = vld [vmem:[%s7403_s1 + $0x5f8] sm:$0xff] }
  0x11   :  { %1029 = vmatprep.subr.mxu1 %v299_v31  ;;  %886 = vmatpush1.msra.mxu0 %v191_v32  ;;  %v107_v48 = vld [vmem:[%s7403_s1 + $0x2a0] sm:$0xff]  ;;  %v194_v51 = vld [vmem:[%s7403_s1 + $0x558] sm:$0xff]  ;;  %v193_v53 = vld [vmem:[%s7403_s1 + $0x550] sm:$0xff] }
  0x12   :  { %1030 = vmatpush1.msra.mxu1 %v298_v33  ;;  %887 = vmatprep.subr.mxu0 %v171_v34  ;;  %v87_v50 = vld [vmem:[%s7403_s1 + $0x200] sm:$0xff]  ;;  %v86_v52 = vld [vmem:[%s7403_s1 + $0x1f8] sm:$0xff]  ;;  %v173_v55 = vld [vmem:[%s7403_s1 + $0x4b0] sm:$0xff] }
  0x13   :  { %1031 = vmatprep.subr.mxu1 %v278_v35  ;;  %888 = vmatpush1.msra.mxu0 %v170_v36  ;;  %v66_v54 = vld [vmem:[%s7403_s1 + $0x158] sm:$0xff]  ;;  %v65_v56 = vld [vmem:[%s7403_s1 + $0x150] sm:$0xff]  ;;  %v172_v57 = vld [vmem:[%s7403_s1 + $0x4a8] sm:$0xff] }
  0x14   :  { %1032 = vmatpush1.msra.mxu1 %v277_v37  ;;  %889 = vmatprep.subr.mxu0 %v150_v38  ;;  %v45_v58 = vld [vmem:[%s7403_s1 + $0xb0] sm:$0xff]  ;;  %v152_v59 = vld [vmem:[%s7403_s1 + $0x408] sm:$0xff]  ;;  %v151_v61 = vld [vmem:[%s7403_s1 + $0x400] sm:$0xff] }
  0x15   :  { %1033 = vmatprep.subr.mxu1 %v257_v39  ;;  %890 = vmatpush1.msra.mxu0 %v149_v40  ;;  %v44_v60 = vld [vmem:[%s7403_s1 + $0xa8] sm:$0xff]  ;;  %v131_v63 = vld [vmem:[%s7403_s1 + $0x360] sm:$0xff]  ;;  %v130_v1 = vld [vmem:[%s7403_s1 + $0x358] sm:$0xff] }
  0x16   :  { %1034 = vmatpush1.msra.mxu1 %v256_v41  ;;  %891 = vmatprep.subr.mxu0 %v129_v42  ;;  %v24_v62 = vld [vmem:[%s7403_s1 + $0x8] sm:$0xff]  ;;  %v23_v0 = vld [vmem:[%s7403_s1] sm:$0xff]  ;;  %v110_v4 = vld [vmem:[%s7403_s1 + $0x2b8] sm:$0xff] }
  0x17   :  { %1035 = vmatprep.subr.mxu1 %v236_v43  ;;  %892 = vmatpush1.msra.mxu0 %v128_v44  ;;  %v675_v2 = vld [vmem:[%s7403_s1 + $0x1460] sm:$0xff]  ;;  %v674_v5 = vld [vmem:[%s7403_s1 + $0x1458] sm:$0xff]  ;;  %v109_v6 = vld [vmem:[%s7403_s1 + $0x2b0] sm:$0xff] }
  0x18   :  { %1036 = vmatpush1.msra.mxu1 %v235_v45  ;;  %893 = vmatprep.subr.mxu0 %v108_v46  ;;  %v654_v7 = vld [vmem:[%s7403_s1 + $0x13b8] sm:$0xff]  ;;  %v89_v8 = vld [vmem:[%s7403_s1 + $0x210] sm:$0xff]  ;;  %v88_v10 = vld [vmem:[%s7403_s1 + $0x208] sm:$0xff] }
  0x19   :  { %1037 = vmatprep.subr.mxu1 %v215_v47  ;;  %894 = vmatpush1.msra.mxu0 %v107_v48  ;;  %v653_v9 = vld [vmem:[%s7403_s1 + $0x13b0] sm:$0xff]  ;;  %v68_v12 = vld [vmem:[%s7403_s1 + $0x168] sm:$0xff]  ;;  %v67_v14 = vld [vmem:[%s7403_s1 + $0x160] sm:$0xff] }
  0x1a   :  { %1038 = vmatpush1.msra.mxu1 %v214_v49  ;;  %895 = vmatprep.subr.mxu0 %v87_v50  ;;  %v633_v11 = vld [vmem:[%s7403_s1 + $0x1310] sm:$0xff]  ;;  %v632_v13 = vld [vmem:[%s7403_s1 + $0x1308] sm:$0xff]  ;;  %v47_v16 = vld [vmem:[%s7403_s1 + $0xc0] sm:$0xff] }
  0x1b   :  { %1039 = vmatprep.subr.mxu1 %v194_v51  ;;  %896 = vmatpush1.msra.mxu0 %v86_v52  ;;  %v612_v15 = vld [vmem:[%s7403_s1 + $0x1268] sm:$0xff]  ;;  %v611_v17 = vld [vmem:[%s7403_s1 + $0x1260] sm:$0xff]  ;;  %v46_v18 = vld [vmem:[%s7403_s1 + $0xb8] sm:$0xff] }
  0x1c   :  { %1040 = vmatpush1.msra.mxu1 %v193_v53  ;;  %897 = vmatprep.subr.mxu0 %v66_v54  ;;  %v591_v19 = vld [vmem:[%s7403_s1 + $0x11c0] sm:$0xff]  ;;  %v26_v20 = vld [vmem:[%s7403_s1 + $0x18] sm:$0xff]  ;;  %v25_v22 = vld [vmem:[%s7403_s1 + $0x10] sm:$0xff] }
  0x1d   :  { %1041 = vmatprep.subr.mxu1 %v173_v55  ;;  %898 = vmatpush1.msra.mxu0 %v65_v56  ;;  %v590_v21 = vld [vmem:[%s7403_s1 + $0x11b8] sm:$0xff]  ;;  %v677_v25 = vld [vmem:[%s7403_s1 + $0x1470] sm:$0xff]  ;;  %v676_v27 = vld [vmem:[%s7403_s1 + $0x1468] sm:$0xff] }
  0x1e   :  { %1042 = vmatpush1.msra.mxu1 %v172_v57  ;;  %899 = vmatprep.subr.mxu0 %v45_v58  ;;  %v570_v23 = vld [vmem:[%s7403_s1 + $0x1118] sm:$0xff]  ;;  %v569_v26 = vld [vmem:[%s7403_s1 + $0x1110] sm:$0xff]  ;;  %v656_v29 = vld [vmem:[%s7403_s1 + $0x13c8] sm:$0xff] }
  0x1f   :  { %1043 = vmatprep.subr.mxu1 %v152_v59  ;;  %900 = vmatpush1.msra.mxu0 %v44_v60  ;;  %v549_v28 = vld [vmem:[%s7403_s1 + $0x1070] sm:$0xff]  ;;  %v548_v30 = vld [vmem:[%s7403_s1 + $0x1068] sm:$0xff]  ;;  %v655_v31 = vld [vmem:[%s7403_s1 + $0x13c0] sm:$0xff] }
  0x20   :  { %1044 = vmatpush1.msra.mxu1 %v151_v61  ;;  %901 = vmatprep.subr.mxu0 %v24_v62  ;;  %v528_v32 = vld [vmem:[%s7403_s1 + $0xfc8] sm:$0xff]  ;;  %v635_v33 = vld [vmem:[%s7403_s1 + $0x1320] sm:$0xff]  ;;  %v634_v35 = vld [vmem:[%s7403_s1 + $0x1318] sm:$0xff] }
  0x21   :  { %1045 = vmatprep.subr.mxu1 %v131_v63  ;;  %902 = vmatpush1.msra.mxu0 %v23_v0  ;;  %v527_v34 = vld [vmem:[%s7403_s1 + $0xfc0] sm:$0xff]  ;;  %v614_v37 = vld [vmem:[%s7403_s1 + $0x1278] sm:$0xff]  ;;  %v613_v39 = vld [vmem:[%s7403_s1 + $0x1270] sm:$0xff] }
  0x22   :  { %1046 = vmatpush1.msra.mxu1 %v130_v1  ;;  %903 = vmatprep.subr.mxu0 %v675_v2  ;;  %v507_v36 = vld [vmem:[%s7403_s1 + $0xf20] sm:$0xff]  ;;  %v506_v38 = vld [vmem:[%s7403_s1 + $0xf18] sm:$0xff]  ;;  %v593_v41 = vld [vmem:[%s7403_s1 + $0x11d0] sm:$0xff] }
  0x23   :  { %1047 = vmatprep.subr.mxu1 %v110_v4  ;;  %904 = vmatpush2.msra.mxu0 %v674_v5  ;;  %v486_v40 = vld [vmem:[%s7403_s1 + $0xe78] sm:$0xff]  ;;  %v485_v42 = vld [vmem:[%s7403_s1 + $0xe70] sm:$0xff]  ;;  %v592_v43 = vld [vmem:[%s7403_s1 + $0x11c8] sm:$0xff] }
  0x24   :  { %1048 = vmatpush1.msra.mxu1 %v109_v6  ;;  %905 = vmatprep.subr.mxu0 %v654_v7  ;;  %v465_v44 = vld [vmem:[%s7403_s1 + $0xdd0] sm:$0xff]  ;;  %v572_v45 = vld [vmem:[%s7403_s1 + $0x1128] sm:$0xff]  ;;  %v571_v47 = vld [vmem:[%s7403_s1 + $0x1120] sm:$0xff] }
  0x25   :  { %1049 = vmatprep.subr.mxu1 %v89_v8  ;;  %906 = vmatpush2.msra.mxu0 %v653_v9  ;;  %v464_v46 = vld [vmem:[%s7403_s1 + $0xdc8] sm:$0xff]  ;;  %v551_v49 = vld [vmem:[%s7403_s1 + $0x1080] sm:$0xff]  ;;  %v550_v51 = vld [vmem:[%s7403_s1 + $0x1078] sm:$0xff] }
  0x26   :  { %1050 = vmatpush1.msra.mxu1 %v88_v10  ;;  %907 = vmatprep.subr.mxu0 %v633_v11  ;;  %v444_v48 = vld [vmem:[%s7403_s1 + $0xd28] sm:$0xff]  ;;  %v443_v50 = vld [vmem:[%s7403_s1 + $0xd20] sm:$0xff]  ;;  %v530_v53 = vld [vmem:[%s7403_s1 + $0xfd8] sm:$0xff] }
  0x27   :  { %1051 = vmatprep.subr.mxu1 %v68_v12  ;;  %908 = vmatpush2.msra.mxu0 %v632_v13  ;;  %v423_v52 = vld [vmem:[%s7403_s1 + $0xc80] sm:$0xff]  ;;  %v422_v54 = vld [vmem:[%s7403_s1 + $0xc78] sm:$0xff]  ;;  %v529_v55 = vld [vmem:[%s7403_s1 + $0xfd0] sm:$0xff] }
  0x28   :  { %1052 = vmatpush1.msra.mxu1 %v67_v14  ;;  %909 = vmatprep.subr.mxu0 %v612_v15  ;;  %v402_v56 = vld [vmem:[%s7403_s1 + $0xbd8] sm:$0xff]  ;;  %v509_v57 = vld [vmem:[%s7403_s1 + $0xf30] sm:$0xff]  ;;  %v508_v59 = vld [vmem:[%s7403_s1 + $0xf28] sm:$0xff] }
  0x29   :  { %1053 = vmatprep.subr.mxu1 %v47_v16  ;;  %910 = vmatpush2.msra.mxu0 %v611_v17  ;;  %v401_v58 = vld [vmem:[%s7403_s1 + $0xbd0] sm:$0xff]  ;;  %v488_v61 = vld [vmem:[%s7403_s1 + $0xe88] sm:$0xff]  ;;  %v487_v63 = vld [vmem:[%s7403_s1 + $0xe80] sm:$0xff] }
  0x2a   :  { %1054 = vmatpush1.msra.mxu1 %v46_v18  ;;  %911 = vmatprep.subr.mxu0 %v591_v19  ;;  %v381_v60 = vld [vmem:[%s7403_s1 + $0xb30] sm:$0xff]  ;;  %v380_v62 = vld [vmem:[%s7403_s1 + $0xb28] sm:$0xff]  ;;  %v467_v1 = vld [vmem:[%s7403_s1 + $0xde0] sm:$0xff] }
  0x2b   :  { %1055 = vmatprep.subr.mxu1 %v26_v20  ;;  %912 = vmatpush2.msra.mxu0 %v590_v21  ;;  %v360_v0 = vld [vmem:[%s7403_s1 + $0xa88] sm:$0xff]  ;;  %v359_v2 = vld [vmem:[%s7403_s1 + $0xa80] sm:$0xff]  ;;  %v466_v5 = vld [vmem:[%s7403_s1 + $0xdd8] sm:$0xff] }
  0x2c   :  { %1056 = vmatpush1.msra.mxu1 %v25_v22  ;;  %913 = vmatprep.subr.mxu0 %v570_v23  ;;  %v4577_v4 = vld [vmem:[%s7404_s0 + $0x8] sm:$0xff]  ;;  %v4585_v6 = vld [vmem:[%s7404_s0] sm:$0xff]  ;;  %v446_v7 = vld [vmem:[%s7403_s1 + $0xd38] sm:$0xff] }
  0x2d   :  { %1057 = vmatprep.subr.mxu1 %v677_v25  ;;  %914 = vmatpush2.msra.mxu0 %v569_v26  ;;  %v782_v8 = vld [vmem:[%s7403_s1 + $0x17b8] sm:$0xf]  ;;  %v445_v9 = vld [vmem:[%s7403_s1 + $0xd30] sm:$0xff]  ;;  %v424_v13 = vld [vmem:[%s7403_s1 + $0xc88] sm:$0xff] }
  0x2e   :  { %1058 = vmatpush2.msra.mxu1 %v676_v27  ;;  %915 = vmatprep.subr.mxu0 %v549_v28  ;;  %v781_v10 = vld [vmem:[%s7403_s1 + $0x17b0] sm:$0xf]  ;;  %v760_v14 = vld [vmem:[%s7403_s1 + $0x1708] sm:$0xff]  ;;  %v4617_v15 = vld [vmem:[%s7404_s0 + $0x20] sm:$0xf] }
  0x2f   :  { %1059 = vmatprep.subr.mxu1 %v656_v29  ;;  %916 = vmatpush2.msra.mxu0 %v548_v30  ;;  %v425_v11 = vld [vmem:[%s7403_s1 + $0xc90] sm:$0xff]  ;;  %v404_v16 = vld [vmem:[%s7403_s1 + $0xbe8] sm:$0xff]  ;;  %v4629_v18 = vld [vmem:[%s7404_s0 + $0x18] sm:$0xf] }
  0x30   :  { %1060 = vmatpush2.msra.mxu1 %v655_v31  ;;  %917 = vmatprep.subr.mxu0 %v528_v32  ;;  %v761_v12 = vld [vmem:[%s7403_s1 + $0x1710] sm:$0xff]  ;;  %v740_v17 = vld [vmem:[%s7403_s1 + $0x1668] sm:$0xff]  ;;  %v739_v20 = vld [vmem:[%s7403_s1 + $0x1660] sm:$0xff] }
  0x31   :  { %1061 = vmatprep.subr.mxu1 %v635_v33  ;;  %918 = vmatpush2.msra.mxu0 %v527_v34  ;;  %v4635_v19 = vld [vmem:[%s7404_s0 + $0x28] sm:$0xf]  ;;  %v403_v21 = vld [vmem:[%s7403_s1 + $0xbe0] sm:$0xff]  ;;  %v718_v25 = vld [vmem:[%s7403_s1 + $0x15b8] sm:$0xff] }
  0x32   :  { %1062 = vmatpush2.msra.mxu1 %v634_v35  ;;  %919 = vmatprep.subr.mxu0 %v507_v36  ;;  %v719_v22 = vld [vmem:[%s7403_s1 + $0x15c0] sm:$0xff]  ;;  %v382_v26 = vld [vmem:[%s7403_s1 + $0xb38] sm:$0xff]  ;;  %v361_v29 = vld [vmem:[%s7403_s1 + $0xa90] sm:$0xff] }
  0x33   :  { %1063 = vmatprep.subr.mxu1 %v614_v37  ;;  %920 = vmatpush2.msra.mxu0 %v506_v38  ;;  %v383_v23 = vld [vmem:[%s7403_s1 + $0xb40] sm:$0xff]  ;;  %v698_v27 = vld [vmem:[%s7403_s1 + $0x1518] sm:$0xff]  ;;  %v697_v30 = vld [vmem:[%s7403_s1 + $0x1510] sm:$0xff] }
  0x34   :  { %1064 = vmatpush2.msra.mxu1 %v613_v39  ;;  %921 = vmatprep.subr.mxu0 %v486_v40  ;;  %v362_v28 = vld [vmem:[%s7403_s1 + $0xa98] sm:$0xff]  ;;  %v343_v31 = vld [vmem:[%s7403_s1 + $0xa00] sm:$0xff]  ;;  %v784_v32 = vld [vmem:[%s7403_s1 + $0x17c8] sm:$0xf] }
  0x35   :  { %1065 = vmatprep.subr.mxu1 %v593_v41  ;;  %922 = vmatpush2.msra.mxu0 %v485_v42  ;;  %v342_v33 = vld [vmem:[%s7403_s1 + $0x9f8] sm:$0xff]  ;;  %v783_v34 = vld [vmem:[%s7403_s1 + $0x17c0] sm:$0xf]  ;;  %v321_v37 = vld [vmem:[%s7403_s1 + $0x950] sm:$0xff] }
  0x36   :  { %1066 = vmatpush2.msra.mxu1 %v592_v43  ;;  %923 = vmatprep.subr.mxu0 %v465_v44  ;;  %v322_v35 = vld [vmem:[%s7403_s1 + $0x958] sm:$0xff]  ;;  %v763_v36 = vld [vmem:[%s7403_s1 + $0x1720] sm:$0xff]  ;;  %v301_v39 = vld [vmem:[%s7403_s1 + $0x8b0] sm:$0xff] }
  0x37   :  { %1067 = vmatprep.subr.mxu1 %v572_v45  ;;  %924 = vmatpush2.msra.mxu0 %v464_v46  ;;  %v762_v38 = vld [vmem:[%s7403_s1 + $0x1718] sm:$0xff]  ;;  %v300_v41 = vld [vmem:[%s7403_s1 + $0x8a8] sm:$0xff]  ;;  %v741_v42 = vld [vmem:[%s7403_s1 + $0x1670] sm:$0xff] }
  0x38   :  { %1068 = vmatpush2.msra.mxu1 %v571_v47  ;;  %925 = vmatprep.subr.mxu0 %v444_v48  ;;  %v742_v40 = vld [vmem:[%s7403_s1 + $0x1678] sm:$0xff]  ;;  %v280_v43 = vld [vmem:[%s7403_s1 + $0x808] sm:$0xff]  ;;  %v721_v44 = vld [vmem:[%s7403_s1 + $0x15d0] sm:$0xff] }
  0x39   :  { %1069 = vmatprep.subr.mxu1 %v551_v49  ;;  %926 = vmatpush2.msra.mxu0 %v443_v50  ;;  %v720_v45 = vld [vmem:[%s7403_s1 + $0x15c8] sm:$0xff]  ;;  %v279_v46 = vld [vmem:[%s7403_s1 + $0x800] sm:$0xff]  ;;  %v258_v50 = vld [vmem:[%s7403_s1 + $0x758] sm:$0xff] }
  0x3a   :  { %1070 = vmatpush2.msra.mxu1 %v550_v51  ;;  %927 = vmatprep.subr.mxu0 %v423_v52  ;;  %v700_v47 = vld [vmem:[%s7403_s1 + $0x1528] sm:$0xff]  ;;  %v259_v48 = vld [vmem:[%s7403_s1 + $0x760] sm:$0xff]  ;;  %v238_v51 = vld [vmem:[%s7403_s1 + $0x6b8] sm:$0xff] }
  0x3b   :  { %1071 = vmatprep.subr.mxu1 %v530_v53  ;;  %928 = vmatpush2.msra.mxu0 %v422_v54  ;;  %v699_v49 = vld [vmem:[%s7403_s1 + $0x1520] sm:$0xff]  ;;  %v345_v52 = vld [vmem:[%s7403_s1 + $0xa10] sm:$0xff]  ;;  %v344_v54 = vld [vmem:[%s7403_s1 + $0xa08] sm:$0xff] }
  0x3c   :  { %1072 = vmatpush2.msra.mxu1 %v529_v55  ;;  %929 = vmatprep.subr.mxu0 %v402_v56  ;;  %v237_v53 = vld [vmem:[%s7403_s1 + $0x6b0] sm:$0xff]  ;;  %v324_v56 = vld [vmem:[%s7403_s1 + $0x968] sm:$0xff] }
  0x3d   :  { %1073 = vmatprep.subr.mxu1 %v509_v57  ;;  %930 = vmatpush2.msra.mxu0 %v401_v58  ;;  %v217_v55 = vld [vmem:[%s7403_s1 + $0x610] sm:$0xff]  ;;  %v216_v57 = vld [vmem:[%s7403_s1 + $0x608] sm:$0xff]  ;;  %v323_v58 = vld [vmem:[%s7403_s1 + $0x960] sm:$0xff] }
  0x3e   :  { %1074 = vmatpush2.msra.mxu1 %v508_v59  ;;  %931 = vmatprep.subr.mxu0 %v381_v60  ;;  %v196_v59 = vld [vmem:[%s7403_s1 + $0x568] sm:$0xff]  ;;  %v303_v60 = vld [vmem:[%s7403_s1 + $0x8c0] sm:$0xff] }
  0x3f   :  { %1075 = vmatprep.subr.mxu1 %v488_v61  ;;  %932 = vmatpush2.msra.mxu0 %v380_v62  ;;  %v195_v61 = vld [vmem:[%s7403_s1 + $0x560] sm:$0xff] }
  0x40   :  { %1076 = vmatpush2.msra.mxu1 %v487_v63  ;;  %933 = vmatprep.subr.mxu0 %v360_v0  ;;  %v175_v62 = vld [vmem:[%s7403_s1 + $0x4c0] sm:$0xff]  ;;  %v282_v63 = vld [vmem:[%s7403_s1 + $0x818] sm:$0xff] }
  0x41   :  { %1077 = vmatprep.subr.mxu1 %v467_v1  ;;  %934 = vmatpush2.msra.mxu0 %v359_v2  ;;  %v174_v0 = vld [vmem:[%s7403_s1 + $0x4b8] sm:$0xff]  ;;  %v281_v1 = vld [vmem:[%s7403_s1 + $0x810] sm:$0xff] }
  0x42   :  { %935 = vmatprep.mubr.f32.mxu0 %v4577_v4  ;;  %1078 = vmatpush2.msra.mxu1 %v466_v5  ;;  %v154_v2 = vld [vmem:[%s7403_s1 + $0x418] sm:$0xff]  ;;  %v261_v5 = vld [vmem:[%s7403_s1 + $0x770] sm:$0xff] }
  0x43   :  { %936 = vmatmul.mubr.f32.vlgmr.msra.gmra.mxu0 %v4585_v6  ;;  %1079 = vmatprep.subr.mxu1 %v446_v7  ;;  %v153_v7 = vld [vmem:[%s7403_s1 + $0x410] sm:$0xff] }
  0x44   :  { %3941 = vmatprep.subr.msk.mxu0 %vm807_vm0, %v782_v8  ;;  %1080 = vmatpush2.msra.mxu1 %v445_v9  ;;  %v260_v8 = vld [vmem:[%s7403_s1 + $0x768] sm:$0xff]  ;;  %v133_v9 = vld [vmem:[%s7403_s1 + $0x370] sm:$0xff] }
  0x45   :  { %3942 = vmatpush1.msk.msra.mxu0 %vm807_vm0, %v781_v10  ;;  %1081 = vmatprep.subr.mxu1 %v425_v11  ;;  %v240_v10 = vld [vmem:[%s7403_s1 + $0x6c8] sm:$0xff] }
  0x46   :  { %1126 = vmatprep.subr.mxu0 %v761_v12  ;;  %1082 = vmatpush2.msra.mxu1 %v424_v13  ;;  %v132_v11 = vld [vmem:[%s7403_s1 + $0x368] sm:$0xff]  ;;  %v239_v12 = vld [vmem:[%s7403_s1 + $0x6c0] sm:$0xff] }
  0x47   :  { %1127 = vmatpush1.msra.mxu0 %v760_v14  ;;  %941 = vmatprep.mubr.f32.mxu0 %v4617_v15  ;;  %v112_v13 = vld [vmem:[%s7403_s1 + $0x2c8] sm:$0xff]  ;;  %v219_v14 = vld [vmem:[%s7403_s1 + $0x620] sm:$0xff] }
  0x48   :  { %1018 = vmatprep.mubr.f32.mxu1 %v4157_v3  ;;  %1083 = vmatprep.subr.mxu1 %v404_v16  ;;  %v111_v16 = vld [vmem:[%s7403_s1 + $0x2c0] sm:$0xff] }
  0x49   :  { %1128 = vmatprep.subr.mxu0 %v740_v17  ;;  %942 = vmatmul.mubr.f32.gmra.mxu0 %v4629_v18  ;;  %v218_v17 = vld [vmem:[%s7403_s1 + $0x618] sm:$0xff] }
  0x4a   :  { %3940 = vmatmul.mubr.msk.f32.gmra.mxu1 %vm800_vm1, %v4635_v19  ;;  %1129 = vmatpush1.msra.mxu0 %v739_v20  ;;  %v91_v20 = vld [vmem:[%s7403_s1 + $0x220] sm:$0xff] }
  0x4b   :  { %1084 = vmatpush2.msra.mxu1 %v403_v21  ;;  %1130 = vmatprep.subr.mxu0 %v719_v22  ;;  %v198_v21 = vld [vmem:[%s7403_s1 + $0x578] sm:$0xff] }
  0x4c   :  { %1085 = vmatprep.subr.mxu1 %v383_v23  ;;  %1131 = vmatpush1.msra.mxu0 %v718_v25  ;;  %v90_v22 = vld [vmem:[%s7403_s1 + $0x218] sm:$0xff]  ;;  %v197_v23 = vld [vmem:[%s7403_s1 + $0x570] sm:$0xff] }
  0x4d   :  { %1086 = vmatpush2.msra.mxu1 %v382_v26  ;;  %1132 = vmatprep.subr.mxu0 %v698_v27  ;;  %v70_v25 = vld [vmem:[%s7403_s1 + $0x178] sm:$0xff]  ;;  %v177_v26 = vld [vmem:[%s7403_s1 + $0x4d0] sm:$0xff] }
  0x4e   :  { %1087 = vmatprep.subr.mxu1 %v362_v28  ;;  %1089 = vmatprep.mubr.f32.mxu1 %v4577_v4  ;;  %v69_v27 = vld [vmem:[%s7403_s1 + $0x170] sm:$0xff]  ;;  %v176_v28 = vld [vmem:[%s7403_s1 + $0x4c8] sm:$0xff] }
  0x4f   :  { %1088 = vmatpush2.msra.mxu1 %v361_v29  ;;  %1133 = vmatpush1.msra.mxu0 %v697_v30  ;;  %v49_v29 = vld [vmem:[%s7403_s1 + $0xd0] sm:$0xff]  ;;  %v156_v30 = vld [vmem:[%s7403_s1 + $0x428] sm:$0xff] }
  0x50   :  { %1166 = vmatprep.mubr.f32.mxu0 %v4157_v3  ;;  %1090 = vmatmul.mubr.f32.vlgmr.msra.gmra.mxu1 %v4585_v6 }
  0x51   :  { %3943 = vmatmul.mubr.msk.f32.vlgmr.msra.gmra.mxu0 %vm800_vm1, %v4258_v24  ;;  %1179 = vmatprep.subr.mxu0 %v343_v31  ;;  %v48_v31 = vld [vmem:[%s7403_s1 + $0xc8] sm:$0xff] }
  0x52   :  { %3945 = vmatprep.subr.msk.mxu1 %vm807_vm0, %v784_v32  ;;  %1180 = vmatpush1.msra.mxu0 %v342_v33  ;;  %v155_v32 = vld [vmem:[%s7403_s1 + $0x420] sm:$0xff]  ;;  %v28_v33 = vld [vmem:[%s7403_s1 + $0x28] sm:$0xff] }
  0x53   :  { %3946 = vmatpush1.msk.msra.mxu1 %vm807_vm0, %v783_v34  ;;  %1181 = vmatprep.subr.mxu0 %v322_v35  ;;  %v135_v34 = vld [vmem:[%s7403_s1 + $0x380] sm:$0xff] }
  0x54   :  { %1280 = vmatprep.subr.mxu1 %v763_v36  ;;  %1182 = vmatpush1.msra.mxu0 %v321_v37  ;;  %v27_v35 = vld [vmem:[%s7403_s1 + $0x20] sm:$0xff]  ;;  %v134_v36 = vld [vmem:[%s7403_s1 + $0x378] sm:$0xff] }
  0x55   :  { %1281 = vmatpush1.msra.mxu1 %v762_v38  ;;  %1183 = vmatprep.subr.mxu0 %v301_v39  ;;  %v679_v37 = vld [vmem:[%s7403_s1 + $0x1480] sm:$0xff]  ;;  %v114_v38 = vld [vmem:[%s7403_s1 + $0x2d8] sm:$0xff] }
  0x56   :  { %1282 = vmatprep.subr.mxu1 %v742_v40  ;;  %1184 = vmatpush1.msra.mxu0 %v300_v41  ;;  %v678_v39 = vld [vmem:[%s7403_s1 + $0x1478] sm:$0xff]  ;;  %v113_v40 = vld [vmem:[%s7403_s1 + $0x2d0] sm:$0xff] }
  0x57   :  { %1283 = vmatpush1.msra.mxu1 %v741_v42  ;;  %1095 = vmatprep.mubr.f32.mxu1 %v4617_v15  ;;  %v658_v41 = vld [vmem:[%s7403_s1 + $0x13d8] sm:$0xff]  ;;  %v93_v42 = vld [vmem:[%s7403_s1 + $0x230] sm:$0xff] }
  0x58   :  { %1172 = vmatprep.mubr.f32.mxu0 %v4157_v3  ;;  %1185 = vmatprep.subr.mxu0 %v280_v43  ;;  %v657_v43 = vld [vmem:[%s7403_s1 + $0x13d0] sm:$0xff] }
  0x59   :  { %1284 = vmatprep.subr.mxu1 %v721_v44  ;;  %1096 = vmatmul.mubr.f32.gmra.mxu1 %v4629_v18  ;;  %v92_v44 = vld [vmem:[%s7403_s1 + $0x228] sm:$0xff] }
  0x5a   :  { %3944 = vmatmul.mubr.msk.f32.gmra.mxu0 %vm800_vm1, %v4635_v19  ;;  %1285 = vmatpush1.msra.mxu1 %v720_v45  ;;  %v637_v45 = vld [vmem:[%s7403_s1 + $0x1330] sm:$0xff] }
  0x5b   :  { %1186 = vmatpush1.msra.mxu0 %v279_v46  ;;  %1286 = vmatprep.subr.mxu1 %v700_v47  ;;  %v72_v46 = vld [vmem:[%s7403_s1 + $0x188] sm:$0xff] }
  0x5c   :  { %1187 = vmatprep.subr.mxu0 %v259_v48  ;;  %1287 = vmatpush1.msra.mxu1 %v699_v49  ;;  %v636_v47 = vld [vmem:[%s7403_s1 + $0x1328] sm:$0xff]  ;;  %v71_v48 = vld [vmem:[%s7403_s1 + $0x180] sm:$0xff] }
  0x5d   :  { %1188 = vmatpush1.msra.mxu0 %v258_v50  ;;  %1320 = vmatprep.mubr.f32.mxu1 %v4157_v3  ;;  %v616_v49 = vld [vmem:[%s7403_s1 + $0x1288] sm:$0xff]  ;;  %v51_v50 = vld [vmem:[%s7403_s1 + $0xe0] sm:$0xff] }
  0x5e   :  { %1189 = vmatprep.subr.mxu0 %v238_v51  ;;  %1333 = vmatprep.subr.mxu1 %v345_v52  ;;  %v615_v51 = vld [vmem:[%s7403_s1 + $0x1280] sm:$0xff]  ;;  %v50_v52 = vld [vmem:[%s7403_s1 + $0xd8] sm:$0xff] }
  0x5f   :  { %1190 = vmatpush1.msra.mxu0 %v237_v53  ;;  %3947 = vmatmul.mubr.msk.f32.vlgmr.msra.gmra.mxu1 %vm800_vm1, %v4258_v24  ;;  %v302_v24 = vld [vmem:[%s7403_s1 + $0x8b8] sm:$0xff]  ;;  %v595_v53 = vld [vmem:[%s7403_s1 + $0x11e0] sm:$0xff] }
  0x60   :  { %1334 = vmatpush1.msra.mxu1 %v344_v54  ;;  %1191 = vmatprep.subr.mxu0 %v217_v55  ;;  %v30_v54 = vld [vmem:[%s7403_s1 + $0x38] sm:$0xff] }
  0x61   :  { %1335 = vmatprep.subr.mxu1 %v324_v56  ;;  %1192 = vmatpush1.msra.mxu0 %v216_v57  ;;  %v594_v55 = vld [vmem:[%s7403_s1 + $0x11d8] sm:$0xff]  ;;  %v29_v56 = vld [vmem:[%s7403_s1 + $0x30] sm:$0xff] }
  0x62   :  { %1336 = vmatpush1.msra.mxu1 %v323_v58  ;;  %1193 = vmatprep.subr.mxu0 %v196_v59  ;;  %v574_v57 = vld [vmem:[%s7403_s1 + $0x1138] sm:$0xff]  ;;  %v681_v58 = vld [vmem:[%s7403_s1 + $0x1490] sm:$0xff] }
  0x63   :  { %1337 = vmatprep.subr.mxu1 %v303_v60  ;;  %1194 = vmatpush1.msra.mxu0 %v195_v61  ;;  %v573_v59 = vld [vmem:[%s7403_s1 + $0x1130] sm:$0xff]  ;;  %v680_v60 = vld [vmem:[%s7403_s1 + $0x1488] sm:$0xff] }
  0x64   :  { %1338 = vmatpush1.msra.mxu1 %v302_v24  ;;  %1195 = vmatprep.subr.mxu0 %v175_v62  ;;  %v553_v61 = vld [vmem:[%s7403_s1 + $0x1090] sm:$0xff]  ;;  %v660_v24 = vld [vmem:[%s7403_s1 + $0x13e8] sm:$0xff] }
  0x65   :  { %1339 = vmatprep.subr.mxu1 %v282_v63  ;;  %1196 = vmatpush1.msra.mxu0 %v174_v0  ;;  %v552_v62 = vld [vmem:[%s7403_s1 + $0x1088] sm:$0xff]  ;;  %v659_v63 = vld [vmem:[%s7403_s1 + $0x13e0] sm:$0xff] }
  0x66   :  { %1340 = vmatpush1.msra.mxu1 %v281_v1  ;;  %1197 = vmatprep.subr.mxu0 %v154_v2  ;;  %v532_v0 = vld [vmem:[%s7403_s1 + $0xfe8] sm:$0xff]  ;;  %v639_v1 = vld [vmem:[%s7403_s1 + $0x1340] sm:$0xff] }
  0x67   :  { %1341 = vmatprep.subr.mxu1 %v261_v5  ;;  %1198 = vmatpush1.msra.mxu0 %v153_v7  ;;  %v531_v2 = vld [vmem:[%s7403_s1 + $0xfe0] sm:$0xff]  ;;  %v638_v5 = vld [vmem:[%s7403_s1 + $0x1338] sm:$0xff] }
  0x68   :  { %1342 = vmatpush1.msra.mxu1 %v260_v8  ;;  %1199 = vmatprep.subr.mxu0 %v133_v9  ;;  %v511_v7 = vld [vmem:[%s7403_s1 + $0xf40] sm:$0xff]  ;;  %v618_v8 = vld [vmem:[%s7403_s1 + $0x1298] sm:$0xff] }
  0x69   :  { %1343 = vmatprep.subr.mxu1 %v240_v10  ;;  %1200 = vmatpush1.msra.mxu0 %v132_v11  ;;  %v510_v9 = vld [vmem:[%s7403_s1 + $0xf38] sm:$0xff]  ;;  %v617_v10 = vld [vmem:[%s7403_s1 + $0x1290] sm:$0xff] }
  0x6a   :  { %1344 = vmatpush1.msra.mxu1 %v239_v12  ;;  %1201 = vmatprep.subr.mxu0 %v112_v13  ;;  %v490_v11 = vld [vmem:[%s7403_s1 + $0xe98] sm:$0xff]  ;;  %v597_v12 = vld [vmem:[%s7403_s1 + $0x11f0] sm:$0xff] }
  0x6b   :  { %1345 = vmatprep.subr.mxu1 %v219_v14  ;;  %1202 = vmatpush1.msra.mxu0 %v111_v16  ;;  %v489_v13 = vld [vmem:[%s7403_s1 + $0xe90] sm:$0xff]  ;;  %v596_v14 = vld [vmem:[%s7403_s1 + $0x11e8] sm:$0xff] }
  0x6c   :  { %1346 = vmatpush1.msra.mxu1 %v218_v17  ;;  %1203 = vmatprep.subr.mxu0 %v91_v20  ;;  %v469_v16 = vld [vmem:[%s7403_s1 + $0xdf0] sm:$0xff]  ;;  %v576_v17 = vld [vmem:[%s7403_s1 + $0x1148] sm:$0xff] }
  0x6d   :  { %1347 = vmatprep.subr.mxu1 %v198_v21  ;;  %1204 = vmatpush1.msra.mxu0 %v90_v22  ;;  %v468_v20 = vld [vmem:[%s7403_s1 + $0xde8] sm:$0xff]  ;;  %v575_v21 = vld [vmem:[%s7403_s1 + $0x1140] sm:$0xff] }
  0x6e   :  { %1348 = vmatpush1.msra.mxu1 %v197_v23  ;;  %1205 = vmatprep.subr.mxu0 %v70_v25  ;;  %v448_v22 = vld [vmem:[%s7403_s1 + $0xd48] sm:$0xff]  ;;  %v555_v23 = vld [vmem:[%s7403_s1 + $0x10a0] sm:$0xff] }
  0x6f   :  { %1349 = vmatprep.subr.mxu1 %v177_v26  ;;  %1206 = vmatpush1.msra.mxu0 %v69_v27  ;;  %v447_v25 = vld [vmem:[%s7403_s1 + $0xd40] sm:$0xff]  ;;  %v554_v26 = vld [vmem:[%s7403_s1 + $0x1098] sm:$0xff] }
  0x70   :  { %1350 = vmatpush1.msra.mxu1 %v176_v28  ;;  %1207 = vmatprep.subr.mxu0 %v49_v29  ;;  %v427_v27 = vld [vmem:[%s7403_s1 + $0xca0] sm:$0xff]  ;;  %v534_v28 = vld [vmem:[%s7403_s1 + $0xff8] sm:$0xff] }
  0x71   :  { %1351 = vmatprep.subr.mxu1 %v156_v30  ;;  %1208 = vmatpush1.msra.mxu0 %v48_v31  ;;  %v426_v29 = vld [vmem:[%s7403_s1 + $0xc98] sm:$0xff]  ;;  %v533_v30 = vld [vmem:[%s7403_s1 + $0xff0] sm:$0xff] }
  0x72   :  { %1352 = vmatpush1.msra.mxu1 %v155_v32  ;;  %1209 = vmatprep.subr.mxu0 %v28_v33  ;;  %v406_v31 = vld [vmem:[%s7403_s1 + $0xbf8] sm:$0xff]  ;;  %v513_v32 = vld [vmem:[%s7403_s1 + $0xf50] sm:$0xff] }
  0x73   :  { %1353 = vmatprep.subr.mxu1 %v135_v34  ;;  %1210 = vmatpush1.msra.mxu0 %v27_v35  ;;  %v405_v33 = vld [vmem:[%s7403_s1 + $0xbf0] sm:$0xff]  ;;  %v512_v34 = vld [vmem:[%s7403_s1 + $0xf48] sm:$0xff] }
  0x74   :  { %1354 = vmatpush1.msra.mxu1 %v134_v36  ;;  %1211 = vmatprep.subr.mxu0 %v679_v37  ;;  %v385_v35 = vld [vmem:[%s7403_s1 + $0xb50] sm:$0xff]  ;;  %v492_v36 = vld [vmem:[%s7403_s1 + $0xea8] sm:$0xff] }
  0x75   :  { %1355 = vmatprep.subr.mxu1 %v114_v38  ;;  %1212 = vmatpush2.msra.mxu0 %v678_v39  ;;  %v384_v37 = vld [vmem:[%s7403_s1 + $0xb48] sm:$0xff]  ;;  %v491_v38 = vld [vmem:[%s7403_s1 + $0xea0] sm:$0xff] }
  0x76   :  { %1356 = vmatpush1.msra.mxu1 %v113_v40  ;;  %1213 = vmatprep.subr.mxu0 %v658_v41  ;;  %v364_v39 = vld [vmem:[%s7403_s1 + $0xaa8] sm:$0xff]  ;;  %v471_v40 = vld [vmem:[%s7403_s1 + $0xe00] sm:$0xff] }
  0x77   :  { %1357 = vmatprep.subr.mxu1 %v93_v42  ;;  %1214 = vmatpush2.msra.mxu0 %v657_v43  ;;  %v363_v41 = vld [vmem:[%s7403_s1 + $0xaa0] sm:$0xff]  ;;  %v470_v42 = vld [vmem:[%s7403_s1 + $0xdf8] sm:$0xff] }
  0x78   :  { %1358 = vmatpush1.msra.mxu1 %v92_v44  ;;  %1215 = vmatprep.subr.mxu0 %v637_v45  ;;  %v450_v43 = vld [vmem:[%s7403_s1 + $0xd58] sm:$0xff]  ;;  %v449_v45 = vld [vmem:[%s7403_s1 + $0xd50] sm:$0xff] }
  0x79   :  { %1359 = vmatprep.subr.mxu1 %v72_v46  ;;  %1216 = vmatpush2.msra.mxu0 %v636_v47  ;;  %v786_v44 = vld [vmem:[%s7403_s1 + $0x17d8] sm:$0xf]  ;;  %v785_v46 = vld [vmem:[%s7403_s1 + $0x17d0] sm:$0xf] }
  0x7a   :  { %1360 = vmatpush1.msra.mxu1 %v71_v48  ;;  %1217 = vmatprep.subr.mxu0 %v616_v49  ;;  %v429_v47 = vld [vmem:[%s7403_s1 + $0xcb0] sm:$0xff]  ;;  %v428_v49 = vld [vmem:[%s7403_s1 + $0xca8] sm:$0xff] }
  0x7b   :  { %1361 = vmatprep.subr.mxu1 %v51_v50  ;;  %1218 = vmatpush2.msra.mxu0 %v615_v51  ;;  %v765_v48 = vld [vmem:[%s7403_s1 + $0x1730] sm:$0xff]  ;;  %v764_v50 = vld [vmem:[%s7403_s1 + $0x1728] sm:$0xff] }
  0x7c   :  { %1362 = vmatpush1.msra.mxu1 %v50_v52  ;;  %1219 = vmatprep.subr.mxu0 %v595_v53  ;;  %v408_v51 = vld [vmem:[%s7403_s1 + $0xc08] sm:$0xff]  ;;  %v743_v53 = vld [vmem:[%s7403_s1 + $0x1680] sm:$0xff] }
  0x7d   :  { %1363 = vmatprep.subr.mxu1 %v30_v54  ;;  %1220 = vmatpush2.msra.mxu0 %v594_v55  ;;  %v744_v52 = vld [vmem:[%s7403_s1 + $0x1688] sm:$0xff]  ;;  %v407_v54 = vld [vmem:[%s7403_s1 + $0xc00] sm:$0xff] }
  0x7e   :  { %1364 = vmatpush1.msra.mxu1 %v29_v56  ;;  %1221 = vmatprep.subr.mxu0 %v574_v57  ;;  %v723_v55 = vld [vmem:[%s7403_s1 + $0x15e0] sm:$0xff]  ;;  %v722_v57 = vld [vmem:[%s7403_s1 + $0x15d8] sm:$0xff] }
  0x7f   :  { %1365 = vmatprep.subr.mxu1 %v681_v58  ;;  %1222 = vmatpush2.msra.mxu0 %v573_v59  ;;  %v387_v56 = vld [vmem:[%s7403_s1 + $0xb60] sm:$0xff]  ;;  %v386_v58 = vld [vmem:[%s7403_s1 + $0xb58] sm:$0xff] }
  0x80   :  { %1366 = vmatpush2.msra.mxu1 %v680_v60  ;;  %1223 = vmatprep.subr.mxu0 %v553_v61  ;;  %v702_v59 = vld [vmem:[%s7403_s1 + $0x1538] sm:$0xff]  ;;  %v365_v61 = vld [vmem:[%s7403_s1 + $0xab0] sm:$0xff] }
  0x81   :  { %1367 = vmatprep.subr.mxu1 %v660_v24  ;;  %1224 = vmatpush2.msra.mxu0 %v552_v62  ;;  %v366_v60 = vld [vmem:[%s7403_s1 + $0xab8] sm:$0xff]  ;;  %v701_v24 = vld [vmem:[%s7403_s1 + $0x1530] sm:$0xff]  ;;  %v347_v62 = vld [vmem:[%s7403_s1 + $0xa20] sm:$0xff] }
  0x82   :  { %1368 = vmatpush2.msra.mxu1 %v659_v63  ;;  %1225 = vmatprep.subr.mxu0 %v532_v0  ;;  %v788_v63 = vld [vmem:[%s7403_s1 + $0x17e8] sm:$0xf]  ;;  %v346_v0 = vld [vmem:[%s7403_s1 + $0xa18] sm:$0xff] }
  0x83   :  { %1369 = vmatprep.subr.mxu1 %v639_v1  ;;  %1226 = vmatpush2.msra.mxu0 %v531_v2  ;;  %v326_v1 = vld [vmem:[%s7403_s1 + $0x978] sm:$0xff]  ;;  %v5160_v2 = vld [vmem:[%s7404_s0 + $0x10] sm:$0xff] }
  0x84   :  { %1370 = vmatpush2.msra.mxu1 %v638_v5  ;;  %1227 = vmatprep.subr.mxu0 %v511_v7  ;;  %v325_v5 = vld [vmem:[%s7403_s1 + $0x970] sm:$0xff]  ;;  %v766_v7 = vld [vmem:[%s7403_s1 + $0x1738] sm:$0xff] }
  0x85   :  { %1371 = vmatprep.subr.mxu1 %v618_v8  ;;  %1228 = vmatpush2.msra.mxu0 %v510_v9  ;;  %v305_v8 = vld [vmem:[%s7403_s1 + $0x8d0] sm:$0xff]  ;;  %v746_v9 = vld [vmem:[%s7403_s1 + $0x1698] sm:$0xff] }
  0x86   :  { %1372 = vmatpush2.msra.mxu1 %v617_v10  ;;  %1229 = vmatprep.subr.mxu0 %v490_v11  ;;  %v304_v10 = vld [vmem:[%s7403_s1 + $0x8c8] sm:$0xff]  ;;  %v745_v11 = vld [vmem:[%s7403_s1 + $0x1690] sm:$0xff] }
  0x87   :  { %1373 = vmatprep.subr.mxu1 %v597_v12  ;;  %1230 = vmatpush2.msra.mxu0 %v489_v13  ;;  %v284_v12 = vld [vmem:[%s7403_s1 + $0x828] sm:$0xff]  ;;  %v725_v13 = vld [vmem:[%s7403_s1 + $0x15f0] sm:$0xff] }
  0x88   :  { %1374 = vmatpush2.msra.mxu1 %v596_v14  ;;  %1231 = vmatprep.subr.mxu0 %v469_v16  ;;  %v724_v14 = vld [vmem:[%s7403_s1 + $0x15e8] sm:$0xff]  ;;  %v283_v16 = vld [vmem:[%s7403_s1 + $0x820] sm:$0xff] }
  0x89   :  { %1375 = vmatprep.subr.mxu1 %v576_v17  ;;  %1232 = vmatpush2.msra.mxu0 %v468_v20  ;;  %v704_v17 = vld [vmem:[%s7403_s1 + $0x1548] sm:$0xff]  ;;  %v703_v20 = vld [vmem:[%s7403_s1 + $0x1540] sm:$0xff] }
  0x8a   :  { %1376 = vmatpush2.msra.mxu1 %v575_v21  ;;  %1233 = vmatprep.subr.mxu0 %v448_v22  ;;  %v262_v21 = vld [vmem:[%s7403_s1 + $0x778] sm:$0xff]  ;;  %v349_v22 = vld [vmem:[%s7403_s1 + $0xa30] sm:$0xff] }
  0x8b   :  { %1377 = vmatprep.subr.mxu1 %v555_v23  ;;  %1234 = vmatpush2.msra.mxu0 %v447_v25  ;;  %v348_v23 = vld [vmem:[%s7403_s1 + $0xa28] sm:$0xff]  ;;  %v221_v25 = vld [vmem:[%s7403_s1 + $0x630] sm:$0xff] }
  0x8c   :  { %1378 = vmatpush2.msra.mxu1 %v554_v26  ;;  %1235 = vmatprep.subr.mxu0 %v427_v27  ;;  %v328_v26 = vld [vmem:[%s7403_s1 + $0x988] sm:$0xff] }
  0x8d   :  { %1379 = vmatprep.subr.mxu1 %v534_v28  ;;  %1236 = vmatpush2.msra.mxu0 %v426_v29  ;;  %v220_v27 = vld [vmem:[%s7403_s1 + $0x628] sm:$0xff]  ;;  %v327_v28 = vld [vmem:[%s7403_s1 + $0x980] sm:$0xff] }
  0x8e   :  { %1380 = vmatpush2.msra.mxu1 %v533_v30  ;;  %1237 = vmatprep.subr.mxu0 %v406_v31  ;;  %v200_v29 = vld [vmem:[%s7403_s1 + $0x588] sm:$0xff]  ;;  %v307_v30 = vld [vmem:[%s7403_s1 + $0x8e0] sm:$0xff] }
  0x8f   :  { %1381 = vmatprep.subr.mxu1 %v513_v32  ;;  %1238 = vmatpush2.msra.mxu0 %v405_v33  ;;  %v199_v31 = vld [vmem:[%s7403_s1 + $0x580] sm:$0xff]  ;;  %v306_v32 = vld [vmem:[%s7403_s1 + $0x8d8] sm:$0xff] }
  0x90   :  { %1382 = vmatpush2.msra.mxu1 %v512_v34  ;;  %1239 = vmatprep.subr.mxu0 %v385_v35  ;;  %v179_v33 = vld [vmem:[%s7403_s1 + $0x4e0] sm:$0xff]  ;;  %v286_v34 = vld [vmem:[%s7403_s1 + $0x838] sm:$0xff] }
  0x91   :  { %1383 = vmatprep.subr.mxu1 %v492_v36  ;;  %1240 = vmatpush2.msra.mxu0 %v384_v37  ;;  %v178_v35 = vld [vmem:[%s7403_s1 + $0x4d8] sm:$0xff]  ;;  %v285_v36 = vld [vmem:[%s7403_s1 + $0x830] sm:$0xff] }
  0x92   :  { %1384 = vmatpush2.msra.mxu1 %v491_v38  ;;  %1241 = vmatprep.subr.mxu0 %v364_v39  ;;  %v158_v37 = vld [vmem:[%s7403_s1 + $0x438] sm:$0xff]  ;;  %v265_v38 = vld [vmem:[%s7403_s1 + $0x790] sm:$0xff] }
  0x93   :  { %1385 = vmatprep.subr.mxu1 %v471_v40  ;;  %1242 = vmatpush2.msra.mxu0 %v363_v41  ;;  %v157_v39 = vld [vmem:[%s7403_s1 + $0x430] sm:$0xff]  ;;  %v264_v40 = vld [vmem:[%s7403_s1 + $0x788] sm:$0xff] }
  0x94   :  { %1243 = vmatprep.mubr.f32.mxu0 %v4577_v4  ;;  %1386 = vmatpush2.msra.mxu1 %v470_v42  ;;  %v137_v41 = vld [vmem:[%s7403_s1 + $0x390] sm:$0xff]  ;;  %v244_v42 = vld [vmem:[%s7403_s1 + $0x6e8] sm:$0xff] }
  0x95   :  { %1244 = vmatmul.mubr.f32.vlgmr.msra.gmra.mxu0 %v4585_v6  ;;  %1387 = vmatprep.subr.mxu1 %v450_v43  ;;  %v136_v43 = vld [vmem:[%s7403_s1 + $0x388] sm:$0xff] }
  0x96   :  { %3949 = vmatprep.subr.msk.mxu0 %vm807_vm0, %v786_v44  ;;  %1388 = vmatpush2.msra.mxu1 %v449_v45  ;;  %v243_v44 = vld [vmem:[%s7403_s1 + $0x6e0] sm:$0xff]  ;;  %v116_v45 = vld [vmem:[%s7403_s1 + $0x2e8] sm:$0xff] }
  0x97   :  { %3950 = vmatpush1.msk.msra.mxu0 %vm807_vm0, %v785_v46  ;;  %1389 = vmatprep.subr.mxu1 %v429_v47  ;;  %v223_v46 = vld [vmem:[%s7403_s1 + $0x640] sm:$0xff] }
  0x98   :  { %1434 = vmatprep.subr.mxu0 %v765_v48  ;;  %1390 = vmatpush2.msra.mxu1 %v428_v49  ;;  %v115_v47 = vld [vmem:[%s7403_s1 + $0x2e0] sm:$0xff]  ;;  %v222_v48 = vld [vmem:[%s7403_s1 + $0x638] sm:$0xff] }
  0x99   :  { %1435 = vmatpush1.msra.mxu0 %v764_v50  ;;  %1249 = vmatprep.mubr.f32.mxu0 %v4617_v15  ;;  %v95_v49 = vld [vmem:[%s7403_s1 + $0x240] sm:$0xff]  ;;  %v202_v50 = vld [vmem:[%s7403_s1 + $0x598] sm:$0xff] }
  0x9a   :  { %1326 = vmatprep.mubr.f32.mxu1 %v4157_v3  ;;  %1391 = vmatprep.subr.mxu1 %v408_v51  ;;  %v94_v51 = vld [vmem:[%s7403_s1 + $0x238] sm:$0xff] }
  0x9b   :  { %1436 = vmatprep.subr.mxu0 %v744_v52  ;;  %1250 = vmatmul.mubr.f32.gmra.mxu0 %v4629_v18  ;;  %v201_v52 = vld [vmem:[%s7403_s1 + $0x590] sm:$0xff] }
  0x9c   :  { %3948 = vmatmul.mubr.msk.f32.gmra.mxu1 %vm800_vm1, %v4635_v19  ;;  %1437 = vmatpush1.msra.mxu0 %v743_v53  ;;  %v74_v53 = vld [vmem:[%s7403_s1 + $0x198] sm:$0xff] }
  0x9d   :  { %1392 = vmatpush2.msra.mxu1 %v407_v54  ;;  %1438 = vmatprep.subr.mxu0 %v723_v55  ;;  %v181_v54 = vld [vmem:[%s7403_s1 + $0x4f0] sm:$0xff] }
  0x9e   :  { %1393 = vmatprep.subr.mxu1 %v387_v56  ;;  %1439 = vmatpush1.msra.mxu0 %v722_v57  ;;  %v73_v55 = vld [vmem:[%s7403_s1 + $0x190] sm:$0xff]  ;;  %v180_v56 = vld [vmem:[%s7403_s1 + $0x4e8] sm:$0xff] }
  0x9f   :  { %1394 = vmatpush2.msra.mxu1 %v386_v58  ;;  %1440 = vmatprep.subr.mxu0 %v702_v59  ;;  %v53_v57 = vld [vmem:[%s7403_s1 + $0xf0] sm:$0xff]  ;;  %v160_v58 = vld [vmem:[%s7403_s1 + $0x448] sm:$0xff] }
  0xa0   :  { %1395 = vmatprep.subr.mxu1 %v366_v60  ;;  %1397 = vmatprep.mubr.f32.mxu1 %v4577_v4  ;;  %v787_v4 = vld [vmem:[%s7403_s1 + $0x17e0] sm:$0xf]  ;;  %v52_v59 = vld [vmem:[%s7403_s1 + $0xe8] sm:$0xff] }
  0xa1   :  { %1396 = vmatpush2.msra.mxu1 %v365_v61  ;;  %1441 = vmatpush1.msra.mxu0 %v701_v24  ;;  %v159_v60 = vld [vmem:[%s7403_s1 + $0x440] sm:$0xff]  ;;  %v32_v61 = vld [vmem:[%s7403_s1 + $0x48] sm:$0xff] }
  0xa2   :  { %1474 = vmatprep.mubr.f32.mxu0 %v4157_v3  ;;  %1398 = vmatmul.mubr.f32.vlgmr.msra.gmra.mxu1 %v4585_v6  ;;  %v767_v6 = vld [vmem:[%s7403_s1 + $0x1740] sm:$0xff] }
  0xa3   :  { %3951 = vmatmul.mubr.msk.f32.vlgmr.msra.gmra.mxu0 %vm800_vm1, %v5160_v2  ;;  %1487 = vmatprep.subr.mxu0 %v347_v62  ;;  %v139_v24 = vld [vmem:[%s7403_s1 + $0x3a0] sm:$0xff] }
  0xa4   :  { %3953 = vmatprep.subr.msk.mxu1 %vm807_vm0, %v788_v63  ;;  %1488 = vmatpush1.msra.mxu0 %v346_v0  ;;  %v31_v62 = vld [vmem:[%s7403_s1 + $0x40] sm:$0xff]  ;;  %v138_v63 = vld [vmem:[%s7403_s1 + $0x398] sm:$0xff] }
  0xa5   :  { %3954 = vmatpush1.msk.msra.mxu1 %vm807_vm0, %v787_v4  ;;  %1489 = vmatprep.subr.mxu0 %v326_v1  ;;  %v683_v0 = vld [vmem:[%s7403_s1 + $0x14a0] sm:$0xff]  ;;  %v118_v4 = vld [vmem:[%s7403_s1 + $0x2f8] sm:$0xff] }
  0xa6   :  { %1588 = vmatprep.subr.mxu1 %v767_v6  ;;  %1490 = vmatpush1.msra.mxu0 %v325_v5  ;;  %v682_v1 = vld [vmem:[%s7403_s1 + $0x1498] sm:$0xff]  ;;  %v117_v6 = vld [vmem:[%s7403_s1 + $0x2f0] sm:$0xff] }
  0xa7   :  { %1589 = vmatpush1.msra.mxu1 %v766_v7  ;;  %1491 = vmatprep.subr.mxu0 %v305_v8  ;;  %v662_v5 = vld [vmem:[%s7403_s1 + $0x13f8] sm:$0xff]  ;;  %v97_v7 = vld [vmem:[%s7403_s1 + $0x250] sm:$0xff] }
  0xa8   :  { %1590 = vmatprep.subr.mxu1 %v746_v9  ;;  %1492 = vmatpush1.msra.mxu0 %v304_v10  ;;  %v661_v8 = vld [vmem:[%s7403_s1 + $0x13f0] sm:$0xff]  ;;  %v96_v9 = vld [vmem:[%s7403_s1 + $0x248] sm:$0xff] }
  0xa9   :  { %1591 = vmatpush1.msra.mxu1 %v745_v11  ;;  %1403 = vmatprep.mubr.f32.mxu1 %v4617_v15  ;;  %v263_v15 = vld [vmem:[%s7403_s1 + $0x780] sm:$0xff]  ;;  %v641_v10 = vld [vmem:[%s7403_s1 + $0x1350] sm:$0xff]  ;;  %v76_v11 = vld [vmem:[%s7403_s1 + $0x1a8] sm:$0xff] }
  0xaa   :  { %1480 = vmatprep.mubr.f32.mxu0 %v4157_v3  ;;  %1493 = vmatprep.subr.mxu0 %v284_v12  ;;  %v640_v12 = vld [vmem:[%s7403_s1 + $0x1348] sm:$0xff] }
  0xab   :  { %1592 = vmatprep.subr.mxu1 %v725_v13  ;;  %1404 = vmatmul.mubr.f32.gmra.mxu1 %v4629_v18  ;;  %v242_v18 = vld [vmem:[%s7403_s1 + $0x6d8] sm:$0xff]  ;;  %v75_v13 = vld [vmem:[%s7403_s1 + $0x1a0] sm:$0xff] }
  0xac   :  { %3952 = vmatmul.mubr.msk.f32.gmra.mxu0 %vm800_vm1, %v4635_v19  ;;  %1593 = vmatpush1.msra.mxu1 %v724_v14  ;;  %v241_v19 = vld [vmem:[%s7403_s1 + $0x6d0] sm:$0xff]  ;;  %v620_v14 = vld [vmem:[%s7403_s1 + $0x12a8] sm:$0xff] }
  0xad   :  { %1494 = vmatpush1.msra.mxu0 %v283_v16  ;;  %1594 = vmatprep.subr.mxu1 %v704_v17  ;;  %v55_v16 = vld [vmem:[%s7403_s1 + $0x100] sm:$0xff] }
  0xae   :  { %1495 = vmatprep.subr.mxu0 %v263_v15  ;;  %1595 = vmatpush1.msra.mxu1 %v703_v20  ;;  %v619_v17 = vld [vmem:[%s7403_s1 + $0x12a0] sm:$0xff]  ;;  %v54_v15 = vld [vmem:[%s7403_s1 + $0xf8] sm:$0xff] }
  0xaf   :  { %1496 = vmatpush1.msra.mxu0 %v262_v21  ;;  %1628 = vmatprep.mubr.f32.mxu1 %v4157_v3  ;;  %v599_v20 = vld [vmem:[%s7403_s1 + $0x1200] sm:$0xff]  ;;  %v34_v21 = vld [vmem:[%s7403_s1 + $0x58] sm:$0xff] }
  0xb0   :  { %1497 = vmatprep.subr.mxu0 %v242_v18  ;;  %1641 = vmatprep.subr.mxu1 %v349_v22  ;;  %v598_v18 = vld [vmem:[%s7403_s1 + $0x11f8] sm:$0xff]  ;;  %v33_v22 = vld [vmem:[%s7403_s1 + $0x50] sm:$0xff] }
  0xb1   :  { %1498 = vmatpush1.msra.mxu0 %v241_v19  ;;  %3955 = vmatmul.mubr.msk.f32.vlgmr.msra.gmra.mxu1 %vm800_vm1, %v5160_v2  ;;  %v578_v19 = vld [vmem:[%s7403_s1 + $0x1158] sm:$0xff] }
  0xb2   :  { %1642 = vmatpush1.msra.mxu1 %v348_v23  ;;  %1499 = vmatprep.subr.mxu0 %v221_v25  ;;  %v685_v23 = vld [vmem:[%s7403_s1 + $0x14b0] sm:$0xff] }
  0xb3   :  { %1643 = vmatprep.subr.mxu1 %v328_v26  ;;  %1500 = vmatpush1.msra.mxu0 %v220_v27  ;;  %v577_v25 = vld [vmem:[%s7403_s1 + $0x1150] sm:$0xff]  ;;  %v684_v26 = vld [vmem:[%s7403_s1 + $0x14a8] sm:$0xff] }
  0xb4   :  { %1644 = vmatpush1.msra.mxu1 %v327_v28  ;;  %1501 = vmatprep.subr.mxu0 %v200_v29  ;;  %v557_v27 = vld [vmem:[%s7403_s1 + $0x10b0] sm:$0xff]  ;;  %v664_v28 = vld [vmem:[%s7403_s1 + $0x1408] sm:$0xff] }
  0xb5   :  { %1645 = vmatprep.subr.mxu1 %v307_v30  ;;  %1502 = vmatpush1.msra.mxu0 %v199_v31  ;;  %v556_v29 = vld [vmem:[%s7403_s1 + $0x10a8] sm:$0xff]  ;;  %v663_v30 = vld [vmem:[%s7403_s1 + $0x1400] sm:$0xff] }
  0xb6   :  { %1646 = vmatpush1.msra.mxu1 %v306_v32  ;;  %1503 = vmatprep.subr.mxu0 %v179_v33  ;;  %v536_v31 = vld [vmem:[%s7403_s1 + $0x1008] sm:$0xff]  ;;  %v643_v32 = vld [vmem:[%s7403_s1 + $0x1360] sm:$0xff] }
  0xb7   :  { %1647 = vmatprep.subr.mxu1 %v286_v34  ;;  %1504 = vmatpush1.msra.mxu0 %v178_v35  ;;  %v535_v33 = vld [vmem:[%s7403_s1 + $0x1000] sm:$0xff]  ;;  %v642_v34 = vld [vmem:[%s7403_s1 + $0x1358] sm:$0xff] }
  0xb8   :  { %1648 = vmatpush1.msra.mxu1 %v285_v36  ;;  %1505 = vmatprep.subr.mxu0 %v158_v37  ;;  %v515_v35 = vld [vmem:[%s7403_s1 + $0xf60] sm:$0xff]  ;;  %v622_v36 = vld [vmem:[%s7403_s1 + $0x12b8] sm:$0xff] }
  0xb9   :  { %1649 = vmatprep.subr.mxu1 %v265_v38  ;;  %1506 = vmatpush1.msra.mxu0 %v157_v39  ;;  %v514_v37 = vld [vmem:[%s7403_s1 + $0xf58] sm:$0xff]  ;;  %v621_v38 = vld [vmem:[%s7403_s1 + $0x12b0] sm:$0xff] }
  0xba   :  { %1650 = vmatpush1.msra.mxu1 %v264_v40  ;;  %1507 = vmatprep.subr.mxu0 %v137_v41  ;;  %v494_v39 = vld [vmem:[%s7403_s1 + $0xeb8] sm:$0xff]  ;;  %v601_v40 = vld [vmem:[%s7403_s1 + $0x1210] sm:$0xff] }
  0xbb   :  { %1651 = vmatprep.subr.mxu1 %v244_v42  ;;  %1508 = vmatpush1.msra.mxu0 %v136_v43  ;;  %v493_v41 = vld [vmem:[%s7403_s1 + $0xeb0] sm:$0xff]  ;;  %v600_v42 = vld [vmem:[%s7403_s1 + $0x1208] sm:$0xff] }
  0xbc   :  { %1652 = vmatpush1.msra.mxu1 %v243_v44  ;;  %1509 = vmatprep.subr.mxu0 %v116_v45  ;;  %v473_v43 = vld [vmem:[%s7403_s1 + $0xe10] sm:$0xff]  ;;  %v580_v44 = vld [vmem:[%s7403_s1 + $0x1168] sm:$0xff] }
  0xbd   :  { %1653 = vmatprep.subr.mxu1 %v223_v46  ;;  %1510 = vmatpush1.msra.mxu0 %v115_v47  ;;  %v472_v45 = vld [vmem:[%s7403_s1 + $0xe08] sm:$0xff]  ;;  %v579_v46 = vld [vmem:[%s7403_s1 + $0x1160] sm:$0xff] }
  0xbe   :  { %1654 = vmatpush1.msra.mxu1 %v222_v48  ;;  %1511 = vmatprep.subr.mxu0 %v95_v49  ;;  %v452_v47 = vld [vmem:[%s7403_s1 + $0xd68] sm:$0xff]  ;;  %v559_v48 = vld [vmem:[%s7403_s1 + $0x10c0] sm:$0xff] }
  0xbf   :  { %1655 = vmatprep.subr.mxu1 %v202_v50  ;;  %1512 = vmatpush1.msra.mxu0 %v94_v51  ;;  %v451_v49 = vld [vmem:[%s7403_s1 + $0xd60] sm:$0xff]  ;;  %v558_v50 = vld [vmem:[%s7403_s1 + $0x10b8] sm:$0xff] }
  0xc0   :  { %1656 = vmatpush1.msra.mxu1 %v201_v52  ;;  %1513 = vmatprep.subr.mxu0 %v74_v53  ;;  %v431_v51 = vld [vmem:[%s7403_s1 + $0xcc0] sm:$0xff]  ;;  %v538_v52 = vld [vmem:[%s7403_s1 + $0x1018] sm:$0xff] }
  0xc1   :  { %1657 = vmatprep.subr.mxu1 %v181_v54  ;;  %1514 = vmatpush1.msra.mxu0 %v73_v55  ;;  %v430_v53 = vld [vmem:[%s7403_s1 + $0xcb8] sm:$0xff]  ;;  %v537_v54 = vld [vmem:[%s7403_s1 + $0x1010] sm:$0xff] }
  0xc2   :  { %1658 = vmatpush1.msra.mxu1 %v180_v56  ;;  %1515 = vmatprep.subr.mxu0 %v53_v57  ;;  %v410_v55 = vld [vmem:[%s7403_s1 + $0xc18] sm:$0xff]  ;;  %v517_v56 = vld [vmem:[%s7403_s1 + $0xf70] sm:$0xff] }
  0xc3   :  { %1659 = vmatprep.subr.mxu1 %v160_v58  ;;  %1516 = vmatpush1.msra.mxu0 %v52_v59  ;;  %v409_v57 = vld [vmem:[%s7403_s1 + $0xc10] sm:$0xff]  ;;  %v516_v58 = vld [vmem:[%s7403_s1 + $0xf68] sm:$0xff] }
  0xc4   :  { %1660 = vmatpush1.msra.mxu1 %v159_v60  ;;  %1517 = vmatprep.subr.mxu0 %v32_v61  ;;  %v389_v59 = vld [vmem:[%s7403_s1 + $0xb70] sm:$0xff]  ;;  %v496_v60 = vld [vmem:[%s7403_s1 + $0xec8] sm:$0xff] }
  0xc5   :  { %1661 = vmatprep.subr.mxu1 %v139_v24  ;;  %1518 = vmatpush1.msra.mxu0 %v31_v62  ;;  %v388_v61 = vld [vmem:[%s7403_s1 + $0xb68] sm:$0xff]  ;;  %v495_v24 = vld [vmem:[%s7403_s1 + $0xec0] sm:$0xff] }
  0xc6   :  { %1662 = vmatpush1.msra.mxu1 %v138_v63  ;;  %1519 = vmatprep.subr.mxu0 %v683_v0  ;;  %v368_v62 = vld [vmem:[%s7403_s1 + $0xac8] sm:$0xff]  ;;  %v475_v63 = vld [vmem:[%s7403_s1 + $0xe20] sm:$0xff] }
  0xc7   :  { %1663 = vmatprep.subr.mxu1 %v118_v4  ;;  %1520 = vmatpush2.msra.mxu0 %v682_v1  ;;  %v367_v0 = vld [vmem:[%s7403_s1 + $0xac0] sm:$0xff]  ;;  %v474_v4 = vld [vmem:[%s7403_s1 + $0xe18] sm:$0xff] }
  0xc8   :  { %1664 = vmatpush1.msra.mxu1 %v117_v6  ;;  %1521 = vmatprep.subr.mxu0 %v662_v5  ;;  %v454_v1 = vld [vmem:[%s7403_s1 + $0xd78] sm:$0xff]  ;;  %v453_v5 = vld [vmem:[%s7403_s1 + $0xd70] sm:$0xff] }
  0xc9   :  { %1665 = vmatprep.subr.mxu1 %v97_v7  ;;  %1522 = vmatpush2.msra.mxu0 %v661_v8  ;;  %v790_v6 = vld [vmem:[%s7403_s1 + $0x17f8] sm:$0xf]  ;;  %v5555_v7 = vld [vmem:[%s7404_s0 + $0x8] sm:$0xff]  ;;  %v789_v8 = vld [vmem:[%s7403_s1 + $0x17f0] sm:$0xf] }
  0xca   :  { %1666 = vmatpush1.msra.mxu1 %v96_v9  ;;  %1523 = vmatprep.subr.mxu0 %v641_v10  ;;  %v433_v9 = vld [vmem:[%s7403_s1 + $0xcd0] sm:$0xff]  ;;  %v5567_v10 = vld [vmem:[%s7404_s0] sm:$0xff] }
  0xcb   :  { %1667 = vmatprep.subr.mxu1 %v76_v11  ;;  %1524 = vmatpush2.msra.mxu0 %v640_v12  ;;  %v769_v11 = vld [vmem:[%s7403_s1 + $0x1750] sm:$0xff]  ;;  %v432_v12 = vld [vmem:[%s7403_s1 + $0xcc8] sm:$0xff] }
  0xcc   :  { %1668 = vmatpush1.msra.mxu1 %v75_v13  ;;  %1525 = vmatprep.subr.mxu0 %v620_v14  ;;  %v768_v13 = vld [vmem:[%s7403_s1 + $0x1748] sm:$0xff] }
  0xcd   :  { %1669 = vmatprep.subr.mxu1 %v55_v16  ;;  %1526 = vmatpush2.msra.mxu0 %v619_v17  ;;  %v412_v14 = vld [vmem:[%s7403_s1 + $0xc28] sm:$0xff]  ;;  %v5590_v17 = vld [vmem:[%s7404_s0 + $0x20] sm:$0xf] }
  0xce   :  { %1670 = vmatpush1.msra.mxu1 %v54_v15  ;;  %1527 = vmatprep.subr.mxu0 %v599_v20  ;;  %v748_v16 = vld [vmem:[%s7403_s1 + $0x16a8] sm:$0xff]  ;;  %v747_v15 = vld [vmem:[%s7403_s1 + $0x16a0] sm:$0xff] }
  0xcf   :  { %1671 = vmatprep.subr.mxu1 %v34_v21  ;;  %1528 = vmatpush2.msra.mxu0 %v598_v18  ;;  %v411_v20 = vld [vmem:[%s7403_s1 + $0xc20] sm:$0xff]  ;;  %v5606_v18 = vld [vmem:[%s7404_s0 + $0x18] sm:$0xf] }
  0xd0   :  { %1672 = vmatpush1.msra.mxu1 %v33_v22  ;;  %1529 = vmatprep.subr.mxu0 %v578_v19  ;;  %v727_v21 = vld [vmem:[%s7403_s1 + $0x1600] sm:$0xff]  ;;  %v726_v19 = vld [vmem:[%s7403_s1 + $0x15f8] sm:$0xff] }
  0xd1   :  { %1673 = vmatprep.subr.mxu1 %v685_v23  ;;  %1530 = vmatpush2.msra.mxu0 %v577_v25  ;;  %v391_v22 = vld [vmem:[%s7403_s1 + $0xb80] sm:$0xff]  ;;  %v5618_v23 = vld [vmem:[%s7404_s0 + $0x28] sm:$0xf]  ;;  %v390_v25 = vld [vmem:[%s7403_s1 + $0xb78] sm:$0xff] }
  0xd2   :  { %1674 = vmatpush2.msra.mxu1 %v684_v26  ;;  %1531 = vmatprep.subr.mxu0 %v557_v27  ;;  %v706_v26 = vld [vmem:[%s7403_s1 + $0x1558] sm:$0xff] }
  0xd3   :  { %1675 = vmatprep.subr.mxu1 %v664_v28  ;;  %1532 = vmatpush2.msra.mxu0 %v556_v29  ;;  %v370_v27 = vld [vmem:[%s7403_s1 + $0xad8] sm:$0xff]  ;;  %v369_v28 = vld [vmem:[%s7403_s1 + $0xad0] sm:$0xff] }
  0xd4   :  { %1676 = vmatpush2.msra.mxu1 %v663_v30  ;;  %1533 = vmatprep.subr.mxu0 %v536_v31  ;;  %v705_v29 = vld [vmem:[%s7403_s1 + $0x1550] sm:$0xff]  ;;  %v351_v30 = vld [vmem:[%s7403_s1 + $0xa40] sm:$0xff]  ;;  %v792_v31 = vld [vmem:[%s7403_s1 + $0x1808] sm:$0xf] }
  0xd5   :  { %1677 = vmatprep.subr.mxu1 %v643_v32  ;;  %1534 = vmatpush2.msra.mxu0 %v535_v33  ;;  %v350_v32 = vld [vmem:[%s7403_s1 + $0xa38] sm:$0xff]  ;;  %v791_v33 = vld [vmem:[%s7403_s1 + $0x1800] sm:$0xf] }
  0xd6   :  { %1678 = vmatpush2.msra.mxu1 %v642_v34  ;;  %1535 = vmatprep.subr.mxu0 %v515_v35  ;;  %v330_v34 = vld [vmem:[%s7403_s1 + $0x998] sm:$0xff]  ;;  %v771_v35 = vld [vmem:[%s7403_s1 + $0x1760] sm:$0xff] }
  0xd7   :  { %1679 = vmatprep.subr.mxu1 %v622_v36  ;;  %1536 = vmatpush2.msra.mxu0 %v514_v37  ;;  %v329_v36 = vld [vmem:[%s7403_s1 + $0x990] sm:$0xff]  ;;  %v770_v37 = vld [vmem:[%s7403_s1 + $0x1758] sm:$0xff] }
  0xd8   :  { %1680 = vmatpush2.msra.mxu1 %v621_v38  ;;  %1537 = vmatprep.subr.mxu0 %v494_v39  ;;  %v309_v38 = vld [vmem:[%s7403_s1 + $0x8f0] sm:$0xff]  ;;  %v750_v39 = vld [vmem:[%s7403_s1 + $0x16b8] sm:$0xff] }
  0xd9   :  { %1681 = vmatprep.subr.mxu1 %v601_v40  ;;  %1538 = vmatpush2.msra.mxu0 %v493_v41  ;;  %v308_v40 = vld [vmem:[%s7403_s1 + $0x8e8] sm:$0xff]  ;;  %v749_v41 = vld [vmem:[%s7403_s1 + $0x16b0] sm:$0xff] }
  0xda   :  { %1682 = vmatpush2.msra.mxu1 %v600_v42  ;;  %1539 = vmatprep.subr.mxu0 %v473_v43  ;;  %v288_v42 = vld [vmem:[%s7403_s1 + $0x848] sm:$0xff]  ;;  %v729_v43 = vld [vmem:[%s7403_s1 + $0x1610] sm:$0xff] }
  0xdb   :  { %1683 = vmatprep.subr.mxu1 %v580_v44  ;;  %1540 = vmatpush2.msra.mxu0 %v472_v45  ;;  %v728_v44 = vld [vmem:[%s7403_s1 + $0x1608] sm:$0xff]  ;;  %v287_v45 = vld [vmem:[%s7403_s1 + $0x840] sm:$0xff] }
  0xdc   :  { %1684 = vmatpush2.msra.mxu1 %v579_v46  ;;  %1541 = vmatprep.subr.mxu0 %v452_v47  ;;  %v708_v46 = vld [vmem:[%s7403_s1 + $0x1568] sm:$0xff]  ;;  %v267_v47 = vld [vmem:[%s7403_s1 + $0x7a0] sm:$0xff] }
  0xdd   :  { %1685 = vmatprep.subr.mxu1 %v559_v48  ;;  %1542 = vmatpush2.msra.mxu0 %v451_v49  ;;  %v707_v48 = vld [vmem:[%s7403_s1 + $0x1560] sm:$0xff]  ;;  %v266_v49 = vld [vmem:[%s7403_s1 + $0x798] sm:$0xff] }
  0xde   :  { %1686 = vmatpush2.msra.mxu1 %v558_v50  ;;  %1543 = vmatprep.subr.mxu0 %v431_v51  ;;  %v246_v50 = vld [vmem:[%s7403_s1 + $0x6f8] sm:$0xff]  ;;  %v353_v51 = vld [vmem:[%s7403_s1 + $0xa50] sm:$0xff] }
  0xdf   :  { %1687 = vmatprep.subr.mxu1 %v538_v52  ;;  %1544 = vmatpush2.msra.mxu0 %v430_v53  ;;  %v245_v52 = vld [vmem:[%s7403_s1 + $0x6f0] sm:$0xff]  ;;  %v1014_v53 = vpop.f32.mrf.mxu1 }
  0xe0   :  { %1688 = vmatpush2.msra.mxu1 %v537_v54  ;;  %1545 = vmatprep.subr.mxu0 %v410_v55  ;;  %v352_v54 = vld [vmem:[%s7403_s1 + $0xa48] sm:$0xff]  ;;  %v225_v55 = vld [vmem:[%s7403_s1 + $0x650] sm:$0xff] }
  0xe1   :  { %1689 = vmatprep.subr.mxu1 %v517_v56  ;;  %1546 = vmatpush2.msra.mxu0 %v409_v57  ;;  %v332_v56 = vld [vmem:[%s7403_s1 + $0x9a8] sm:$0xff] }
  0xe2   :  { %1690 = vmatpush2.msra.mxu1 %v516_v58  ;;  %1547 = vmatprep.subr.mxu0 %v389_v59  ;;  %v224_v57 = vld [vmem:[%s7403_s1 + $0x648] sm:$0xff]  ;;  %v331_v58 = vld [vmem:[%s7403_s1 + $0x9a0] sm:$0xff] }
  0xe3   :  { %1691 = vmatprep.subr.mxu1 %v496_v60  ;;  %1548 = vmatpush2.msra.mxu0 %v388_v61  ;;  %v204_v59 = vld [vmem:[%s7403_s1 + $0x5a8] sm:$0xff]  ;;  %v311_v61 = vld [vmem:[%s7403_s1 + $0x900] sm:$0xff] }
  0xe4   :  { %1692 = vmatpush2.msra.mxu1 %v495_v24  ;;  %1549 = vmatprep.subr.mxu0 %v368_v62  ;;  %v203_v24 = vld [vmem:[%s7403_s1 + $0x5a0] sm:$0xff]  ;;  %v1016_v62 = vpop.f32.mrf.mxu1 }
  0xe5   :  { %1693 = vmatprep.subr.mxu1 %v475_v63  ;;  %1550 = vmatpush2.msra.mxu0 %v367_v0  ;;  %v310_v63 = vld [vmem:[%s7403_s1 + $0x8f8] sm:$0xff]  ;;  %v183_v0 = vld [vmem:[%s7403_s1 + $0x500] sm:$0xff] }
  0xe6   :  { %1551 = vmatprep.mubr.f32.mxu0 %v5555_v7  ;;  %1694 = vmatpush2.msra.mxu1 %v474_v4 }
  0xe7   :  { %1552 = vmatmul.mubr.f32.vlgmr.msra.gmra.mxu0 %v5567_v10  ;;  %1695 = vmatprep.subr.mxu1 %v454_v1  ;;  %v290_v1 = vld [vmem:[%s7403_s1 + $0x858] sm:$0xff] }
  0xe8   :  { %3957 = vmatprep.subr.msk.mxu0 %vm807_vm0, %v790_v6  ;;  %1696 = vmatpush2.msra.mxu1 %v453_v5  ;;  %v182_v6 = vld [vmem:[%s7403_s1 + $0x4f8] sm:$0xff] }
  0xe9   :  { %3958 = vmatpush1.msk.msra.mxu0 %vm807_vm0, %v789_v8  ;;  %1697 = vmatprep.subr.mxu1 %v433_v9  ;;  %v289_v8 = vld [vmem:[%s7403_s1 + $0x850] sm:$0xff]  ;;  %v162_v9 = vld [vmem:[%s7403_s1 + $0x458] sm:$0xff] }
  0xea   :  { %1742 = vmatprep.subr.mxu0 %v769_v11  ;;  %1698 = vmatpush2.msra.mxu1 %v432_v12  ;;  %v269_v11 = vld [vmem:[%s7403_s1 + $0x7b0] sm:$0xff] }
  0xeb   :  { %1743 = vmatpush1.msra.mxu0 %v768_v13  ;;  %1557 = vmatprep.mubr.f32.mxu0 %v5590_v17  ;;  %v161_v12 = vld [vmem:[%s7403_s1 + $0x450] sm:$0xff]  ;;  %v268_v13 = vld [vmem:[%s7403_s1 + $0x7a8] sm:$0xff] }
  0xec   :  { %1634 = vmatprep.mubr.f32.mxu1 %v4157_v3  ;;  %1699 = vmatprep.subr.mxu1 %v412_v14  ;;  %v141_v14 = vld [vmem:[%s7403_s1 + $0x3b0] sm:$0xff] }
  0xed   :  { %1744 = vmatprep.subr.mxu0 %v748_v16  ;;  %1558 = vmatmul.mubr.f32.gmra.mxu0 %v5606_v18 }
  0xee   :  { %3956 = vmatmul.mubr.msk.f32.gmra.mxu1 %vm800_vm1, %v5618_v23  ;;  %1745 = vmatpush1.msra.mxu0 %v747_v15  ;;  %v248_v15 = vld [vmem:[%s7403_s1 + $0x708] sm:$0xff] }
  0xef   :  { %1700 = vmatpush2.msra.mxu1 %v411_v20  ;;  %1746 = vmatprep.subr.mxu0 %v727_v21  ;;  %v140_v20 = vld [vmem:[%s7403_s1 + $0x3a8] sm:$0xff] }
  0xf0   :  { %1701 = vmatprep.subr.mxu1 %v391_v22  ;;  %1747 = vmatpush1.msra.mxu0 %v726_v19  ;;  %v247_v22 = vld [vmem:[%s7403_s1 + $0x700] sm:$0xff]  ;;  %v120_v19 = vld [vmem:[%s7403_s1 + $0x308] sm:$0xff] }
  0xf1   :  { %1702 = vmatpush2.msra.mxu1 %v390_v25  ;;  %1748 = vmatprep.subr.mxu0 %v706_v26 }
  0xf2   :  { %1703 = vmatprep.subr.mxu1 %v370_v27  ;;  %1705 = vmatprep.mubr.f32.mxu1 %v5555_v7  ;;  %v227_v27 = vld [vmem:[%s7403_s1 + $0x660] sm:$0xff] }
  0xf3   :  { %1704 = vmatpush2.msra.mxu1 %v369_v28  ;;  %1749 = vmatpush1.msra.mxu0 %v705_v29  ;;  %v119_v28 = vld [vmem:[%s7403_s1 + $0x300] sm:$0xff] }
  0xf4   :  { %1782 = vmatprep.mubr.f32.mxu0 %v4157_v3  ;;  %1706 = vmatmul.mubr.f32.vlgmr.msra.gmra.mxu1 %v5567_v10 }
  0xf5   :  { %3959 = vmatmul.mubr.msk.f32.vlgmr.msra.gmra.mxu0 %vm800_vm1, %v5160_v2  ;;  %1795 = vmatprep.subr.mxu0 %v351_v30  ;;  %v226_v30 = vld [vmem:[%s7403_s1 + $0x658] sm:$0xff] }
  0xf6   :  { %3961 = vmatprep.subr.msk.mxu1 %vm807_vm0, %v792_v31  ;;  %1796 = vmatpush1.msra.mxu0 %v350_v32  ;;  %v99_v31 = vld [vmem:[%s7403_s1 + $0x260] sm:$0xff] }
  0xf7   :  { %3962 = vmatpush1.msk.msra.mxu1 %vm807_vm0, %v791_v33  ;;  %1797 = vmatprep.subr.mxu0 %v330_v34  ;;  %v206_v33 = vld [vmem:[%s7403_s1 + $0x5b8] sm:$0xff] }
  0xf8   :  { %1896 = vmatprep.subr.mxu1 %v771_v35  ;;  %1798 = vmatpush1.msra.mxu0 %v329_v36  ;;  %v98_v34 = vld [vmem:[%s7403_s1 + $0x258] sm:$0xff]  ;;  %v205_v35 = vld [vmem:[%s7403_s1 + $0x5b0] sm:$0xff] }
  0xf9   :  { %1897 = vmatpush1.msra.mxu1 %v770_v37  ;;  %1799 = vmatprep.subr.mxu0 %v309_v38  ;;  %v78_v36 = vld [vmem:[%s7403_s1 + $0x1b8] sm:$0xff]  ;;  %v185_v37 = vld [vmem:[%s7403_s1 + $0x510] sm:$0xff] }
  0xfa   :  { %1898 = vmatprep.subr.mxu1 %v750_v39  ;;  %1800 = vmatpush1.msra.mxu0 %v308_v40  ;;  %v77_v38 = vld [vmem:[%s7403_s1 + $0x1b0] sm:$0xff]  ;;  %v184_v40 = vld [vmem:[%s7403_s1 + $0x508] sm:$0xff] }
  0xfb   :  { %1899 = vmatpush1.msra.mxu1 %v749_v41  ;;  %1711 = vmatprep.mubr.f32.mxu1 %v5590_v17  ;;  %v57_v41 = vld [vmem:[%s7403_s1 + $0x110] sm:$0xff] }
  0xfc   :  { %1788 = vmatprep.mubr.f32.mxu0 %v4157_v3  ;;  %1801 = vmatprep.subr.mxu0 %v288_v42 }
  0xfd   :  { %1900 = vmatprep.subr.mxu1 %v729_v43  ;;  %1712 = vmatmul.mubr.f32.gmra.mxu1 %v5606_v18  ;;  %v164_v43 = vld [vmem:[%s7403_s1 + $0x468] sm:$0xff] }
  0xfe   :  { %3960 = vmatmul.mubr.msk.f32.gmra.mxu0 %vm800_vm1, %v5618_v23  ;;  %1901 = vmatpush1.msra.mxu1 %v728_v44  ;;  %v56_v44 = vld [vmem:[%s7403_s1 + $0x108] sm:$0xff] }
  0xff   :  { %1802 = vmatpush1.msra.mxu0 %v287_v45  ;;  %1902 = vmatprep.subr.mxu1 %v708_v46 }
 0x100   :  { %1803 = vmatprep.subr.mxu0 %v267_v47  ;;  %1903 = vmatpush1.msra.mxu1 %v707_v48  ;;  %v163_v47 = vld [vmem:[%s7403_s1 + $0x460] sm:$0xff]  ;;  %v36_v48 = vld [vmem:[%s7403_s1 + $0x68] sm:$0xff] }
 0x101   :  { %1804 = vmatpush1.msra.mxu0 %v266_v49  ;;  %1936 = vmatprep.mubr.f32.mxu1 %v4157_v3 }
 0x102   :  { %1805 = vmatprep.subr.mxu0 %v246_v50  ;;  %1949 = vmatprep.subr.mxu1 %v353_v51  ;;  %v143_v50 = vld [vmem:[%s7403_s1 + $0x3c0] sm:$0xff] }
 0x103   :  { %1806 = vmatpush1.msra.mxu0 %v245_v52  ;;  %3963 = vmatmul.mubr.msk.f32.vlgmr.msra.gmra.mxu1 %vm800_vm1, %v5160_v2  ;;  %v937_v60 = vpop.f32.mrf.mxu0  ;;  %v35_v51 = vld [vmem:[%s7403_s1 + $0x60] sm:$0xff] }
 0x104   :  { %1950 = vmatpush1.msra.mxu1 %v352_v54  ;;  %1807 = vmatprep.subr.mxu0 %v225_v55  ;;  %v5745_v2 = vadd.f32 %v1014_v53, %v937_v60  ;;  %v142_v53 = vld [vmem:[%s7403_s1 + $0x3b8] sm:$0xff]  ;;  %v687_v54 = vld [vmem:[%s7403_s1 + $0x14c0] sm:$0xff]  ;;  %v665_v60 = vld [vmem:[%s7403_s1 + $0x1410] sm:$0xff] }
 0x105   :  { %1951 = vmatprep.subr.mxu1 %v332_v56  ;;  %1808 = vmatpush1.msra.mxu0 %v224_v57  ;;  %v939_v4 = vpop.f32.mrf.mxu0  ;;  %v122_v55 = vld [vmem:[%s7403_s1 + $0x318] sm:$0xff]  ;;  %v121_v57 = vld [vmem:[%s7403_s1 + $0x310] sm:$0xff] }
 0x106   :  { %1952 = vmatpush1.msra.mxu1 %v331_v58  ;;  %1809 = vmatprep.subr.mxu0 %v204_v59  ;;  %v5759_v5 = vadd.f32 %v1016_v62, %v939_v4  ;;  %v686_v56 = vld [vmem:[%s7403_s1 + $0x14b8] sm:$0xff]  ;;  %v101_v59 = vld [vmem:[%s7403_s1 + $0x270] sm:$0xff] }
 0x107   :  { %1953 = vmatprep.subr.mxu1 %v311_v61  ;;  %1810 = vmatpush1.msra.mxu0 %v203_v24  ;;  %v666_v58 = vld [vmem:[%s7403_s1 + $0x1418] sm:$0xff]  ;;  %v100_v61 = vld [vmem:[%s7403_s1 + $0x268] sm:$0xff]  ;;  %v645_v24 = vld [vmem:[%s7403_s1 + $0x1370] sm:$0xff] }
 0x108   :  { %1954 = vmatpush1.msra.mxu1 %v310_v63  ;;  %1811 = vmatprep.subr.mxu0 %v183_v0  ;;  %v80_v63 = vld [vmem:[%s7403_s1 + $0x1c8] sm:$0xff] }
 0x109   :  { %1955 = vmatprep.subr.mxu1 %v290_v1  ;;  %1812 = vmatpush1.msra.mxu0 %v182_v6  ;;  %v943_v16 = vpop.f32.mrf.mxu0  ;;  %v644_v0 = vld [vmem:[%s7403_s1 + $0x1368] sm:$0xff]  ;;  %v79_v1 = vld [vmem:[%s7403_s1 + $0x1c0] sm:$0xff] }
 0x10a   :  { %1956 = vmatpush1.msra.mxu1 %v289_v8  ;;  %1813 = vmatprep.subr.mxu0 %v162_v9  ;;  %v1020_v21 = vpop.f32.mrf.mxu1  ;;  %v624_v6 = vld [vmem:[%s7403_s1 + $0x12c8] sm:$0xff] }
 0x10b   :  { %1957 = vmatprep.subr.mxu1 %v269_v11  ;;  %1814 = vmatpush1.msra.mxu0 %v161_v12  ;;  %v5791_v25 = vadd.f32 %v1020_v21, %v943_v16  ;;  %v945_v26 = vpop.f32.mrf.mxu0  ;;  %v59_v11 = vld [vmem:[%s7403_s1 + $0x120] sm:$0xff]  ;;  %v602_v21 = vld [vmem:[%s7403_s1 + $0x1218] sm:$0xff] }
 0x10c   :  { %1958 = vmatpush1.msra.mxu1 %v268_v13  ;;  %1815 = vmatprep.subr.mxu0 %v141_v14  ;;  %v1022_v29 = vpop.f32.mrf.mxu1  ;;  %v623_v12 = vld [vmem:[%s7403_s1 + $0x12c0] sm:$0xff]  ;;  %v58_v14 = vld [vmem:[%s7403_s1 + $0x118] sm:$0xff] }
 0x10d   :  { %1959 = vmatprep.subr.mxu1 %v248_v15  ;;  %1816 = vmatpush1.msra.mxu0 %v140_v20  ;;  %v5805_v32 = vadd.f32 %v1022_v29, %v945_v26  ;;  %v603_v16 = vld [vmem:[%s7403_s1 + $0x1220] sm:$0xff]  ;;  %v38_v20 = vld [vmem:[%s7403_s1 + $0x78] sm:$0xff]  ;;  %v689_v26 = vld [vmem:[%s7403_s1 + $0x14d0] sm:$0xff] }
 0x10e   :  { %1960 = vmatpush1.msra.mxu1 %v247_v22  ;;  %1817 = vmatprep.subr.mxu0 %v120_v19  ;;  %v37_v22 = vld [vmem:[%s7403_s1 + $0x70] sm:$0xff]  ;;  %v582_v19 = vld [vmem:[%s7403_s1 + $0x1178] sm:$0xff] }
 0x10f   :  { %1961 = vmatprep.subr.mxu1 %v227_v27  ;;  %1818 = vmatpush1.msra.mxu0 %v119_v28  ;;  %v581_v27 = vld [vmem:[%s7403_s1 + $0x1170] sm:$0xff]  ;;  %v688_v28 = vld [vmem:[%s7403_s1 + $0x14c8] sm:$0xff] }
 0x110   :  { %1962 = vmatpush1.msra.mxu1 %v226_v30  ;;  %1819 = vmatprep.subr.mxu0 %v99_v31  ;;  %v1091_v39 = vpop.f32.mrf.mxu1  ;;  %v561_v29 = vld [vmem:[%s7403_s1 + $0x10d0] sm:$0xff]  ;;  %v668_v30 = vld [vmem:[%s7403_s1 + $0x1428] sm:$0xff] }
 0x111   :  { %1963 = vmatprep.subr.mxu1 %v206_v33  ;;  %1820 = vmatpush1.msra.mxu0 %v98_v34  ;;  %v1168_v42 = vpop.f32.mrf.mxu0  ;;  %v560_v31 = vld [vmem:[%s7403_s1 + $0x10c8] sm:$0xff]  ;;  %v667_v33 = vld [vmem:[%s7403_s1 + $0x1420] sm:$0xff] }
 0x112   :  { %1964 = vmatpush1.msra.mxu1 %v205_v35  ;;  %1821 = vmatprep.subr.mxu0 %v78_v36  ;;  %v5837_v45 = vadd.f32 %v1168_v42, %v1091_v39  ;;  %v1093_v46 = vpop.f32.mrf.mxu1  ;;  %v540_v34 = vld [vmem:[%s7403_s1 + $0x1028] sm:$0xff]  ;;  %v647_v35 = vld [vmem:[%s7403_s1 + $0x1380] sm:$0xff]  ;;  %v626_v39 = vld [vmem:[%s7403_s1 + $0x12d8] sm:$0xff] }
 0x113   :  { %1965 = vmatprep.subr.mxu1 %v185_v37  ;;  %1822 = vmatpush1.msra.mxu0 %v77_v38  ;;  %v1170_v49 = vpop.f32.mrf.mxu0  ;;  %v539_v36 = vld [vmem:[%s7403_s1 + $0x1020] sm:$0xff]  ;;  %v646_v37 = vld [vmem:[%s7403_s1 + $0x1378] sm:$0xff] }
 0x114   :  { %1966 = vmatpush1.msra.mxu1 %v184_v40  ;;  %1823 = vmatprep.subr.mxu0 %v57_v41  ;;  %v5851_v52 = vadd.f32 %v1170_v49, %v1093_v46  ;;  %v519_v38 = vld [vmem:[%s7403_s1 + $0xf80] sm:$0xff]  ;;  %v518_v40 = vld [vmem:[%s7403_s1 + $0xf78] sm:$0xff]  ;;  %v625_v41 = vld [vmem:[%s7403_s1 + $0x12d0] sm:$0xff] }
 0x115   :  { %1967 = vmatprep.subr.mxu1 %v164_v43  ;;  %1824 = vmatpush1.msra.mxu0 %v56_v44  ;;  %v498_v42 = vld [vmem:[%s7403_s1 + $0xed8] sm:$0xff]  ;;  %v605_v43 = vld [vmem:[%s7403_s1 + $0x1230] sm:$0xff]  ;;  %v604_v46 = vld [vmem:[%s7403_s1 + $0x1228] sm:$0xff] }
 0x116   :  { %1968 = vmatpush1.msra.mxu1 %v163_v47  ;;  %1825 = vmatprep.subr.mxu0 %v36_v48  ;;  %v497_v44 = vld [vmem:[%s7403_s1 + $0xed0] sm:$0xff]  ;;  %v584_v48 = vld [vmem:[%s7403_s1 + $0x1188] sm:$0xff] }
 0x117   :  { %1969 = vmatprep.subr.mxu1 %v143_v50  ;;  %1826 = vmatpush1.msra.mxu0 %v35_v51  ;;  %v477_v47 = vld [vmem:[%s7403_s1 + $0xe30] sm:$0xff]  ;;  %v476_v49 = vld [vmem:[%s7403_s1 + $0xe28] sm:$0xff]  ;;  %v583_v50 = vld [vmem:[%s7403_s1 + $0x1180] sm:$0xff] }
 0x118   :  { %1970 = vmatpush1.msra.mxu1 %v142_v53  ;;  %1827 = vmatprep.subr.mxu0 %v687_v54  ;;  %v456_v51 = vld [vmem:[%s7403_s1 + $0xd88] sm:$0xff]  ;;  %v563_v53 = vld [vmem:[%s7403_s1 + $0x10e0] sm:$0xff] }
 0x119   :  { %1971 = vmatprep.subr.mxu1 %v122_v55  ;;  %1828 = vmatpush2.msra.mxu0 %v686_v56  ;;  %v1097_v62 = vpop.f32.mrf.mxu1  ;;  %v455_v54 = vld [vmem:[%s7403_s1 + $0xd80] sm:$0xff]  ;;  %v562_v55 = vld [vmem:[%s7403_s1 + $0x10d8] sm:$0xff] }
 0x11a   :  { %1972 = vmatpush1.msra.mxu1 %v121_v57  ;;  %1829 = vmatprep.subr.mxu0 %v666_v58  ;;  %v1174_v4 = vpop.f32.mrf.mxu0  ;;  %v435_v56 = vld [vmem:[%s7403_s1 + $0xce0] sm:$0xff]  ;;  %v542_v57 = vld [vmem:[%s7403_s1 + $0x1038] sm:$0xff] }
 0x11b   :  { %1973 = vmatprep.subr.mxu1 %v101_v59  ;;  %1830 = vmatpush2.msra.mxu0 %v665_v60  ;;  %v5895_v8 = vadd.f32 %v1174_v4, %v1097_v62  ;;  %v1099_v9 = vpop.f32.mrf.mxu1  ;;  %v434_v58 = vld [vmem:[%s7403_s1 + $0xcd8] sm:$0xff]  ;;  %v541_v59 = vld [vmem:[%s7403_s1 + $0x1030] sm:$0xff]  ;;  %v520_v62 = vld [vmem:[%s7403_s1 + $0xf88] sm:$0xff] }
 0x11c   :  { %1974 = vmatpush1.msra.mxu1 %v100_v61  ;;  %1831 = vmatprep.subr.mxu0 %v645_v24  ;;  %v1176_v13 = vpop.f32.mrf.mxu0  ;;  %v414_v60 = vld [vmem:[%s7403_s1 + $0xc38] sm:$0xff]  ;;  %v521_v61 = vld [vmem:[%s7403_s1 + $0xf90] sm:$0xff]  ;;  %v392_v4 = vld [vmem:[%s7403_s1 + $0xb88] sm:$0xff] }
 0x11d   :  { %1975 = vmatprep.subr.mxu1 %v80_v63  ;;  %1832 = vmatpush2.msra.mxu0 %v644_v0  ;;  %v5909_v15 = vadd.f32 %v1176_v13, %v1099_v9  ;;  %v413_v24 = vld [vmem:[%s7403_s1 + $0xc30] sm:$0xff]  ;;  %v500_v0 = vld [vmem:[%s7403_s1 + $0xee8] sm:$0xff]  ;;  %v479_v9 = vld [vmem:[%s7403_s1 + $0xe40] sm:$0xff] }
 0x11e   :  { %1976 = vmatpush1.msra.mxu1 %v79_v1  ;;  %1833 = vmatprep.subr.mxu0 %v624_v6  ;;  %v393_v63 = vld [vmem:[%s7403_s1 + $0xb90] sm:$0xff]  ;;  %v499_v1 = vld [vmem:[%s7403_s1 + $0xee0] sm:$0xff]  ;;  %v372_v6 = vld [vmem:[%s7403_s1 + $0xae8] sm:$0xff] }
 0x11f   :  { %1977 = vmatprep.subr.mxu1 %v59_v11  ;;  %1834 = vmatpush2.msra.mxu0 %v623_v12  ;;  %v371_v11 = vld [vmem:[%s7403_s1 + $0xae0] sm:$0xff]  ;;  %v478_v12 = vld [vmem:[%s7403_s1 + $0xe38] sm:$0xff] }
 0x120   :  { %1978 = vmatpush1.msra.mxu1 %v58_v14  ;;  %1835 = vmatprep.subr.mxu0 %v603_v16  ;;  %v458_v13 = vld [vmem:[%s7403_s1 + $0xd98] sm:$0xff]  ;;  %v457_v16 = vld [vmem:[%s7403_s1 + $0xd90] sm:$0xff] }
 0x121   :  { %1979 = vmatprep.subr.mxu1 %v38_v20  ;;  %1836 = vmatpush2.msra.mxu0 %v602_v21  ;;  %v794_v14 = vld [vmem:[%s7403_s1 + $0x1818] sm:$0xf]  ;;  %v793_v20 = vld [vmem:[%s7403_s1 + $0x1810] sm:$0xf] }
 0x122   :  { %1980 = vmatpush1.msra.mxu1 %v37_v22  ;;  %1837 = vmatprep.subr.mxu0 %v582_v19  ;;  %v437_v21 = vld [vmem:[%s7403_s1 + $0xcf0] sm:$0xff]  ;;  %v436_v19 = vld [vmem:[%s7403_s1 + $0xce8] sm:$0xff] }
 0x123   :  { %1981 = vmatprep.subr.mxu1 %v689_v26  ;;  %1838 = vmatpush2.msra.mxu0 %v581_v27  ;;  %v773_v22 = vld [vmem:[%s7403_s1 + $0x1770] sm:$0xff]  ;;  %v772_v26 = vld [vmem:[%s7403_s1 + $0x1768] sm:$0xff] }
 0x124   :  { %1982 = vmatpush2.msra.mxu1 %v688_v28  ;;  %1839 = vmatprep.subr.mxu0 %v561_v29  ;;  %v416_v27 = vld [vmem:[%s7403_s1 + $0xc48] sm:$0xff]  ;;  %v751_v29 = vld [vmem:[%s7403_s1 + $0x16c0] sm:$0xff] }
 0x125   :  { %1983 = vmatprep.subr.mxu1 %v668_v30  ;;  %1840 = vmatpush2.msra.mxu0 %v560_v31  ;;  %v752_v28 = vld [vmem:[%s7403_s1 + $0x16c8] sm:$0xff]  ;;  %v415_v30 = vld [vmem:[%s7403_s1 + $0xc40] sm:$0xff] }
 0x126   :  { %1984 = vmatpush2.msra.mxu1 %v667_v33  ;;  %1841 = vmatprep.subr.mxu0 %v540_v34  ;;  %v731_v31 = vld [vmem:[%s7403_s1 + $0x1620] sm:$0xff]  ;;  %v730_v34 = vld [vmem:[%s7403_s1 + $0x1618] sm:$0xff] }
 0x127   :  { %1985 = vmatprep.subr.mxu1 %v647_v35  ;;  %1842 = vmatpush2.msra.mxu0 %v539_v36  ;;  %v395_v33 = vld [vmem:[%s7403_s1 + $0xba0] sm:$0xff]  ;;  %v394_v35 = vld [vmem:[%s7403_s1 + $0xb98] sm:$0xff] }
 0x128   :  { %1986 = vmatpush2.msra.mxu1 %v646_v37  ;;  %1843 = vmatprep.subr.mxu0 %v519_v38  ;;  %v710_v36 = vld [vmem:[%s7403_s1 + $0x1578] sm:$0xff]  ;;  %v373_v38 = vld [vmem:[%s7403_s1 + $0xaf0] sm:$0xff] }
 0x129   :  { %1987 = vmatprep.subr.mxu1 %v626_v39  ;;  %1844 = vmatpush2.msra.mxu0 %v518_v40  ;;  %v374_v37 = vld [vmem:[%s7403_s1 + $0xaf8] sm:$0xff]  ;;  %v709_v39 = vld [vmem:[%s7403_s1 + $0x1570] sm:$0xff]  ;;  %v355_v40 = vld [vmem:[%s7403_s1 + $0xa60] sm:$0xff] }
 0x12a   :  { %1988 = vmatpush2.msra.mxu1 %v625_v41  ;;  %1845 = vmatprep.subr.mxu0 %v498_v42  ;;  %v796_v41 = vld [vmem:[%s7403_s1 + $0x1828] sm:$0xf]  ;;  %v354_v42 = vld [vmem:[%s7403_s1 + $0xa58] sm:$0xff] }
 0x12b   :  { %1989 = vmatprep.subr.mxu1 %v605_v43  ;;  %1846 = vmatpush2.msra.mxu0 %v497_v44  ;;  %v334_v43 = vld [vmem:[%s7403_s1 + $0x9b8] sm:$0xff]  ;;  %v6142_v44 = vld [vmem:[%s7404_s0 + $0x10] sm:$0xff] }
 0x12c   :  { %1990 = vmatpush2.msra.mxu1 %v604_v46  ;;  %1847 = vmatprep.subr.mxu0 %v477_v47  ;;  %v333_v46 = vld [vmem:[%s7403_s1 + $0x9b0] sm:$0xff]  ;;  %v774_v47 = vld [vmem:[%s7403_s1 + $0x1778] sm:$0xff] }
 0x12d   :  { %1991 = vmatprep.subr.mxu1 %v584_v48  ;;  %1848 = vmatpush2.msra.mxu0 %v476_v49  ;;  %v313_v48 = vld [vmem:[%s7403_s1 + $0x910] sm:$0xff]  ;;  %v754_v49 = vld [vmem:[%s7403_s1 + $0x16d8] sm:$0xff] }
 0x12e   :  { %1992 = vmatpush2.msra.mxu1 %v583_v50  ;;  %1849 = vmatprep.subr.mxu0 %v456_v51  ;;  %v312_v50 = vld [vmem:[%s7403_s1 + $0x908] sm:$0xff]  ;;  %v753_v51 = vld [vmem:[%s7403_s1 + $0x16d0] sm:$0xff] }
 0x12f   :  { %1993 = vmatprep.subr.mxu1 %v563_v53  ;;  %1850 = vmatpush2.msra.mxu0 %v455_v54  ;;  %v292_v53 = vld [vmem:[%s7403_s1 + $0x868] sm:$0xff]  ;;  %v733_v54 = vld [vmem:[%s7403_s1 + $0x1630] sm:$0xff] }
 0x130   :  { %1994 = vmatpush2.msra.mxu1 %v562_v55  ;;  %1851 = vmatprep.subr.mxu0 %v435_v56  ;;  %v732_v55 = vld [vmem:[%s7403_s1 + $0x1628] sm:$0xff]  ;;  %v291_v56 = vld [vmem:[%s7403_s1 + $0x860] sm:$0xff] }
 0x131   :  { %1995 = vmatprep.subr.mxu1 %v542_v57  ;;  %1852 = vmatpush2.msra.mxu0 %v434_v58  ;;  %v712_v57 = vld [vmem:[%s7403_s1 + $0x1588] sm:$0xff]  ;;  %v711_v58 = vld [vmem:[%s7403_s1 + $0x1580] sm:$0xff] }
 0x132   :  { %1996 = vmatpush2.msra.mxu1 %v541_v59  ;;  %1853 = vmatprep.subr.mxu0 %v414_v60  ;;  %v270_v59 = vld [vmem:[%s7403_s1 + $0x7b8] sm:$0xff]  ;;  %v357_v60 = vld [vmem:[%s7403_s1 + $0xa70] sm:$0xff] }
 0x133   :  { %1997 = vmatprep.subr.mxu1 %v521_v61  ;;  %1854 = vmatpush2.msra.mxu0 %v413_v24  ;;  %v1322_v61 = vpop.f32.mrf.mxu1  ;;  %v356_v24 = vld [vmem:[%s7403_s1 + $0xa68] sm:$0xff] }
 0x134   :  { %1998 = vmatpush2.msra.mxu1 %v520_v62  ;;  %1855 = vmatprep.subr.mxu0 %v393_v63  ;;  %v229_v62 = vld [vmem:[%s7403_s1 + $0x670] sm:$0xff]  ;;  %v336_v63 = vld [vmem:[%s7403_s1 + $0x9c8] sm:$0xff] }
 0x135   :  { %1999 = vmatprep.subr.mxu1 %v500_v0  ;;  %1856 = vmatpush2.msra.mxu0 %v392_v4  ;;  %v228_v0 = vld [vmem:[%s7403_s1 + $0x668] sm:$0xff]  ;;  %v335_v4 = vld [vmem:[%s7403_s1 + $0x9c0] sm:$0xff] }
 0x136   :  { %2000 = vmatpush2.msra.mxu1 %v499_v1  ;;  %1857 = vmatprep.subr.mxu0 %v372_v6  ;;  %v208_v1 = vld [vmem:[%s7403_s1 + $0x5c8] sm:$0xff] }
 0x137   :  { %2001 = vmatprep.subr.mxu1 %v479_v9  ;;  %1858 = vmatpush2.msra.mxu0 %v371_v11  ;;  %v315_v9 = vld [vmem:[%s7403_s1 + $0x920] sm:$0xff] }
 0x138   :  { %1859 = vmatprep.mubr.f32.mxu0 %v5555_v7  ;;  %2002 = vmatpush2.msra.mxu1 %v478_v12  ;;  %v207_v11 = vld [vmem:[%s7403_s1 + $0x5c0] sm:$0xff] }
 0x139   :  { %1860 = vmatmul.mubr.f32.vlgmr.msra.gmra.mxu0 %v5567_v10  ;;  %2003 = vmatprep.subr.mxu1 %v458_v13  ;;  %v1324_v13 = vpop.f32.mrf.mxu1 }
 0x13a   :  { %3965 = vmatprep.subr.msk.mxu0 %vm807_vm0, %v794_v14  ;;  %2004 = vmatpush2.msra.mxu1 %v457_v16  ;;  %v314_v14 = vld [vmem:[%s7403_s1 + $0x918] sm:$0xff]  ;;  %v187_v16 = vld [vmem:[%s7403_s1 + $0x520] sm:$0xff] }
 0x13b   :  { %3966 = vmatpush1.msk.msra.mxu0 %vm807_vm0, %v793_v20  ;;  %2005 = vmatprep.subr.mxu1 %v437_v21  ;;  %v294_v21 = vld [vmem:[%s7403_s1 + $0x878] sm:$0xff] }
 0x13c   :  { %2050 = vmatprep.subr.mxu0 %v773_v22  ;;  %2006 = vmatpush2.msra.mxu1 %v436_v19  ;;  %v186_v22 = vld [vmem:[%s7403_s1 + $0x518] sm:$0xff] }
 0x13d   :  { %2051 = vmatpush1.msra.mxu0 %v772_v26  ;;  %1865 = vmatprep.mubr.f32.mxu0 %v5590_v17  ;;  %v293_v26 = vld [vmem:[%s7403_s1 + $0x870] sm:$0xff] }
 0x13e   :  { %1942 = vmatprep.mubr.f32.mxu1 %v4157_v3  ;;  %2007 = vmatprep.subr.mxu1 %v416_v27  ;;  %v166_v27 = vld [vmem:[%s7403_s1 + $0x478] sm:$0xff] }
 0x13f   :  { %2052 = vmatprep.subr.mxu0 %v752_v28  ;;  %1866 = vmatmul.mubr.f32.gmra.mxu0 %v5606_v18  ;;  %v273_v28 = vld [vmem:[%s7403_s1 + $0x7d0] sm:$0xff] }
 0x140   :  { %3964 = vmatmul.mubr.msk.f32.gmra.mxu1 %vm800_vm1, %v5618_v23  ;;  %2053 = vmatpush1.msra.mxu0 %v751_v29  ;;  %v165_v29 = vld [vmem:[%s7403_s1 + $0x470] sm:$0xff] }
 0x141   :  { %2008 = vmatpush2.msra.mxu1 %v415_v30  ;;  %2054 = vmatprep.subr.mxu0 %v731_v31  ;;  %v272_v30 = vld [vmem:[%s7403_s1 + $0x7c8] sm:$0xff]  ;;  %v145_v31 = vld [vmem:[%s7403_s1 + $0x3d0] sm:$0xff] }
 0x142   :  { %2009 = vmatprep.subr.mxu1 %v395_v33  ;;  %2055 = vmatpush1.msra.mxu0 %v730_v34  ;;  %v252_v34 = vld [vmem:[%s7403_s1 + $0x728] sm:$0xff] }
 0x143   :  { %2010 = vmatpush2.msra.mxu1 %v394_v35  ;;  %2056 = vmatprep.subr.mxu0 %v710_v36  ;;  %v144_v35 = vld [vmem:[%s7403_s1 + $0x3c8] sm:$0xff] }
 0x144   :  { %2011 = vmatprep.subr.mxu1 %v374_v37  ;;  %2013 = vmatprep.mubr.f32.mxu1 %v5555_v7  ;;  %v795_v7 = vld [vmem:[%s7403_s1 + $0x1820] sm:$0xf] }
 0x145   :  { %2012 = vmatpush2.msra.mxu1 %v373_v38  ;;  %2057 = vmatpush1.msra.mxu0 %v709_v39  ;;  %v251_v37 = vld [vmem:[%s7403_s1 + $0x720] sm:$0xff]  ;;  %v124_v38 = vld [vmem:[%s7403_s1 + $0x328] sm:$0xff] }
 0x146   :  { %2090 = vmatprep.mubr.f32.mxu0 %v4157_v3  ;;  %2014 = vmatmul.mubr.f32.vlgmr.msra.gmra.mxu1 %v5567_v10  ;;  %v775_v10 = vld [vmem:[%s7403_s1 + $0x1780] sm:$0xff] }
 0x147   :  { %3967 = vmatmul.mubr.msk.f32.vlgmr.msra.gmra.mxu0 %vm800_vm1, %v6142_v44  ;;  %2103 = vmatprep.subr.mxu0 %v355_v40 }
 0x148   :  { %3969 = vmatprep.subr.msk.mxu1 %vm807_vm0, %v796_v41  ;;  %2104 = vmatpush1.msra.mxu0 %v354_v42  ;;  %v231_v41 = vld [vmem:[%s7403_s1 + $0x680] sm:$0xff] }
 0x149   :  { %3970 = vmatpush1.msk.msra.mxu1 %vm807_vm0, %v795_v7  ;;  %2105 = vmatprep.subr.mxu0 %v334_v43  ;;  %v123_v42 = vld [vmem:[%s7403_s1 + $0x320] sm:$0xff]  ;;  %v230_v43 = vld [vmem:[%s7403_s1 + $0x678] sm:$0xff] }
 0x14a   :  { %2204 = vmatprep.subr.mxu1 %v775_v10  ;;  %2106 = vmatpush1.msra.mxu0 %v333_v46  ;;  %v103_v10 = vld [vmem:[%s7403_s1 + $0x280] sm:$0xff] }
 0x14b   :  { %2205 = vmatpush1.msra.mxu1 %v774_v47  ;;  %2107 = vmatprep.subr.mxu0 %v313_v48  ;;  %v210_v47 = vld [vmem:[%s7403_s1 + $0x5d8] sm:$0xff] }
 0x14c   :  { %2206 = vmatprep.subr.mxu1 %v754_v49  ;;  %2108 = vmatpush1.msra.mxu0 %v312_v50  ;;  %v102_v48 = vld [vmem:[%s7403_s1 + $0x278] sm:$0xff]  ;;  %v209_v49 = vld [vmem:[%s7403_s1 + $0x5d0] sm:$0xff] }
 0x14d   :  { %2207 = vmatpush1.msra.mxu1 %v753_v51  ;;  %2019 = vmatprep.mubr.f32.mxu1 %v5590_v17  ;;  %v271_v17 = vld [vmem:[%s7403_s1 + $0x7c0] sm:$0xff]  ;;  %v82_v50 = vld [vmem:[%s7403_s1 + $0x1d8] sm:$0xff]  ;;  %v189_v51 = vld [vmem:[%s7403_s1 + $0x530] sm:$0xff] }
 0x14e   :  { %2096 = vmatprep.mubr.f32.mxu0 %v4157_v3  ;;  %2109 = vmatprep.subr.mxu0 %v292_v53  ;;  %v81_v53 = vld [vmem:[%s7403_s1 + $0x1d0] sm:$0xff] }
 0x14f   :  { %2208 = vmatprep.subr.mxu1 %v733_v54  ;;  %2020 = vmatmul.mubr.f32.gmra.mxu1 %v5606_v18  ;;  %v250_v18 = vld [vmem:[%s7403_s1 + $0x718] sm:$0xff] }
 0x150   :  { %3968 = vmatmul.mubr.msk.f32.gmra.mxu0 %vm800_vm1, %v5618_v23  ;;  %2209 = vmatpush1.msra.mxu1 %v732_v55  ;;  %v249_v23 = vld [vmem:[%s7403_s1 + $0x710] sm:$0xff]  ;;  %v188_v55 = vld [vmem:[%s7403_s1 + $0x528] sm:$0xff] }
 0x151   :  { %2110 = vmatpush1.msra.mxu0 %v291_v56  ;;  %2210 = vmatprep.subr.mxu1 %v712_v57  ;;  %v61_v56 = vld [vmem:[%s7403_s1 + $0x130] sm:$0xff] }
 0x152   :  { %2111 = vmatprep.subr.mxu0 %v271_v17  ;;  %2211 = vmatpush1.msra.mxu1 %v711_v58  ;;  %v168_v17 = vld [vmem:[%s7403_s1 + $0x488] sm:$0xff] }
 0x153   :  { %2112 = vmatpush1.msra.mxu0 %v270_v59  ;;  %2244 = vmatprep.mubr.f32.mxu1 %v4157_v3  ;;  %v60_v58 = vld [vmem:[%s7403_s1 + $0x128] sm:$0xff] }
 0x154   :  { %2113 = vmatprep.subr.mxu0 %v250_v18  ;;  %2257 = vmatprep.subr.mxu1 %v357_v60  ;;  %v167_v60 = vld [vmem:[%s7403_s1 + $0x480] sm:$0xff] }
 0x155   :  { %2114 = vmatpush1.msra.mxu0 %v249_v23  ;;  %3971 = vmatmul.mubr.msk.f32.vlgmr.msra.gmra.mxu1 %vm800_vm1, %v6142_v44  ;;  %v1245_v6 = vpop.f32.mrf.mxu0  ;;  %v40_v23 = vld [vmem:[%s7403_s1 + $0x88] sm:$0xff] }
 0x156   :  { %2258 = vmatpush1.msra.mxu1 %v356_v24  ;;  %2115 = vmatprep.subr.mxu0 %v229_v62  ;;  %v6234_v12 = vadd.f32 %v1322_v61, %v1245_v6  ;;  %v147_v24 = vld [vmem:[%s7403_s1 + $0x3e0] sm:$0xff]  ;;  %v690_v6 = vld [vmem:[%s7403_s1 + $0x14d8] sm:$0xff] }
 0x157   :  { %2259 = vmatprep.subr.mxu1 %v336_v63  ;;  %2116 = vmatpush1.msra.mxu0 %v228_v0  ;;  %v1247_v20 = vpop.f32.mrf.mxu0  ;;  %v39_v62 = vld [vmem:[%s7403_s1 + $0x80] sm:$0xff]  ;;  %v146_v0 = vld [vmem:[%s7403_s1 + $0x3d8] sm:$0xff] }
 0x158   :  { %2260 = vmatpush1.msra.mxu1 %v335_v4  ;;  %2117 = vmatprep.subr.mxu0 %v208_v1  ;;  %v6248_v19 = vadd.f32 %v1324_v13, %v1247_v20  ;;  %v691_v4 = vld [vmem:[%s7403_s1 + $0x14e0] sm:$0xff]  ;;  %v126_v1 = vld [vmem:[%s7403_s1 + $0x338] sm:$0xff]  ;;  %v105_v13 = vld [vmem:[%s7403_s1 + $0x290] sm:$0xff] }
 0x159   :  { %2261 = vmatprep.subr.mxu1 %v315_v9  ;;  %2118 = vmatpush1.msra.mxu0 %v207_v11  ;;  %v125_v9 = vld [vmem:[%s7403_s1 + $0x330] sm:$0xff]  ;;  %v670_v11 = vld [vmem:[%s7403_s1 + $0x1438] sm:$0xff] }
 0x15a   :  { %7408 = vst [vmem:[#allocation2_spill] sm:$0xff] %v6248_v19  ;;  %2262 = vmatpush1.msra.mxu1 %v314_v14  ;;  %2119 = vmatprep.subr.mxu0 %v187_v16  ;;  %v669_v14 = vld [vmem:[%s7403_s1 + $0x1430] sm:$0xff]  ;;  %v104_v16 = vld [vmem:[%s7403_s1 + $0x288] sm:$0xff] }
 0x15b   :  { %2263 = vmatprep.subr.mxu1 %v294_v21  ;;  %2120 = vmatpush1.msra.mxu0 %v186_v22  ;;  %v1251_v33 = vpop.f32.mrf.mxu0  ;;  %v649_v20 = vld [vmem:[%s7403_s1 + $0x1390] sm:$0xff]  ;;  %v84_v22 = vld [vmem:[%s7403_s1 + $0x1e8] sm:$0xff] }
 0x15c   :  { %2264 = vmatpush1.msra.mxu1 %v293_v26  ;;  %2121 = vmatprep.subr.mxu0 %v166_v27  ;;  %v1328_v36 = vpop.f32.mrf.mxu1  ;;  %v648_v26 = vld [vmem:[%s7403_s1 + $0x1388] sm:$0xff] }
 0x15d   :  { %2265 = vmatprep.subr.mxu1 %v273_v28  ;;  %2122 = vmatpush1.msra.mxu0 %v165_v29  ;;  %v6280_v39 = vadd.f32 %v1328_v36, %v1251_v33  ;;  %v1253_v40 = vpop.f32.mrf.mxu0  ;;  %v83_v28 = vld [vmem:[%s7403_s1 + $0x1e0] sm:$0xff]  ;;  %v628_v29 = vld [vmem:[%s7403_s1 + $0x12e8] sm:$0xff]  ;;  %v62_v36 = vld [vmem:[%s7403_s1 + $0x138] sm:$0xff] }
 0x15e   :  { %2266 = vmatpush1.msra.mxu1 %v272_v30  ;;  %2123 = vmatprep.subr.mxu0 %v145_v31  ;;  %v1330_v7 = vpop.f32.mrf.mxu1  ;;  %v63_v33 = vld [vmem:[%s7403_s1 + $0x140] sm:$0xff] }
 0x15f   :  { %7409 = vst [vmem:[#allocation3_spill] sm:$0xff] %v6280_v39  ;;  %2267 = vmatprep.subr.mxu1 %v252_v34  ;;  %2124 = vmatpush1.msra.mxu0 %v144_v35  ;;  %v6294_v46 = vadd.f32 %v1330_v7, %v1253_v40  ;;  %v627_v34 = vld [vmem:[%s7403_s1 + $0x12e0] sm:$0xff]  ;;  %v42_v40 = vld [vmem:[%s7403_s1 + $0x98] sm:$0xff] }
 0x160   :  { %2268 = vmatpush1.msra.mxu1 %v251_v37  ;;  %2125 = vmatprep.subr.mxu0 %v124_v38  ;;  %v607_v37 = vld [vmem:[%s7403_s1 + $0x1240] sm:$0xff]  ;;  %v586_v7 = vld [vmem:[%s7403_s1 + $0x1198] sm:$0xff] }
 0x161   :  { %7410 = vst [vmem:[#allocation4_spill] sm:$0xff] %v6294_v46  ;;  %2269 = vmatprep.subr.mxu1 %v231_v41  ;;  %2126 = vmatpush1.msra.mxu0 %v123_v42  ;;  %v606_v41 = vld [vmem:[%s7403_s1 + $0x1238] sm:$0xff]  ;;  %v41_v42 = vld [vmem:[%s7403_s1 + $0x90] sm:$0xff] }
 0x162   :  { %2270 = vmatpush1.msra.mxu1 %v230_v43  ;;  %2127 = vmatprep.subr.mxu0 %v103_v10  ;;  %v1399_v54 = vpop.f32.mrf.mxu1  ;;  %v693_v43 = vld [vmem:[%s7403_s1 + $0x14f0] sm:$0xff] }
 0x163   :  { %2271 = vmatprep.subr.mxu1 %v210_v47  ;;  %2128 = vmatpush1.msra.mxu0 %v102_v48  ;;  %v1476_v57 = vpop.f32.mrf.mxu0  ;;  %v585_v10 = vld [vmem:[%s7403_s1 + $0x1190] sm:$0xff]  ;;  %v692_v47 = vld [vmem:[%s7403_s1 + $0x14e8] sm:$0xff] }
 0x164   :  { %2272 = vmatpush1.msra.mxu1 %v209_v49  ;;  %2129 = vmatprep.subr.mxu0 %v82_v50  ;;  %v6326_v59 = vadd.f32 %v1476_v57, %v1399_v54  ;;  %v1401_v18 = vpop.f32.mrf.mxu1  ;;  %v565_v48 = vld [vmem:[%s7403_s1 + $0x10f0] sm:$0xff]  ;;  %v672_v49 = vld [vmem:[%s7403_s1 + $0x1448] sm:$0xff]  ;;  %v651_v54 = vld [vmem:[%s7403_s1 + $0x13a0] sm:$0xff] }
 0x165   :  { %2273 = vmatprep.subr.mxu1 %v189_v51  ;;  %2130 = vmatpush1.msra.mxu0 %v81_v53  ;;  %v1478_v61 = vpop.f32.mrf.mxu0  ;;  %v564_v50 = vld [vmem:[%s7403_s1 + $0x10e8] sm:$0xff]  ;;  %v671_v51 = vld [vmem:[%s7403_s1 + $0x1440] sm:$0xff] }
 0x166   :  { %7411 = vst [vmem:[#allocation5_spill] sm:$0xff] %v6326_v59  ;;  %2274 = vmatpush1.msra.mxu1 %v188_v55  ;;  %2131 = vmatprep.subr.mxu0 %v61_v56  ;;  %v6340_v63 = vadd.f32 %v1478_v61, %v1401_v18  ;;  %v544_v53 = vld [vmem:[%s7403_s1 + $0x1048] sm:$0xff]  ;;  %v543_v55 = vld [vmem:[%s7403_s1 + $0x1040] sm:$0xff]  ;;  %v650_v56 = vld [vmem:[%s7403_s1 + $0x1398] sm:$0xff] }
 0x167   :  { %2275 = vmatprep.subr.mxu1 %v168_v17  ;;  %2132 = vmatpush1.msra.mxu0 %v60_v58  ;;  %v523_v57 = vld [vmem:[%s7403_s1 + $0xfa0] sm:$0xff]  ;;  %v630_v17 = vld [vmem:[%s7403_s1 + $0x12f8] sm:$0xff]  ;;  %v629_v18 = vld [vmem:[%s7403_s1 + $0x12f0] sm:$0xff] }
 0x168   :  { %2276 = vmatpush1.msra.mxu1 %v167_v60  ;;  %2133 = vmatprep.subr.mxu0 %v40_v23  ;;  %v522_v58 = vld [vmem:[%s7403_s1 + $0xf98] sm:$0xff]  ;;  %v609_v23 = vld [vmem:[%s7403_s1 + $0x1250] sm:$0xff] }
 0x169   :  { %2277 = vmatprep.subr.mxu1 %v147_v24  ;;  %2134 = vmatpush1.msra.mxu0 %v39_v62  ;;  %v502_v60 = vld [vmem:[%s7403_s1 + $0xef8] sm:$0xff]  ;;  %v501_v61 = vld [vmem:[%s7403_s1 + $0xef0] sm:$0xff]  ;;  %v608_v24 = vld [vmem:[%s7403_s1 + $0x1248] sm:$0xff] }
 0x16a   :  { %2278 = vmatpush1.msra.mxu1 %v146_v0  ;;  %2135 = vmatprep.subr.mxu0 %v691_v4  ;;  %v481_v62 = vld [vmem:[%s7403_s1 + $0xe50] sm:$0xff]  ;;  %v588_v0 = vld [vmem:[%s7403_s1 + $0x11a8] sm:$0xff] }
 0x16b   :  { %2279 = vmatprep.subr.mxu1 %v126_v1  ;;  %2136 = vmatpush2.msra.mxu0 %v690_v6  ;;  %v1405_v21 = vpop.f32.mrf.mxu1  ;;  %v480_v4 = vld [vmem:[%s7403_s1 + $0xe48] sm:$0xff]  ;;  %v587_v1 = vld [vmem:[%s7403_s1 + $0x11a0] sm:$0xff] }
 0x16c   :  { %2280 = vmatpush1.msra.mxu1 %v125_v9  ;;  %2137 = vmatprep.subr.mxu0 %v670_v11  ;;  %v1482_v27 = vpop.f32.mrf.mxu0  ;;  %v460_v6 = vld [vmem:[%s7403_s1 + $0xda8] sm:$0xff]  ;;  %v567_v9 = vld [vmem:[%s7403_s1 + $0x1100] sm:$0xff] }
 0x16d   :  { %2281 = vmatprep.subr.mxu1 %v105_v13  ;;  %2138 = vmatpush2.msra.mxu0 %v669_v14  ;;  %v6384_v30 = vadd.f32 %v1482_v27, %v1405_v21  ;;  %v1407_v31 = vpop.f32.mrf.mxu1  ;;  %v459_v11 = vld [vmem:[%s7403_s1 + $0xda0] sm:$0xff]  ;;  %v566_v13 = vld [vmem:[%s7403_s1 + $0x10f8] sm:$0xff]  ;;  %v545_v21 = vld [vmem:[%s7403_s1 + $0x1050] sm:$0xff] }
 0x16e   :  { %2282 = vmatpush1.msra.mxu1 %v104_v16  ;;  %2139 = vmatprep.subr.mxu0 %v649_v20  ;;  %v1484_v35 = vpop.f32.mrf.mxu0  ;;  %v439_v14 = vld [vmem:[%s7403_s1 + $0xd00] sm:$0xff]  ;;  %v546_v16 = vld [vmem:[%s7403_s1 + $0x1058] sm:$0xff]  ;;  %v417_v27 = vld [vmem:[%s7403_s1 + $0xc50] sm:$0xff] }
 0x16f   :  { %7412 = vst [vmem:[#allocation6_spill] sm:$0xff] %v6384_v30  ;;  %2283 = vmatprep.subr.mxu1 %v84_v22  ;;  %2140 = vmatpush2.msra.mxu0 %v648_v26  ;;  %v6398_v38 = vadd.f32 %v1484_v35, %v1407_v31  ;;  %v438_v20 = vld [vmem:[%s7403_s1 + $0xcf8] sm:$0xff]  ;;  %v525_v26 = vld [vmem:[%s7403_s1 + $0xfb0] sm:$0xff]  ;;  %v504_v31 = vld [vmem:[%s7403_s1 + $0xf08] sm:$0xff] }
 0x170   :  { %2284 = vmatpush1.msra.mxu1 %v83_v28  ;;  %2141 = vmatprep.subr.mxu0 %v628_v29  ;;  %v418_v22 = vld [vmem:[%s7403_s1 + $0xc58] sm:$0xff]  ;;  %v524_v28 = vld [vmem:[%s7403_s1 + $0xfa8] sm:$0xff]  ;;  %v397_v29 = vld [vmem:[%s7403_s1 + $0xbb0] sm:$0xff] }
 0x171   :  { %7413 = vst [vmem:[#allocation7_spill] sm:$0xff] %v6398_v38  ;;  %2285 = vmatprep.subr.mxu1 %v63_v33  ;;  %2142 = vmatpush2.msra.mxu0 %v627_v34  ;;  %v396_v33 = vld [vmem:[%s7403_s1 + $0xba8] sm:$0xff]  ;;  %v503_v34 = vld [vmem:[%s7403_s1 + $0xf00] sm:$0xff] }
 0x172   :  { %2286 = vmatpush1.msra.mxu1 %v62_v36  ;;  %2143 = vmatprep.subr.mxu0 %v607_v37  ;;  %v376_v35 = vld [vmem:[%s7403_s1 + $0xb08] sm:$0xff]  ;;  %v483_v36 = vld [vmem:[%s7403_s1 + $0xe60] sm:$0xff] }
 0x173   :  { %2287 = vmatprep.subr.mxu1 %v42_v40  ;;  %2144 = vmatpush2.msra.mxu0 %v606_v41  ;;  %v375_v37 = vld [vmem:[%s7403_s1 + $0xb00] sm:$0xff]  ;;  %v482_v40 = vld [vmem:[%s7403_s1 + $0xe58] sm:$0xff] }
 0x174   :  { %2288 = vmatpush1.msra.mxu1 %v41_v42  ;;  %2145 = vmatprep.subr.mxu0 %v586_v7  ;;  %v462_v41 = vld [vmem:[%s7403_s1 + $0xdb8] sm:$0xff]  ;;  %v461_v7 = vld [vmem:[%s7403_s1 + $0xdb0] sm:$0xff] }
 0x175   :  { %2289 = vmatprep.subr.mxu1 %v693_v43  ;;  %2146 = vmatpush2.msra.mxu0 %v585_v10  ;;  %v798_v42 = vld [vmem:[%s7403_s1 + $0x1838] sm:$0xf]  ;;  %v6553_v43 = vld [vmem:[%s7404_s0 + $0x8] sm:$0xff]  ;;  %v797_v10 = vld [vmem:[%s7403_s1 + $0x1830] sm:$0xf] }
 0x176   :  { %2290 = vmatpush2.msra.mxu1 %v692_v47  ;;  %2147 = vmatprep.subr.mxu0 %v565_v48  ;;  %v441_v47 = vld [vmem:[%s7403_s1 + $0xd10] sm:$0xff]  ;;  %v6565_v48 = vld [vmem:[%s7404_s0] sm:$0xff] }
 0x177   :  { %2291 = vmatprep.subr.mxu1 %v672_v49  ;;  %2148 = vmatpush2.msra.mxu0 %v564_v50  ;;  %v777_v49 = vld [vmem:[%s7403_s1 + $0x1790] sm:$0xff]  ;;  %v440_v50 = vld [vmem:[%s7403_s1 + $0xd08] sm:$0xff] }
 0x178   :  { %2292 = vmatpush2.msra.mxu1 %v671_v51  ;;  %2149 = vmatprep.subr.mxu0 %v544_v53  ;;  %v776_v51 = vld [vmem:[%s7403_s1 + $0x1788] sm:$0xff] }
 0x179   :  { %2293 = vmatprep.subr.mxu1 %v651_v54  ;;  %2150 = vmatpush2.msra.mxu0 %v543_v55  ;;  %v420_v53 = vld [vmem:[%s7403_s1 + $0xc68] sm:$0xff]  ;;  %v6588_v55 = vld [vmem:[%s7404_s0 + $0x20] sm:$0xf] }
 0x17a   :  { %2294 = vmatpush2.msra.mxu1 %v650_v56  ;;  %2151 = vmatprep.subr.mxu0 %v523_v57  ;;  %v756_v54 = vld [vmem:[%s7403_s1 + $0x16e8] sm:$0xff]  ;;  %v755_v56 = vld [vmem:[%s7403_s1 + $0x16e0] sm:$0xff] }
 0x17b   :  { %2295 = vmatprep.subr.mxu1 %v630_v17  ;;  %2152 = vmatpush2.msra.mxu0 %v522_v58  ;;  %v419_v57 = vld [vmem:[%s7403_s1 + $0xc60] sm:$0xff]  ;;  %v6604_v58 = vld [vmem:[%s7404_s0 + $0x18] sm:$0xf] }
 0x17c   :  { %2296 = vmatpush2.msra.mxu1 %v629_v18  ;;  %2153 = vmatprep.subr.mxu0 %v502_v60  ;;  %v735_v17 = vld [vmem:[%s7403_s1 + $0x1640] sm:$0xff]  ;;  %v734_v60 = vld [vmem:[%s7403_s1 + $0x1638] sm:$0xff] }
 0x17d   :  { %2297 = vmatprep.subr.mxu1 %v609_v23  ;;  %2154 = vmatpush2.msra.mxu0 %v501_v61  ;;  %v399_v18 = vld [vmem:[%s7403_s1 + $0xbc0] sm:$0xff]  ;;  %v6616_v23 = vld [vmem:[%s7404_s0 + $0x28] sm:$0xf]  ;;  %v398_v61 = vld [vmem:[%s7403_s1 + $0xbb8] sm:$0xff] }
 0x17e   :  { %2298 = vmatpush2.msra.mxu1 %v608_v24  ;;  %2155 = vmatprep.subr.mxu0 %v481_v62  ;;  %v714_v24 = vld [vmem:[%s7403_s1 + $0x1598] sm:$0xff] }
 0x17f   :  { %2299 = vmatprep.subr.mxu1 %v588_v0  ;;  %2156 = vmatpush2.msra.mxu0 %v480_v4  ;;  %v378_v62 = vld [vmem:[%s7403_s1 + $0xb18] sm:$0xff]  ;;  %v377_v0 = vld [vmem:[%s7403_s1 + $0xb10] sm:$0xff] }
 0x180   :  { %2300 = vmatpush2.msra.mxu1 %v587_v1  ;;  %2157 = vmatprep.subr.mxu0 %v460_v6  ;;  %v713_v4 = vld [vmem:[%s7403_s1 + $0x1590] sm:$0xff]  ;;  %v694_v1 = vld [vmem:[%s7403_s1 + $0x14f8] sm:$0xff]  ;;  %v799_v6 = vld [vmem:[%s7403_s1 + $0x1840] sm:$0xf] }
 0x181   :  { %2301 = vmatprep.subr.mxu1 %v567_v9  ;;  %2158 = vmatpush2.msra.mxu0 %v459_v11  ;;  %v358_v9 = vld [vmem:[%s7403_s1 + $0xa78] sm:$0xff]  ;;  %v673_v11 = vld [vmem:[%s7403_s1 + $0x1450] sm:$0xff] }
 0x182   :  { %2302 = vmatpush2.msra.mxu1 %v566_v13  ;;  %2159 = vmatprep.subr.mxu0 %v439_v14  ;;  %v778_v13 = vld [vmem:[%s7403_s1 + $0x1798] sm:$0xff]  ;;  %v337_v14 = vld [vmem:[%s7403_s1 + $0x9d0] sm:$0xff] }
 0x183   :  { %2303 = vmatprep.subr.mxu1 %v546_v16  ;;  %2160 = vmatpush2.msra.mxu0 %v438_v20  ;;  %v652_v16 = vld [vmem:[%s7403_s1 + $0x13a8] sm:$0xff]  ;;  %v757_v20 = vld [vmem:[%s7403_s1 + $0x16f0] sm:$0xff] }
 0x184   :  { %2304 = vmatpush2.msra.mxu1 %v545_v21  ;;  %2161 = vmatprep.subr.mxu0 %v418_v22  ;;  %v316_v21 = vld [vmem:[%s7403_s1 + $0x928] sm:$0xff]  ;;  %v631_v22 = vld [vmem:[%s7403_s1 + $0x1300] sm:$0xff] }
 0x185   :  { %2305 = vmatprep.subr.mxu1 %v525_v26  ;;  %2162 = vmatpush2.msra.mxu0 %v417_v27  ;;  %v736_v26 = vld [vmem:[%s7403_s1 + $0x1648] sm:$0xff]  ;;  %v295_v27 = vld [vmem:[%s7403_s1 + $0x880] sm:$0xff] }
 0x186   :  { %2306 = vmatpush2.msra.mxu1 %v524_v28  ;;  %2163 = vmatprep.subr.mxu0 %v397_v29  ;;  %v715_v28 = vld [vmem:[%s7403_s1 + $0x15a0] sm:$0xff]  ;;  %v610_v29 = vld [vmem:[%s7403_s1 + $0x1258] sm:$0xff] }
 0x187   :  { %2307 = vmatprep.subr.mxu1 %v504_v31  ;;  %2164 = vmatpush2.msra.mxu0 %v396_v33  ;;  %v274_v31 = vld [vmem:[%s7403_s1 + $0x7d8] sm:$0xff]  ;;  %v589_v33 = vld [vmem:[%s7403_s1 + $0x11b0] sm:$0xff] }
 0x188   :  { %2308 = vmatpush2.msra.mxu1 %v503_v34  ;;  %2165 = vmatprep.subr.mxu0 %v376_v35  ;;  %v6698_v34 = vld [vmem:[%s7405_s3 + $0xb0] sm:$0xff] }
 0x189   :  { %2309 = vmatprep.subr.mxu1 %v483_v36  ;;  %2166 = vmatpush2.msra.mxu0 %v375_v37  ;;  %v253_v35 = vld [vmem:[%s7403_s1 + $0x730] sm:$0xff]  ;;  %v1630_v36 = vpop.f32.mrf.mxu1  ;;  %v6708_v37 = vld [vmem:[%s7405_s3 + $0xa8] sm:$0xff] }
 0x18a   :  { %2167 = vmatprep.mubr.f32.mxu0 %v6553_v43  ;;  %2310 = vmatpush2.msra.mxu1 %v482_v40  ;;  %v568_v40 = vld [vmem:[%s7403_s1 + $0x1108] sm:$0xff] }
 0x18b   :  { %2168 = vmatmul.mubr.f32.vlgmr.msra.gmra.mxu0 %v6565_v48  ;;  %2311 = vmatprep.subr.mxu1 %v462_v41  ;;  %v6717_v41 = vld [vmem:[%s7405_s3 + $0x78] sm:$0xff] }
 0x18c   :  { %3973 = vmatprep.subr.msk.mxu0 %vm807_vm0, %v798_v42  ;;  %2312 = vmatpush2.msra.mxu1 %v461_v7  ;;  %v6727_v42 = vld [vmem:[%s7405_s3 + $0x70] sm:$0xff]  ;;  %v547_v7 = vld [vmem:[%s7403_s1 + $0x1060] sm:$0xff] }
 0x18d   :  { %3974 = vmatpush1.msk.msra.mxu0 %vm807_vm0, %v797_v10  ;;  %2313 = vmatprep.subr.mxu1 %v441_v47  ;;  %v6736_v47 = vld [vmem:[%s7405_s3 + $0x40] sm:$0xff] }
 0x18e   :  { %2358 = vmatprep.subr.mxu0 %v777_v49  ;;  %2314 = vmatpush2.msra.mxu1 %v440_v50  ;;  %v211_v49 = vld [vmem:[%s7403_s1 + $0x5e0] sm:$0xff] }
 0x18f   :  { %2359 = vmatpush1.msra.mxu0 %v776_v51  ;;  %2173 = vmatprep.mubr.f32.mxu0 %v6588_v55  ;;  %v1632_v51 = vpop.f32.mrf.mxu1 }
 0x190   :  { %2250 = vmatprep.mubr.f32.mxu1 %v4157_v3  ;;  %2315 = vmatprep.subr.mxu1 %v420_v53  ;;  %v6747_v53 = vld [vmem:[%s7405_s3 + $0x38] sm:$0xff] }
 0x191   :  { %2360 = vmatprep.subr.mxu0 %v756_v54  ;;  %2174 = vmatmul.mubr.f32.gmra.mxu0 %v6604_v58  ;;  %v526_v54 = vld [vmem:[%s7403_s1 + $0xfb8] sm:$0xff] }
 0x192   :  { %3972 = vmatmul.mubr.msk.f32.gmra.mxu1 %vm800_vm1, %v6616_v23  ;;  %2361 = vmatpush1.msra.mxu0 %v755_v56 }
 0x193   :  { %2316 = vmatpush2.msra.mxu1 %v419_v57  ;;  %2362 = vmatprep.subr.mxu0 %v735_v17  ;;  %v6756_v57 = vld [vmem:[%s7405_s3 + $0x8] sm:$0xff]  ;;  %v190_v17 = vld [vmem:[%s7403_s1 + $0x538] sm:$0xff] }
 0x194   :  { %2317 = vmatprep.subr.mxu1 %v399_v18  ;;  %2363 = vmatpush1.msra.mxu0 %v734_v60  ;;  %v6767_v60 = vld [vmem:[%s7405_s3] sm:$0xff] }
 0x195   :  { %2318 = vmatpush2.msra.mxu1 %v398_v61  ;;  %2364 = vmatprep.subr.mxu0 %v714_v24  ;;  %v6776_v61 = vld [vmem:[%s7406_s2] sm:$0xff] }
 0x196   :  { %2319 = vmatprep.subr.mxu1 %v378_v62  ;;  %2321 = vmatprep.mubr.f32.mxu1 %v6553_v43  ;;  %v6782_v24 = vld [vmem:[%s7405_s3 + $0xc0] sm:$0xff]  ;;  %v169_v62 = vld [vmem:[%s7403_s1 + $0x490] sm:$0xff] }
 0x197   :  { %2320 = vmatpush2.msra.mxu1 %v377_v0  ;;  %2365 = vmatpush1.msra.mxu0 %v713_v4  ;;  %v6792_v4 = vld [vmem:[%s7405_s3 + $0xb8] sm:$0xff] }
 0x198   :  { %2398 = vmatprep.mubr.f32.mxu0 %v4157_v3  ;;  %2322 = vmatmul.mubr.f32.vlgmr.msra.gmra.mxu1 %v6565_v48 }
 0x199   :  { %3975 = vmatmul.mubr.msk.f32.vlgmr.msra.gmra.mxu0 %vm800_vm1, %v6142_v44  ;;  %4018 = vmatprep.subr.mxu0 %v694_v1  ;;  %v484_v1 = vld [vmem:[%s7403_s1 + $0xe68] sm:$0xff] }
 0x19a   :  { %4087 = vmatprep.subr.msk.mxu1 %vm807_vm0, %v799_v6  ;;  %4019 = vmatpush3.msra.mxu0 %v358_v9  ;;  %v6802_v9 = vld [vmem:[%s7405_s3 + $0x88] sm:$0xff] }
 0x19b   :  { %4088 = vmatpush3.msk.msra.mxu1 %vm807_vm0, %v799_v6  ;;  %4020 = vmatprep.subr.mxu0 %v673_v11  ;;  %v148_v11 = vld [vmem:[%s7403_s1 + $0x3e8] sm:$0xff] }
 0x19c   :  { %4089 = vmatprep.subr.mxu1 %v778_v13  ;;  %4021 = vmatpush3.msra.mxu0 %v337_v14 }
 0x19d   :  { %4090 = vmatpush3.msra.mxu1 %v778_v13  ;;  %4022 = vmatprep.subr.mxu0 %v652_v16  ;;  %v6813_v16 = vld [vmem:[%s7405_s3 + $0x80] sm:$0xff] }
 0x19e   :  { %4091 = vmatprep.subr.mxu1 %v757_v20  ;;  %4023 = vmatpush3.msra.mxu0 %v316_v21  ;;  %v463_v21 = vld [vmem:[%s7403_s1 + $0xdc0] sm:$0xff] }
 0x19f   :  { %4092 = vmatpush3.msra.mxu1 %v757_v20  ;;  %2327 = vmatprep.mubr.f32.mxu1 %v6588_v55 }
 0x1a0   :  { %2404 = vmatprep.mubr.f32.mxu0 %v4157_v3  ;;  %4024 = vmatprep.subr.mxu0 %v631_v22  ;;  %v6822_v22 = vld [vmem:[%s7406_s2 + $0x8] sm:$0xf] }
 0x1a1   :  { %4093 = vmatprep.subr.mxu1 %v736_v26  ;;  %2328 = vmatmul.mubr.f32.gmra.mxu1 %v6604_v58 }
 0x1a2   :  { %3976 = vmatmul.mubr.msk.f32.gmra.mxu0 %vm800_vm1, %v6616_v23  ;;  %4094 = vmatpush3.msra.mxu1 %v736_v26 }
 0x1a3   :  { %4025 = vmatpush3.msra.mxu0 %v295_v27  ;;  %4095 = vmatprep.subr.mxu1 %v715_v28  ;;  %v6830_v27 = vld [vmem:[%s7405_s3 + $0x50] sm:$0xff] }
 0x1a4   :  { %4026 = vmatprep.subr.mxu0 %v610_v29  ;;  %4096 = vmatpush3.msra.mxu1 %v715_v28  ;;  %v127_v28 = vld [vmem:[%s7403_s1 + $0x340] sm:$0xff]  ;;  %v6840_v29 = vld [vmem:[%s7405_s3 + $0x48] sm:$0xff] }
 0x1a5   :  { %4027 = vmatpush3.msra.mxu0 %v274_v31  ;;  %4097 = vmatprep.mubr.msk.f32.mxu1 %vm800_vm1, %v6142_v44  ;;  %v232_v44 = vld [vmem:[%s7403_s1 + $0x688] sm:$0xff]  ;;  %v442_v31 = vld [vmem:[%s7403_s1 + $0xd18] sm:$0xff] }
 0x1a6   :  { %4028 = vmatprep.subr.mxu0 %v589_v33  ;;  %2622 = vmatprep.subr.mxu1 %v6698_v34  ;;  %v6850_v33 = vld [vmem:[%s7405_s3 + $0x18] sm:$0xff] }
 0x1a7   :  { %4029 = vmatpush3.msra.mxu0 %v253_v35  ;;  %4098 = vmatmul.mubr.msk.f32.vlgmr.msra.gmra.mxu1 %vm800_vm1, %v6616_v23  ;;  %v1553_v10 = vpop.f32.mrf.mxu0  ;;  %v505_v23 = vld [vmem:[%s7403_s1 + $0xf10] sm:$0xff]  ;;  %v106_v35 = vld [vmem:[%s7403_s1 + $0x298] sm:$0xff] }
 0x1a8   :  { %2623 = vmatpush1.msra.mxu1 %v6708_v37  ;;  %4030 = vmatprep.subr.mxu0 %v568_v40  ;;  %v6741_v50 = vadd.f32 %v1630_v36, %v1553_v10  ;;  %v6859_v40 = vld [vmem:[%s7405_s3 + $0x10] sm:$0xff] }
 0x1a9   :  { %2624 = vmatprep.subr.mxu1 %v6717_v41  ;;  %4031 = vmatpush3.msra.mxu0 %v232_v44  ;;  %v1555_v56 = vpop.f32.mrf.mxu0 }
 0x1aa   :  { %2625 = vmatpush1.msra.mxu1 %v6727_v42  ;;  %4032 = vmatprep.subr.mxu0 %v547_v7  ;;  %v6761_v18 = vadd.f32 %v1632_v51, %v1555_v56  ;;  %v421_v7 = vld [vmem:[%s7403_s1 + $0xc70] sm:$0xff] }
 0x1ab   :  { %2626 = vmatprep.subr.mxu1 %v6736_v47  ;;  %4033 = vmatpush3.msra.mxu0 %v211_v49  ;;  %v6871_v51 = vld [vmem:[%s7405_s3 + $0xd0] sm:$0xff] }
 0x1ac   :  { %7414 = vst [vmem:[#allocation8_spill] sm:$0xff] %v6761_v18  ;;  %2627 = vmatpush1.msra.mxu1 %v6747_v53  ;;  %4034 = vmatprep.subr.mxu0 %v526_v54  ;;  %v85_v54 = vld [vmem:[%s7403_s1 + $0x1f0] sm:$0xff] }
 0x1ad   :  { %2628 = vmatprep.subr.mxu1 %v6756_v57  ;;  %4035 = vmatpush3.msra.mxu0 %v190_v17  ;;  %v1559_v0 = vpop.f32.mrf.mxu0  ;;  %v6881_v17 = vld [vmem:[%s7405_s3 + $0xc8] sm:$0xff] }
 0x1ae   :  { %2629 = vmatpush1.msra.mxu1 %v6767_v60  ;;  %2662 = vmatprep.mubr.f32.mxu1 %v4157_v3  ;;  %v1636_v6 = vpop.f32.mrf.mxu1 }
 0x1af   :  { %4036 = vmatprep.subr.mxu0 %v505_v23  ;;  %3980 = vmatmul.mubr.msk.f32.vlgmr.msra.gmra.mxu1 %vm2591_vm2, %v6776_v61  ;;  %v6807_v13 = vadd.f32 %v1636_v6, %v1559_v0  ;;  %v1561_v14 = vpop.f32.mrf.mxu0  ;;  %v400_v23 = vld [vmem:[%s7403_s1 + $0xbc8] sm:$0xff]  ;;  %v6893_v0 = vld [vmem:[%s7405_s3 + $0x98] sm:$0xff]  ;;  %v6902_v6 = vld [vmem:[%s7405_s3 + $0x90] sm:$0xff] }
 0x1b0   :  { %2699 = vmatprep.subr.mxu1 %v6782_v24  ;;  %4037 = vmatpush3.msra.mxu0 %v169_v62  ;;  %v1638_v20 = vpop.f32.mrf.mxu1 }
 0x1b1   :  { %7415 = vst [vmem:[#allocation9_spill] sm:$0xff] %v6807_v13  ;;  %2700 = vmatpush1.msra.mxu1 %v6792_v4  ;;  %4038 = vmatprep.subr.mxu0 %v484_v1  ;;  %v6824_v26 = vadd.f32 %v1638_v20, %v1561_v14  ;;  %v64_v1 = vld [vmem:[%s7403_s1 + $0x148] sm:$0xff]  ;;  %v6912_v14 = vld [vmem:[%s7405_s3 + $0x60] sm:$0xff] }
 0x1b2   :  { %2701 = vmatprep.subr.mxu1 %v6802_v9  ;;  %4039 = vmatpush3.msra.mxu0 %v148_v11  ;;  %v379_v11 = vld [vmem:[%s7403_s1 + $0xb20] sm:$0xff] }
 0x1b3   :  { %7416 = vst [vmem:[#allocation10_spill] sm:$0xff] %v6824_v26  ;;  %2668 = vmatprep.mubr.f32.mxu1 %v4157_v3  ;;  %2702 = vmatpush1.msra.mxu1 %v6813_v16  ;;  %v43_v20 = vld [vmem:[%s7403_s1 + $0xa0] sm:$0xff] }
 0x1b4   :  { %4040 = vmatprep.subr.mxu0 %v463_v21  ;;  %3981 = vmatmul.mubr.msk.f32.gmra.mxu1 %vm2591_vm2, %v6822_v22  ;;  %v1707_v36 = vpop.f32.mrf.mxu1  ;;  %v6922_v21 = vld [vmem:[%s7405_s3 + $0x58] sm:$0xff] }
 0x1b5   :  { %2703 = vmatprep.subr.mxu1 %v6830_v27  ;;  %4041 = vmatpush3.msra.mxu0 %v127_v28  ;;  %v1784_v44 = vpop.f32.mrf.mxu0 }
 0x1b6   :  { %2704 = vmatpush1.msra.mxu1 %v6840_v29  ;;  %4042 = vmatprep.subr.mxu0 %v442_v31  ;;  %v6865_v10 = vadd.f32 %v1784_v44, %v1707_v36  ;;  %v1709_v49 = vpop.f32.mrf.mxu1  ;;  %v6929_v31 = vld [vmem:[%s7405_s3 + $0x28] sm:$0xff]  ;;  %v6935_v36 = vld [vmem:[%s7405_s3 + $0xd8] sm:$0xff]  ;;  %v6940_v44 = vld [vmem:[%s7405_s3 + $0x20] sm:$0xff] }
 0x1b7   :  { %2705 = vmatprep.subr.mxu1 %v6850_v33  ;;  %4043 = vmatpush3.msra.mxu0 %v106_v35  ;;  %v1786_v56 = vpop.f32.mrf.mxu0 }
 0x1b8   :  { %7417 = vst [vmem:[#allocation11_spill] sm:$0xff] %v6865_v10  ;;  %2706 = vmatpush1.msra.mxu1 %v6859_v40  ;;  %2739 = vmatprep.mubr.f32.mxu1 %v4157_v3  ;;  %v6886_v62 = vadd.f32 %v1786_v56, %v1709_v49  ;;  %v6951_v56 = vld [vmem:[%s7405_s3 + $0xa0] sm:$0xff] }
 0x1b9   :  { %4044 = vmatprep.subr.mxu0 %v421_v7  ;;  %3982 = vmatmul.mubr.msk.f32.vlgmr.msra.gmra.mxu1 %vm2591_vm2, %v6776_v61 }
 0x1ba   :  { %7418 = vst [vmem:[#allocation12_spill] sm:$0xff] %v6886_v62  ;;  %2776 = vmatprep.subr.mxu1 %v6871_v51  ;;  %4045 = vmatpush3.msra.mxu0 %v85_v54 }
 0x1bb   :  { %2777 = vmatpush1.msra.mxu1 %v6881_v17  ;;  %4046 = vmatprep.subr.mxu0 %v400_v23 }
 0x1bc   :  { %2778 = vmatprep.subr.mxu1 %v6893_v0  ;;  %4047 = vmatpush3.msra.mxu0 %v64_v1 }
 0x1bd   :  { %2745 = vmatprep.mubr.f32.mxu1 %v4157_v3  ;;  %2779 = vmatpush1.msra.mxu1 %v6902_v6  ;;  %v1713_v28 = vpop.f32.mrf.mxu1 }
 0x1be   :  { %4048 = vmatprep.subr.mxu0 %v379_v11  ;;  %3983 = vmatmul.mubr.msk.f32.gmra.mxu1 %vm2591_vm2, %v6822_v22  ;;  %v1790_v35 = vpop.f32.mrf.mxu0 }
 0x1bf   :  { %2780 = vmatprep.subr.mxu1 %v6912_v14  ;;  %4049 = vmatpush3.msra.mxu0 %v43_v20  ;;  %v6942_v7 = vadd.f32 %v1790_v35, %v1713_v28  ;;  %v1715_v49 = vpop.f32.mrf.mxu1 }
 0x1c0   :  { %2475 = vmatprep.mubr.f32.mxu0 %v6553_v43  ;;  %2781 = vmatpush1.msra.mxu1 %v6922_v21  ;;  %v1792_v54 = vpop.f32.mrf.mxu0  ;;  %v6965_v43 = vld [vmem:[%s7405_s3 + $0x68] sm:$0xff] }
 0x1c1   :  { %7419 = vst [vmem:[#allocation13_spill] sm:$0xff] %v6942_v7  ;;  %2476 = vmatmul.mubr.f32.vlgmr.msra.gmra.mxu0 %v6565_v48  ;;  %2782 = vmatprep.subr.mxu1 %v6929_v31  ;;  %v6953_v23 = vadd.f32 %v1792_v54, %v1715_v49  ;;  %v6976_v48 = vld [vmem:[%s7405_s3 + $0x30] sm:$0xff] }
 0x1c2   :  { %4100 = vmatprep.subr.mxu0 %v6935_v36  ;;  %2783 = vmatpush1.msra.mxu1 %v6940_v44 }
 0x1c3   :  { %7420 = vst [vmem:[#allocation14_spill] sm:$0xff] %v6953_v23  ;;  %2816 = vmatprep.mubr.f32.mxu1 %v4157_v3  ;;  %4101 = vmatpush3.msra.mxu0 %v6935_v36  ;;  %v1938_v1 = vpop.f32.mrf.mxu1 }
 0x1c4   :  { %3984 = vmatmul.mubr.msk.f32.vlgmr.msra.gmra.mxu1 %vm2591_vm2, %v6776_v61  ;;  %4102 = vmatprep.subr.mxu0 %v6951_v56 }
 0x1c5   :  { %2937 = vmatprep.subr.mxu1 %v6698_v34  ;;  %2480 = vmatprep.mubr.f32.mxu0 %v6588_v55  ;;  %v3988_v55 = vld [vmem:[%s7406_s2 + $0x10] sm:$0xff] }
 0x1c6   :  { %4103 = vmatpush3.msra.mxu0 %v6951_v56  ;;  %2938 = vmatpush1.msra.mxu1 %v6708_v37 }
 0x1c7   :  { %2481 = vmatmul.mubr.f32.gmra.mxu0 %v6604_v58  ;;  %4104 = vmatprep.subr.mxu0 %v6965_v43  ;;  %v3989_v58 = vld [vmem:[%s7406_s2 + $0x18] sm:$0xf] }
 0x1c8   :  { %2939 = vmatprep.subr.mxu1 %v6717_v41  ;;  %2822 = vmatprep.mubr.f32.mxu1 %v4157_v3 }
 0x1c9   :  { %4105 = vmatpush3.msra.mxu0 %v6965_v43  ;;  %2940 = vmatpush1.msra.mxu1 %v6727_v42 }
 0x1ca   :  { %3985 = vmatmul.mubr.msk.f32.gmra.mxu1 %vm2591_vm2, %v6822_v22  ;;  %4106 = vmatprep.subr.mxu0 %v6976_v48 }
 0x1cb   :  { %2941 = vmatprep.subr.mxu1 %v6736_v47  ;;  %4107 = vmatpush3.msra.mxu0 %v6976_v48 }
 0x1cc   :  { %4108 = vmatprep.mubr.msk.f32.mxu0 %vm2591_vm2, %v6776_v61  ;;  %2942 = vmatpush1.msra.mxu1 %v6747_v53  ;;  %v3998_v61 = vld [vmem:[%s7406_s2 + $0x20] sm:$0xff] }
 0x1cd   :  { %4109 = vmatmul.mubr.msk.f32.vlgmr.msra.gmra.mxu0 %vm2591_vm2, %v6822_v22  ;;  %2943 = vmatprep.subr.mxu1 %v6756_v57  ;;  %v3999_v22 = vld [vmem:[%s7406_s2 + $0x28] sm:$0xf] }
 0x1ce   :  { %3014 = vmatprep.subr.mxu0 %v6782_v24  ;;  %2944 = vmatpush1.msra.mxu1 %v6767_v60 }
 0x1cf   :  { %2977 = vmatprep.mubr.f32.mxu1 %v4157_v3  ;;  %3015 = vmatpush1.msra.mxu0 %v6792_v4 }
 0x1d0   :  { %3990 = vmatmul.mubr.msk.f32.vlgmr.msra.gmra.mxu1 %vm2591_vm2, %v3988_v55  ;;  %3016 = vmatprep.subr.mxu0 %v6802_v9 }
 0x1d1   :  { %3091 = vmatprep.subr.mxu1 %v6871_v51  ;;  %3017 = vmatpush1.msra.mxu0 %v6813_v16 }
 0x1d2   :  { %3092 = vmatpush1.msra.mxu1 %v6881_v17  ;;  %3018 = vmatprep.subr.mxu0 %v6830_v27 }
 0x1d3   :  { %3093 = vmatprep.subr.mxu1 %v6893_v0  ;;  %2983 = vmatprep.mubr.f32.mxu1 %v4157_v3 }
 0x1d4   :  { %3019 = vmatpush1.msra.mxu0 %v6840_v29  ;;  %3094 = vmatpush1.msra.mxu1 %v6902_v6 }
 0x1d5   :  { %3991 = vmatmul.mubr.msk.f32.gmra.mxu1 %vm2591_vm2, %v3989_v58  ;;  %3020 = vmatprep.subr.mxu0 %v6850_v33 }
 0x1d6   :  { %3095 = vmatprep.subr.mxu1 %v6912_v14  ;;  %3021 = vmatpush1.msra.mxu0 %v6859_v40 }
 0x1d7   :  { %3054 = vmatprep.mubr.f32.mxu0 %v4157_v3  ;;  %3096 = vmatpush1.msra.mxu1 %v6922_v21 }
 0x1d8   :  { %3992 = vmatmul.mubr.msk.f32.vlgmr.msra.gmra.mxu0 %vm2591_vm2, %v3988_v55  ;;  %3097 = vmatprep.subr.mxu1 %v6929_v31 }
 0x1d9   :  { %4111 = vmatprep.subr.mxu0 %v6935_v36  ;;  %3098 = vmatpush1.msra.mxu1 %v6940_v44 }
 0x1da   :  { %3131 = vmatprep.mubr.f32.mxu1 %v4157_v3  ;;  %4112 = vmatpush3.msra.mxu0 %v6935_v36 }
 0x1db   :  { %3994 = vmatmul.mubr.msk.f32.vlgmr.msra.gmra.mxu1 %vm2591_vm2, %v3988_v55  ;;  %4113 = vmatprep.subr.mxu0 %v6951_v56 }
 0x1dc   :  { %3252 = vmatprep.subr.mxu1 %v6698_v34  ;;  %3060 = vmatprep.mubr.f32.mxu0 %v4157_v3 }
 0x1dd   :  { %4114 = vmatpush3.msra.mxu0 %v6951_v56  ;;  %3253 = vmatpush1.msra.mxu1 %v6708_v37 }
 0x1de   :  { %3993 = vmatmul.mubr.msk.f32.gmra.mxu0 %vm2591_vm2, %v3989_v58  ;;  %4115 = vmatprep.subr.mxu0 %v6965_v43 }
 0x1df   :  { %3254 = vmatprep.subr.mxu1 %v6717_v41  ;;  %3137 = vmatprep.mubr.f32.mxu1 %v4157_v3 }
 0x1e0   :  { %4116 = vmatpush3.msra.mxu0 %v6965_v43  ;;  %3255 = vmatpush1.msra.mxu1 %v6727_v42 }
 0x1e1   :  { %3995 = vmatmul.mubr.msk.f32.gmra.mxu1 %vm2591_vm2, %v3989_v58  ;;  %4117 = vmatprep.subr.mxu0 %v6976_v48 }
 0x1e2   :  { %3256 = vmatprep.subr.mxu1 %v6736_v47  ;;  %4118 = vmatpush3.msra.mxu0 %v6976_v48 }
 0x1e3   :  { %4119 = vmatprep.mubr.msk.f32.mxu0 %vm2591_vm2, %v3988_v55  ;;  %3257 = vmatpush1.msra.mxu1 %v6747_v53 }
 0x1e4   :  { %4120 = vmatmul.mubr.msk.f32.vlgmr.msra.gmra.mxu0 %vm2591_vm2, %v3989_v58  ;;  %3258 = vmatprep.subr.mxu1 %v6756_v57 }
 0x1e5   :  { %3329 = vmatprep.subr.mxu0 %v6782_v24  ;;  %3259 = vmatpush1.msra.mxu1 %v6767_v60 }
 0x1e6   :  { %3292 = vmatprep.mubr.f32.mxu1 %v4157_v3  ;;  %3330 = vmatpush1.msra.mxu0 %v6792_v4 }
 0x1e7   :  { %4000 = vmatmul.mubr.msk.f32.vlgmr.msra.gmra.mxu1 %vm2591_vm2, %v3998_v61  ;;  %3331 = vmatprep.subr.mxu0 %v6802_v9 }
 0x1e8   :  { %3406 = vmatprep.subr.mxu1 %v6871_v51  ;;  %3332 = vmatpush1.msra.mxu0 %v6813_v16 }
 0x1e9   :  { %3407 = vmatpush1.msra.mxu1 %v6881_v17  ;;  %3333 = vmatprep.subr.mxu0 %v6830_v27 }
 0x1ea   :  { %3408 = vmatprep.subr.mxu1 %v6893_v0  ;;  %3298 = vmatprep.mubr.f32.mxu1 %v4157_v3 }
 0x1eb   :  { %3334 = vmatpush1.msra.mxu0 %v6840_v29  ;;  %3409 = vmatpush1.msra.mxu1 %v6902_v6 }
 0x1ec   :  { %4001 = vmatmul.mubr.msk.f32.gmra.mxu1 %vm2591_vm2, %v3999_v22  ;;  %3335 = vmatprep.subr.mxu0 %v6850_v33 }
 0x1ed   :  { %3410 = vmatprep.subr.mxu1 %v6912_v14  ;;  %3336 = vmatpush1.msra.mxu0 %v6859_v40 }
 0x1ee   :  { %3369 = vmatprep.mubr.f32.mxu0 %v4157_v3  ;;  %3411 = vmatpush1.msra.mxu1 %v6922_v21 }
 0x1ef   :  { %4002 = vmatmul.mubr.msk.f32.vlgmr.msra.gmra.mxu0 %vm2591_vm2, %v3998_v61  ;;  %3412 = vmatprep.subr.mxu1 %v6929_v31 }
 0x1f0   :  { %4122 = vmatprep.subr.mxu0 %v6935_v36  ;;  %3413 = vmatpush1.msra.mxu1 %v6940_v44 }
 0x1f1   :  { %3446 = vmatprep.mubr.f32.mxu1 %v4157_v3  ;;  %4123 = vmatpush3.msra.mxu0 %v6935_v36 }
 0x1f2   :  { %4004 = vmatmul.mubr.msk.f32.vlgmr.msra.gmra.mxu1 %vm2591_vm2, %v3998_v61  ;;  %4124 = vmatprep.subr.mxu0 %v6951_v56 }
 0x1f3   :  { %3581 = vmatprep.subr.mxu1 %v6698_v34  ;;  %3375 = vmatprep.mubr.f32.mxu0 %v4157_v3 }
 0x1f4   :  { %4125 = vmatpush3.msra.mxu0 %v6951_v56  ;;  %3582 = vmatpush1.msra.mxu1 %v6708_v37 }
 0x1f5   :  { %4003 = vmatmul.mubr.msk.f32.gmra.mxu0 %vm2591_vm2, %v3999_v22  ;;  %4126 = vmatprep.subr.mxu0 %v6965_v43 }
 0x1f6   :  { %3583 = vmatprep.subr.mxu1 %v6717_v41  ;;  %3452 = vmatprep.mubr.f32.mxu1 %v4157_v3  ;;  %v1940_v41 = vpop.f32.mrf.mxu1 }
 0x1f7   :  { %4127 = vmatpush3.msra.mxu0 %v6965_v43  ;;  %3584 = vmatpush1.msra.mxu1 %v6727_v42  ;;  %v4008_v42 = vld [vmem:[%s7406_s2 + $0x30] sm:$0xff] }
 0x1f8   :  { %4005 = vmatmul.mubr.msk.f32.gmra.mxu1 %vm2591_vm2, %v3999_v22  ;;  %4128 = vmatprep.subr.mxu0 %v6976_v48 }
 0x1f9   :  { %3585 = vmatprep.subr.mxu1 %v6736_v47  ;;  %4129 = vmatpush3.msra.mxu0 %v6976_v48  ;;  %v1861_v34 = vpop.f32.mrf.mxu0 }
 0x1fa   :  { %4130 = vmatprep.mubr.msk.f32.mxu0 %vm2591_vm2, %v3998_v61  ;;  %3586 = vmatpush1.msra.mxu1 %v6747_v53  ;;  %v7095_v37 = vadd.f32 %v1938_v1, %v1861_v34 }
 0x1fb   :  { %4131 = vmatmul.mubr.msk.f32.vlgmr.msra.gmra.mxu0 %vm2591_vm2, %v3999_v22  ;;  %3587 = vmatprep.subr.mxu1 %v6756_v57  ;;  %v1863_v11 = vpop.f32.mrf.mxu0  ;;  %v4009_v57 = vld [vmem:[%s7406_s2 + $0x38] sm:$0xf] }
 0x1fc   :  { %7421 = vst [vmem:[#allocation15_spill] sm:$0xff] %v7095_v37  ;;  %3658 = vmatprep.subr.mxu0 %v6782_v24  ;;  %3588 = vmatpush1.msra.mxu1 %v6767_v60  ;;  %v7104_v47 = vadd.f32 %v1940_v41, %v1863_v11 }
 0x1fd   :  { %3621 = vmatprep.mubr.f32.mxu1 %v4157_v3  ;;  %3659 = vmatpush1.msra.mxu0 %v6792_v4 }
 0x1fe   :  { %7422 = vst [vmem:[#allocation16_spill] sm:$0xff] %v7104_v47  ;;  %4010 = vmatmul.mubr.msk.f32.vlgmr.msra.gmra.mxu1 %vm2591_vm2, %v4008_v42  ;;  %3660 = vmatprep.subr.mxu0 %v6802_v9 }
 0x1ff   :  { %3735 = vmatprep.subr.mxu1 %v6871_v51  ;;  %3661 = vmatpush1.msra.mxu0 %v6813_v16  ;;  %v1867_v53 = vpop.f32.mrf.mxu0 }
 0x200   :  { %3736 = vmatpush1.msra.mxu1 %v6881_v17  ;;  %3662 = vmatprep.subr.mxu0 %v6830_v27  ;;  %v1944_v60 = vpop.f32.mrf.mxu1 }
 0x201   :  { %3737 = vmatprep.subr.mxu1 %v6893_v0  ;;  %3627 = vmatprep.mubr.f32.mxu1 %v4157_v3  ;;  %v7119_v24 = vadd.f32 %v1944_v60, %v1867_v53  ;;  %v1869_v4 = vpop.f32.mrf.mxu0 }
 0x202   :  { %3663 = vmatpush1.msra.mxu0 %v6840_v29  ;;  %3738 = vmatpush1.msra.mxu1 %v6902_v6  ;;  %v1946_v9 = vpop.f32.mrf.mxu1 }
 0x203   :  { %7423 = vst [vmem:[#allocation17_spill] sm:$0xff] %v7119_v24  ;;  %4011 = vmatmul.mubr.msk.f32.gmra.mxu1 %vm2591_vm2, %v4009_v57  ;;  %3664 = vmatprep.subr.mxu0 %v6850_v33  ;;  %v7125_v16 = vadd.f32 %v1946_v9, %v1869_v4 }
 0x204   :  { %3739 = vmatprep.subr.mxu1 %v6912_v14  ;;  %3665 = vmatpush1.msra.mxu0 %v6859_v40 }
 0x205   :  { %7424 = vst [vmem:[#allocation18_spill] sm:$0xff] %v7125_v16  ;;  %3698 = vmatprep.mubr.f32.mxu0 %v4157_v3  ;;  %3740 = vmatpush1.msra.mxu1 %v6922_v21 }
 0x206   :  { %4012 = vmatmul.mubr.msk.f32.vlgmr.msra.gmra.mxu0 %vm2591_vm2, %v4008_v42  ;;  %3741 = vmatprep.subr.mxu1 %v6929_v31  ;;  %v7150_v27 = vpop.f32.mrf.mxu1 }
 0x207   :  { %4133 = vmatprep.subr.mxu0 %v6935_v36  ;;  %3742 = vmatpush1.msra.mxu1 %v6940_v44  ;;  %v2092_v14 = vpop.f32.mrf.mxu0 }
 0x208   :  { %3775 = vmatprep.mubr.f32.mxu1 %v4157_v3  ;;  %4134 = vmatpush3.msra.mxu0 %v6935_v36  ;;  %v7152_v29 = vpop.f32.mrf.mxu1 }
 0x209   :  { %4014 = vmatmul.mubr.msk.f32.vlgmr.msra.gmra.mxu1 %vm2591_vm2, %v4008_v42  ;;  %4135 = vmatprep.subr.mxu0 %v6951_v56  ;;  %v2094_v21 = vpop.f32.mrf.mxu0 }
 0x20a   :  { %3704 = vmatprep.mubr.f32.mxu0 %v4157_v3  ;;  %4136 = vmatpush3.msra.mxu0 %v6951_v56 }
 0x20b   :  { %4013 = vmatmul.mubr.msk.f32.gmra.mxu0 %vm2591_vm2, %v4009_v57  ;;  %4137 = vmatprep.subr.mxu0 %v6965_v43 }
 0x20c   :  { %3781 = vmatprep.mubr.f32.mxu1 %v4157_v3  ;;  %4138 = vmatpush3.msra.mxu0 %v6965_v43 }
 0x20d   :  { %4015 = vmatmul.mubr.msk.f32.gmra.mxu1 %vm2591_vm2, %v4009_v57  ;;  %4139 = vmatprep.subr.mxu0 %v6976_v48 }
 0x20e   :  { %4140 = vmatpush3.msra.mxu0 %v6976_v48  ;;  %4141 = vmatprep.mubr.msk.f32.mxu0 %vm2591_vm2, %v4008_v42 }
 0x20f   :  { %4142 = vmatmul.mubr.msk.f32.vlgmr.msra.gmra.mxu0 %vm2591_vm2, %v4009_v57  ;;  %v7154_v33 = vpop.f32.mrf.mxu1 }
 0x210   :  { %v2098_v31 = vpop.f32.mrf.mxu0 }
 0x211   :  { %v7156_v40 = vpop.f32.mrf.mxu1 }
 0x212   :  { %v2100_v36 = vpop.f32.mrf.mxu0 }
 0x215   :  { %v7158_v3 = vpop.f32.mrf.mxu1 }
 0x217   :  { %v7160_v51 = vpop.f32.mrf.mxu1 }
 0x24b   :  { %v2169_v44 = vpop.f32.mrf.mxu0 }
 0x24d   :  { %v2171_v54 = vpop.f32.mrf.mxu0 }
 0x251   :  { %v2175_v48 = vpop.f32.mrf.mxu0 }
 0x252   :  { %v7162_v17 = vpop.f32.mrf.mxu1 }
 0x253   :  { %v2177_v58 = vpop.f32.mrf.mxu0 }
 0x254   :  { %v7164_v0 = vpop.f32.mrf.mxu1 }
 0x258   :  { %v7166_v6 = vpop.f32.mrf.mxu1 }
 0x259   :  { %v2400_v1 = vpop.f32.mrf.mxu0 }
 0x25a   :  { %v7168_v20 = vpop.f32.mrf.mxu1 }
 0x25b   :  { %v2402_v42 = vpop.f32.mrf.mxu0 }
 0x261   :  { %v7170_v28 = vpop.f32.mrf.mxu1 }
 0x262   :  { %v2406_v11 = vpop.f32.mrf.mxu0 }
 0x263   :  { %v7172_v35 = vpop.f32.mrf.mxu1 }
 0x264   :  { %v2408_v60 = vpop.f32.mrf.mxu0 }
 0x267   :  { %v7174_v49 = vpop.f32.mrf.mxu1 }
 0x268   :  { %7425 = vst [vmem:[#allocation19_spill] sm:$0xff] %v7174_v49 }
 0x269   :  { %v7176_v56 = vpop.f32.mrf.mxu1 }
 0x26a   :  { %7426 = vst [vmem:[#allocation20_spill] sm:$0xff] %v7176_v56 }
 0x26f   :  { %v2664_v43 = vpop.f32.mrf.mxu1 }
 0x271   :  { %v2666_v55 = vpop.f32.mrf.mxu1 }
 0x274   :  { %v7178_v61 = vpop.f32.mrf.mxu1 }
 0x276   :  { %v7180_v22 = vpop.f32.mrf.mxu1 }
 0x279   :  { %v7182_v34 = vpop.f32.mrf.mxu1 }
 0x27b   :  { %v7184_v41 = vpop.f32.mrf.mxu1 }
 0x27e   :  { %v7186_v53 = vpop.f32.mrf.mxu1 }
 0x280   :  { %v7188_v57 = vpop.f32.mrf.mxu1 }
 0x281   :  { %v4050_v4 = vpop.f32.mrf.mxu0 }
 0x283   :  { %v4051_v16 = vpop.f32.mrf.mxu0 }
 0x284   :  { %v7190_v9 = vpop.f32.mrf.mxu1 }
 0x286   :  { %v7192_v47 = vpop.f32.mrf.mxu1 }
 0x287   :  { %7427 = vst [vmem:[#allocation21_spill] sm:$0xff] %v7192_v47  ;;  %v4053_v23 = vpop.f32.mrf.mxu0 }
 0x289   :  { %v4054_v37 = vpop.f32.mrf.mxu0 }
 0x28a   :  { %v7194_v24 = vpop.f32.mrf.mxu1 }
 0x28b   :  { %7428 = vst [vmem:[#allocation22_spill] sm:$0xff] %v7194_v24 }
 0x28c   :  { %v7196_v7 = vpop.f32.mrf.mxu1 }
 0x28d   :  { %7429 = vst [vmem:[#allocation23_spill] sm:$0xff] %v7196_v7  ;;  %v7198_v10 = vpop.f32.mrf.mxu0 }
 0x28e   :  { %7430 = vst [vmem:[#allocation24_spill] sm:$0xff] %v7198_v10 }
 0x28f   :  { %v7204_v30 = vpop.f32.mrf.mxu0 }
 0x290   :  { %v2979_v26 = vpop.f32.mrf.mxu1  ;;  %7433 = vst [vmem:[#allocation27_spill] sm:$0xff] %v7204_v30 }
 0x292   :  { %v2981_v62 = vpop.f32.mrf.mxu1 }
 0x295   :  { %v7200_v18 = vpop.f32.mrf.mxu1 }
 0x296   :  { %7431 = vst [vmem:[#allocation25_spill] sm:$0xff] %v7200_v18 }
 0x297   :  { %v7202_v59 = vpop.f32.mrf.mxu1 }
 0x298   :  { %7432 = vst [vmem:[#allocation26_spill] sm:$0xff] %v7202_v59  ;;  %v7206_v13 = vpop.f32.mrf.mxu0 }
 0x299   :  { %7434 = vst [vmem:[#allocation28_spill] sm:$0xff] %v7206_v13 }
 0x29a   :  { %v7212_v24 = vpop.f32.mrf.mxu0 }
 0x29b   :  { %v7208_v49 = vpop.f32.mrf.mxu1  ;;  %7437 = vst [vmem:[#allocation31_spill] sm:$0xff] %v7212_v24 }
 0x29c   :  { %7435 = vst [vmem:[#allocation29_spill] sm:$0xff] %v7208_v49 }
 0x29d   :  { %v7210_v46 = vpop.f32.mrf.mxu1 }
 0x29e   :  { %7436 = vst [vmem:[#allocation30_spill] sm:$0xff] %v7210_v46  ;;  %v7216_v39 = vpop.f32.mrf.mxu0 }
 0x29f   :  { %7439 = vst [vmem:[#allocation33_spill] sm:$0xff] %v7216_v39 }
 0x2a0   :  { %v7220_v10 = vpop.f32.mrf.mxu0 }
 0x2a1   :  { %v7214_v7 = vpop.f32.mrf.mxu1  ;;  %7441 = vst [vmem:[#allocation35_spill] sm:$0xff] %v7220_v10 }
 0x2a2   :  { %7438 = vst [vmem:[#allocation32_spill] sm:$0xff] %v7214_v7 }
 0x2a3   :  { %v7218_v56 = vpop.f32.mrf.mxu1 }
 0x2a4   :  { %7440 = vst [vmem:[#allocation34_spill] sm:$0xff] %v7218_v56  ;;  %v7222_v38 = vpop.f32.mrf.mxu0 }
 0x2a5   :  { %7442 = vst [vmem:[#allocation36_spill] sm:$0xff] %v7222_v38  ;;  %v2093_v38 = vadd.f32 %v2092_v14, %v7150_v27  ;;  %v7257_v27 = vadd.f32 %v7164_v0, %v2177_v58  ;;  %v3544_v0 = vmul.f32 %v7178_v61, %v5791_v25  ;;  %v3546_v25 = vmul.f32 %v7186_v53, %v5895_v8  ;;  %v7456_v58 = vld [vmem:[#allocation22_spill] sm:$0xff] }
 0x2a6   :  { %v7224_v13 = vpop.f32.mrf.mxu0 }
 0x2a7   :  { %v3294_v18 = vpop.f32.mrf.mxu1  ;;  %7443 = vst [vmem:[#allocation37_spill] sm:$0xff] %v7224_v13  ;;  %v2095_v13 = vadd.f32 %v2094_v21, %v7152_v29  ;;  %v7260_v29 = vadd.f32 %v2400_v1, %v7166_v6  ;;  %v3545_v6 = vmul.f32 %v7180_v22, %v5805_v32  ;;  %v4055_v21 = vadd.f32 %v4054_v37, %v4053_v23  ;;  %v7450_v23 = vld [vmem:[#allocation2_spill] sm:$0xff]  ;;  %v7451_v37 = vld [vmem:[#allocation21_spill] sm:$0xff]  ;;  %v7459_v22 = vld [vmem:[#allocation19_spill] sm:$0xff] }
 0x2a8   :  { %v7288_v32 = vmul.f32 %v7188_v57, %v5909_v15 }
 0x2a9   :  { %v3296_v59 = vpop.f32.mrf.mxu1  ;;  %v7308_v1 = vadd.f32 %v7459_v22, %v4055_v21  ;;  %v7466_v21 = vld [vmem:[#allocation8_spill] sm:$0xff] }
 0x2ac   :  { %v3300_v30 = vpop.f32.mrf.mxu1 }
 0x2ae   :  { %v7226_v49 = vpop.f32.mrf.mxu1 }
 0x2af   :  { %7444 = vst [vmem:[#allocation38_spill] sm:$0xff] %v7226_v49  ;;  %v7228_v46 = vpop.f32.mrf.mxu0  ;;  %v2099_v49 = vadd.f32 %v2098_v31, %v7154_v33  ;;  %v7263_v33 = vadd.f32 %v2402_v42, %v7168_v20  ;;  %v4052_v20 = vadd.f32 %v4051_v16, %v4050_v4  ;;  %v7453_v16 = vld [vmem:[#allocation25_spill] sm:$0xff] }
 0x2b0   :  { %7445 = vst [vmem:[#allocation39_spill] sm:$0xff] %v7228_v46  ;;  %v2101_v46 = vadd.f32 %v2100_v36, %v7156_v40  ;;  %v7266_v40 = vadd.f32 %v2406_v11, %v7170_v28  ;;  %v3864_v36 = vmul.f32 %v2981_v62, %v6741_v50  ;;  %v3892_v50 = vmul.f32 %v3296_v59, %v2095_v13  ;;  %v7458_v59 = vld [vmem:[#allocation23_spill] sm:$0xff]  ;;  %v7460_v42 = vld [vmem:[#allocation9_spill] sm:$0xff]  ;;  %v7461_v11 = vld [vmem:[#allocation26_spill] sm:$0xff] }
 0x2b1   :  { %v7232_v7 = vpop.f32.mrf.mxu0  ;;  %v3871_v53 = vmul.f32 %v7461_v11, %v7460_v42  ;;  %v3898_v57 = vmul.f32 %v3300_v30, %v2099_v49  ;;  %v7469_v30 = vld [vmem:[#allocation31_spill] sm:$0xff] }
 0x2b2   :  { %v7230_v24 = vpop.f32.mrf.mxu1  ;;  %v7479_v42 = vld [vmem:[#allocation35_spill] sm:$0xff] }
 0x2b3   :  { %7446 = vst [vmem:[#allocation40_spill] sm:$0xff] %v7230_v24  ;;  %v2247_v24 = vadd.f32 %v7158_v3, %v2169_v44 }
 0x2b4   :  { %v7234_v39 = vpop.f32.mrf.mxu1 }
 0x2b5   :  { %7447 = vst [vmem:[#allocation41_spill] sm:$0xff] %v7234_v39  ;;  %v7236_v56 = vpop.f32.mrf.mxu0  ;;  %v7250_v39 = vadd.f32 %v7160_v51, %v2171_v54  ;;  %v7269_v51 = vadd.f32 %v2408_v60, %v7172_v35  ;;  %v3891_v35 = vmul.f32 %v3294_v18, %v2093_v38 }
 0x2b6   :  { %7448 = vst [vmem:[#allocation42_spill] sm:$0xff] %v7236_v56  ;;  %v7253_v56 = vadd.f32 %v7162_v17, %v2175_v48  ;;  %v3538_v17 = vmul.f32 %v2666_v55, %v5759_v5  ;;  %v3539_v5 = vmul.f32 %v7182_v34, %v5837_v45  ;;  %v3542_v45 = vmul.f32 %v7451_v37, %v7450_v23  ;;  %v7455_v55 = vld [vmem:[#allocation3_spill] sm:$0xff]  ;;  %v7472_v23 = vld [vmem:[#allocation29_spill] sm:$0xff] }
 0x2b7   :  { %v7246_v19 = vpop.f32.mrf.mxu0  ;;  %v3548_v61 = vmul.f32 %v7456_v58, %v7455_v55  ;;  %v7474_v55 = vld [vmem:[#allocation10_spill] sm:$0xff]  ;;  %v7475_v58 = vld [vmem:[#allocation33_spill] sm:$0xff] }
 0x2b8   :  { %v7238_v10 = vpop.f32.mrf.mxu1 }
 0x2ba   :  { %v7240_v47 = vpop.f32.mrf.mxu1 }
 0x2bb   :  { %7449 = vst [vmem:[#allocation43_spill] sm:$0xff] %v7240_v47  ;;  %v3537_v47 = vmul.f32 %v2664_v43, %v5745_v2  ;;  %v3863_v2 = vmul.f32 %v2979_v26, %v6340_v63  ;;  %v7277_v31 = vpop.f32.mrf.mxu0  ;;  %v3540_v63 = vmul.f32 %v7184_v41, %v5851_v52  ;;  %v3541_v26 = vmul.f32 %v7190_v9, %v6234_v12  ;;  %v7454_v43 = vld [vmem:[#allocation20_spill] sm:$0xff] }
 0x2bc   :  { %v7297_v48 = vadd.f32 %v4052_v20, %v7454_v43  ;;  %v7457_v12 = vld [vmem:[#allocation4_spill] sm:$0xff] }
 0x2bd   :  { %v7299_v8 = vpop.f32.mrf.mxu0  ;;  %v7305_v13 = vmul.f32 %v7458_v59, %v7457_v12  ;;  %v3872_v12 = vmul.f32 %v7475_v58, %v7474_v55  ;;  %v7477_v59 = vld [vmem:[#allocation30_spill] sm:$0xff] }
 0x2be   :  { %v3623_v3 = vpop.f32.mrf.mxu1 }
 0x2bf   :  { %v3624_v14 = vadd.f32 %v3623_v3, %v3537_v47  ;;  %v7452_v47 = vld [vmem:[#allocation7_spill] sm:$0xff]  ;;  %v7462_v3 = vld [vmem:[#allocation6_spill] sm:$0xff] }
 0x2c0   :  { %v3625_v28 = vpop.f32.mrf.mxu1  ;;  %v3870_v52 = vmul.f32 %v7453_v16, %v7452_v47  ;;  %v7473_v47 = vld [vmem:[#allocation39_spill] sm:$0xff] }
 0x2c1   :  { %v3877_v44 = vadd.f32 %v3863_v2, %v3624_v14  ;;  %v3626_v54 = vadd.f32 %v3625_v28, %v3538_v17  ;;  %v7463_v17 = vld [vmem:[#allocation24_spill] sm:$0xff]  ;;  %v7464_v14 = vld [vmem:[#allocation5_spill] sm:$0xff]  ;;  %v3893_v16 = vmul.f32 %v7473_v47, %v2247_v24  ;;  %v3894_v24 = vmul.f32 %v7232_v7, %v7250_v39 }
 0x2c2   :  { %v3550_v2 = vmul.f32 %v7463_v17, %v7462_v3  ;;  %v7467_v28 = vld [vmem:[#allocation28_spill] sm:$0xff]  ;;  %v7484_v7 = vld [vmem:[#allocation41_spill] sm:$0xff] }
 0x2c3   :  { %v3905_v38 = vadd.f32 %v3891_v35, %v3877_v44  ;;  %v3878_v18 = vadd.f32 %v3864_v36, %v3626_v54  ;;  %v3629_v62 = vpop.f32.mrf.mxu1  ;;  %v3865_v36 = vmul.f32 %v7467_v28, %v7466_v21  ;;  %v7468_v44 = vld [vmem:[#allocation11_spill] sm:$0xff]  ;;  %v7483_v28 = vld [vmem:[#allocation42_spill] sm:$0xff] }
 0x2c4   :  { %v3630_v15 = vadd.f32 %v3629_v62, %v3544_v0  ;;  %v7465_v0 = vld [vmem:[#allocation27_spill] sm:$0xff]  ;;  %v3866_v49 = vmul.f32 %v7469_v30, %v7468_v44  ;;  %v7471_v62 = vld [vmem:[#allocation12_spill] sm:$0xff]  ;;  %v3900_v39 = vmul.f32 %v7483_v28, %v7253_v56 }
 0x2c5   :  { %3919 = vst [vmem:[%s7407_s4] sm:$0xff] %v3905_v38  ;;  %v3906_v34 = vadd.f32 %v3892_v50, %v3878_v18  ;;  %v3631_v41 = vpop.f32.mrf.mxu1  ;;  %v7319_v20 = vmul.f32 %v7465_v0, %v7464_v14  ;;  %v3867_v37 = vmul.f32 %v7472_v23, %v7471_v62  ;;  %v7481_v14 = vld [vmem:[#allocation14_spill] sm:$0xff]  ;;  %v7482_v0 = vld [vmem:[#allocation32_spill] sm:$0xff] }
 0x2c6   :  { %v3884_v60 = vadd.f32 %v3870_v52, %v3630_v15  ;;  %v3632_v4 = vadd.f32 %v3631_v41, %v3545_v6  ;;  %v3700_v9 = vpop.f32.mrf.mxu0  ;;  %v7470_v6 = vld [vmem:[#allocation38_spill] sm:$0xff]  ;;  %v7478_v41 = vld [vmem:[#allocation13_spill] sm:$0xff]  ;;  %v3874_v21 = vmul.f32 %v7482_v0, %v7481_v14  ;;  %v7488_v56 = vld [vmem:[#allocation36_spill] sm:$0xff] }
 0x2c7   :  { %3920 = vst [vmem:[%s7407_s4 + $0x8] sm:$0xff] %v3906_v34  ;;  %v3701_v35 = vadd.f32 %v3700_v9, %v3539_v5  ;;  %v3899_v54 = vmul.f32 %v7470_v6, %v2101_v46  ;;  %v7476_v5 = vld [vmem:[#allocation15_spill] sm:$0xff]  ;;  %v3873_v11 = vmul.f32 %v7479_v42, %v7478_v41  ;;  %v7485_v6 = vld [vmem:[#allocation17_spill] sm:$0xff] }
 0x2c8   :  { %v3912_v50 = vadd.f32 %v3898_v57, %v3884_v60  ;;  %v3885_v38 = vadd.f32 %v3871_v53, %v3632_v4  ;;  %v3702_v18 = vpop.f32.mrf.mxu0  ;;  %v3868_v22 = vmul.f32 %v7477_v59, %v7476_v5  ;;  %v7480_v4 = vld [vmem:[#allocation40_spill] sm:$0xff] }
 0x2c9   :  { %v3879_v52 = vadd.f32 %v3865_v36, %v3701_v35  ;;  %v3703_v43 = vadd.f32 %v3702_v18, %v3540_v63  ;;  %v3777_v15 = vpop.f32.mrf.mxu1  ;;  %v3895_v9 = vmul.f32 %v7480_v4, %v7260_v29  ;;  %v3896_v36 = vmul.f32 %v7484_v7, %v7263_v33 }
 0x2ca   :  { %3926 = vst [vmem:[%s7407_s4 + $0x38] sm:$0xf] %v3912_v50  ;;  %v3913_v46 = vadd.f32 %v3899_v54, %v3885_v38  ;;  %v3778_v34 = vadd.f32 %v3777_v15, %v3541_v26  ;;  %v7486_v54 = vld [vmem:[#allocation34_spill] sm:$0xff]  ;;  %v3901_v33 = vmul.f32 %v7246_v19, %v7257_v27  ;;  %v7490_v15 = vld [vmem:[#allocation37_spill] sm:$0xff]  ;;  %v3902_v19 = vmul.f32 %v7238_v10, %v7266_v40 }
 0x2cb   :  { %v3907_v63 = vadd.f32 %v3893_v16, %v3879_v52  ;;  %v3880_v53 = vadd.f32 %v3866_v49, %v3703_v43  ;;  %v3706_v57 = vpop.f32.mrf.mxu0  ;;  %v3779_v60 = vpop.f32.mrf.mxu1  ;;  %v3875_v50 = vmul.f32 %v7486_v54, %v7485_v6  ;;  %v7487_v38 = vld [vmem:[#allocation18_spill] sm:$0xff]  ;;  %v7489_v43 = vld [vmem:[#allocation16_spill] sm:$0xff]  ;;  %v3904_v10 = vmul.f32 %v7277_v31, %v7308_v1 }
 0x2cc   :  { %3927 = vst [vmem:[%s7407_s4 + $0x40] sm:$0xf] %v3913_v46  ;;  %v3881_v3 = vadd.f32 %v3867_v37, %v3778_v34  ;;  %v3707_v17 = vadd.f32 %v3706_v57, %v3546_v25  ;;  %v3780_v26 = vadd.f32 %v3779_v60, %v3542_v45  ;;  %v3876_v18 = vmul.f32 %v7488_v56, %v7487_v38 }
 0x2cd   :  { %3921 = vst [vmem:[%s7407_s4 + $0x10] sm:$0xff] %v3907_v63  ;;  %v3908_v29 = vadd.f32 %v3894_v24, %v3880_v53  ;;  %v3708_v35 = vpop.f32.mrf.mxu0  ;;  %v3783_v44 = vpop.f32.mrf.mxu1  ;;  %v3869_v55 = vmul.f32 %v7490_v15, %v7489_v43 }
 0x2ce   :  { %v3909_v30 = vadd.f32 %v3895_v9, %v3881_v3  ;;  %v3886_v49 = vadd.f32 %v3872_v12, %v3707_v17  ;;  %v3882_v25 = vadd.f32 %v3868_v22, %v3780_v26  ;;  %v3709_v45 = vadd.f32 %v3708_v35, %v7288_v32  ;;  %v7491_v12 = vld [vmem:[#allocation43_spill] sm:$0xff] }
 0x2cf   :  { %3922 = vst [vmem:[%s7407_s4 + $0x18] sm:$0xff] %v3908_v29  ;;  %v3784_v62 = vadd.f32 %v3783_v44, %v3548_v61  ;;  %v3785_v23 = vpop.f32.mrf.mxu1  ;;  %v4143_v37 = vpop.f32.mrf.mxu0  ;;  %v3903_v5 = vmul.f32 %v7491_v12, %v7269_v51  ;;  %v3897_v51 = vmul.f32 %v7299_v8, %v7297_v48 }
 0x2d0   :  { %3923 = vst [vmem:[%s7407_s4 + $0x20] sm:$0xff] %v3909_v30  ;;  %v3914_v32 = vadd.f32 %v3900_v39, %v3886_v49  ;;  %v3910_v47 = vadd.f32 %v3896_v36, %v3882_v25  ;;  %v3887_v16 = vadd.f32 %v3873_v11, %v3709_v45  ;;  %v3786_v52 = vadd.f32 %v3785_v23, %v7305_v13 }
 0x2d1   :  { %v3888_v27 = vadd.f32 %v3874_v21, %v3784_v62  ;;  %v3860_v58 = vadd.f32 %v4143_v37, %v3550_v2  ;;  %v3854_v61 = vpop.f32.mrf.mxu0 }
 0x2d2   :  { %3928 = vst [vmem:[%s7407_s4 + $0x48] sm:$0xf] %v3914_v32  ;;  %3924 = vst [vmem:[%s7407_s4 + $0x28] sm:$0xff] %v3910_v47  ;;  %v3915_v13 = vadd.f32 %v3901_v33, %v3887_v16  ;;  %v3889_v59 = vadd.f32 %v3875_v50, %v3786_v52  ;;  %v3855_v22 = vadd.f32 %v3854_v61, %v7319_v20 }
 0x2d3   :  { %v3916_v40 = vadd.f32 %v3902_v19, %v3888_v27  ;;  %v3890_v2 = vadd.f32 %v3876_v18, %v3860_v58 }
 0x2d4   :  { %3929 = vst [vmem:[%s7407_s4 + $0x50] sm:$0xf] %v3915_v13  ;;  %v3917_v46 = vadd.f32 %v3903_v5, %v3889_v59  ;;  %v3883_v34 = vadd.f32 %v3869_v55, %v3855_v22 }
 0x2d5   :  { %3930 = vst [vmem:[%s7407_s4 + $0x58] sm:$0xf] %v3916_v40  ;;  %v3918_v41 = vadd.f32 %v3904_v10, %v3890_v2 }
 0x2d6   :  { %3931 = vst [vmem:[%s7407_s4 + $0x60] sm:$0xf] %v3917_v46  ;;  %v3911_v31 = vadd.f32 %v3897_v51, %v3883_v34 }
 0x2d7   :  { %3932 = vst [vmem:[%s7407_s4 + $0x68] sm:$0xf] %v3918_v41 }
 0x2d8   :  { %3925 = vst [vmem:[%s7407_s4 + $0x30] sm:$0xff] %v3911_v31 }

</bundles_post_ra>
